<compile_context>
chip_gen: v7x
topology: tpu7x:2x2x1
jax: 0.10.0
libtpu: 0.0.40
codegen_flags: <defaults>
</compile_context>

<pallas_src>
import functools

import jax
import jax.numpy as jnp
import numpy as np
from jax import lax
from jax.experimental import pallas as pl
from jax.experimental.pallas import tpu as pltpu


# -----------------------------------------------------------------------------
# Static conv-chain configuration (xuance cnn_block: padding = (k - s) // 2)
# -----------------------------------------------------------------------------
def _conv_out(size, k, s, p):
    return (size + 2 * p - k) // s + 1


def make_conv_cfgs(H, W, C):
    """Per-layer tuples (H, W, Cin, K, stride, pad, OH, OW, Cout)."""
    cfgs = []
    specs = [(8, 8, 4, 2), (16, 6, 2, 2), (32, 4, 2, 1)]  # (Cout, k, s, p)
    cin = C
    for cout, k, s, p in specs:
        oh, ow = _conv_out(H, k, s, p), _conv_out(W, k, s, p)
        cfgs.append((H, W, cin, k, s, p, oh, ow, cout))
        H, W, cin = oh, ow, cout
    return tuple(cfgs)


# -----------------------------------------------------------------------------
# One-time weight preparation (hoisted off the forward hot path)
# -----------------------------------------------------------------------------
def _conv_weight_rowmat(w_oihw, W_in, stride, pad):
    """(Cout,Cin,K,K) torch conv weight -> (K*W_in*Cin, OW*Cout) row-slab matrix.

    For one output row oh:
      y[ow*Cout+co] = sum_{kh,w,ci} x[oh*s+kh-pad, w, ci] * M[(kh*W_in+w)*Cin+ci, ow*Cout+co]
    Width padding is absorbed as zero entries of M; height padding is handled in the
    kernel by statically clipping the input slab together with the matching rows of M.
    """
    w = np.asarray(w_oihw, np.float32)
    Cout, Cin, KH, KW = w.shape
    OW = _conv_out(W_in, KW, stride, pad)
    M = np.zeros((KH, W_in, Cin, OW, Cout), np.float32)
    for kh in range(KH):
        for ow in range(OW):
            for kw in range(KW):
                col = ow * stride + kw - pad
                if 0 <= col < W_in:
                    M[kh, col, :, ow, :] += w[:, :, kh, kw].T  # (Cin, Cout)
    return jnp.asarray(M.reshape(KH * W_in * Cin, OW * Cout))


def prepare_params(params, topdown_hwc, compute_dtype=jnp.bfloat16):
    """compute_dtype: dtype of the conv inputs/weights/intermediates on the MXU path.
    Accumulation and the bias+ReLU epilogue are always f32."""
    H, W, C = topdown_hwc
    cfgs = make_conv_cfgs(H, W, C)
    prep = {"cfgs": cfgs, "compute_dtype": compute_dtype}
    for idx, cfg in enumerate(cfgs, start=1):
        _H, Win, _Cin, _k, s, p, _oh, ow, cout = cfg
        prep[f"wc{idx}"] = _conv_weight_rowmat(
            params[f"conv{idx}_w"], Win, s, p).astype(compute_dtype)
        prep[f"bc{idx}"] = jnp.tile(jnp.asarray(params[f"conv{idx}_b"], jnp.float32),
                                    ow).reshape(1, ow * cout)
    prep["wf1"] = jnp.asarray(params["fc1_w"], jnp.float32).T          # (L, 64)
    prep["bf1"] = jnp.asarray(params["fc1_b"], jnp.float32).reshape(1, -1)
    prep["wf2"] = jnp.asarray(params["fc2_w"], jnp.float32).T          # (64, 128)
    prep["bf2"] = jnp.asarray(params["fc2_b"], jnp.float32).reshape(1, -1)
    return prep


# -----------------------------------------------------------------------------
# Fused forward kernel: conv1 -> conv2 -> conv3 -> state[:, :sem] ; fc1 -> fc2 -> state[:, sem:]
# -----------------------------------------------------------------------------
def _fused_forward_kernel(td_ref, ls_ref,
                          wc1_ref, bc1_ref, wc2_ref, bc2_ref, wc3_ref, bc3_ref,
                          wf1_ref, bf1_ref, wf2_ref, bf2_ref,
                          o_ref, h1_ref, h2_ref,
                          *, cfgs, sem_dim, apply_relu):
    f32 = jnp.float32

    def act(v):
        return jnp.maximum(v, 0.0) if apply_relu else v

    def conv_layer(src_ref, dst_ref, w_ref, b_ref, cfg):
        H, W, Cin, K, s, p, OH, OW, Cout = cfg
        wc = W * Cin            # flat width of one input row  (w, ci)
        oc = OW * Cout          # flat width of one output row (ow, co)
        bias = b_ref[...]       # (1, oc) f32, hoisted out of the row loop
        # Static row loop (compile-time slab/store offsets); see header TODO(synk) re
        # fori_loop for interior rows if spills show up at the real shape.
        for oh in range(OH):    # OH <= 32 even at the full 128x128 input
            start = oh * s - p
            lo, hi = max(start, 0), min(start + K, H)            # clip height padding
            slab = src_ref[:, pl.ds(lo * wc, (hi - lo) * wc)]    # (tb, rows*wc), compute dtype
            wsub = w_ref[pl.ds((lo - start) * wc, (hi - lo) * wc), :]  # (rows*wc, oc)
            y = jnp.dot(slab, wsub, preferred_element_type=f32) + bias  # f32 accumulate
            dst_ref[:, pl.ds(oh * oc, oc)] = act(y).astype(dst_ref.dtype)

    cfg1, cfg2, cfg3 = cfgs
    # semantic encoder; conv3 writes the flattened NHWC feature straight into the state.
    conv_layer(td_ref, h1_ref, wc1_ref, bc1_ref, cfg1)
    conv_layer(h1_ref, h2_ref, wc2_ref, bc2_ref, cfg2)
    conv_layer(h2_ref, o_ref, wc3_ref, bc3_ref, cfg3)

    # laser encoder (f32 throughout; fc1 output never leaves vregs/VMEM).
    p1 = act(jnp.dot(ls_ref[...], wf1_ref[...], preferred_element_type=f32) + bf1_ref[...])
    p2 = act(jnp.dot(p1, wf2_ref[...], preferred_element_type=f32) + bf2_ref[...])
    o_ref[:, pl.ds(sem_dim, p2.shape[-1])] = p2.astype(o_ref.dtype)


# -----------------------------------------------------------------------------
# Wrapper: VMEM-aware tiling + pallas_call
# -----------------------------------------------------------------------------
def _round_up(x, m):
    return (x + m - 1) // m * m


def _vmem_capacity_bytes():
    """Physical per-core VMEM; conservative fallback (v7x: 64 MiB) if the query fails."""
    try:
        return int(pltpu.get_tpu_info().vmem_capacity_bytes)
    except Exception:
        return 64 << 20


def baseline_cnn_forward(observations, prep, apply_relu=True, batch_tile=None):
    compute_dtype = prep["compute_dtype"]
    cbytes = np.dtype(compute_dtype).itemsize
    laser = jnp.asarray(observations["laser"], jnp.float32)        # (N, L)
    topdown = jnp.asarray(observations["topdown"], jnp.float32)    # (N, H, W, C) NHWC
    N, H, W, C = topdown.shape
    L = laser.shape[1]
    cfgs = prep["cfgs"]
    assert (H, W, C) == (cfgs[0][0], cfgs[0][1], cfgs[0][2])

    oh1, ow1, c1 = cfgs[0][6:9]
    oh2, ow2, c2 = cfgs[1][6:9]
    oh3, ow3, c3 = cfgs[2][6:9]
    sem_dim = oh3 * ow3 * c3
    laser_feat = prep["wf2"].shape[1]
    out_dim = sem_dim + laser_feat

    weights = [prep["wc1"], prep["bc1"], prep["wc2"], prep["bc2"],
               prep["wc3"], prep["bc3"], prep["wf1"], prep["bf1"],
               prep["wf2"], prep["bf2"]]

    # ---- VMEM-driven batch-tile selection.  At the real 128x128x3 input the topdown
    # block is 96 KiB/row in bf16 (192 KiB in f32), so the tile must be derived from the
    # actual device VMEM rather than a fixed 256. ----
    weight_bytes = 2 * sum(int(w.size) * w.dtype.itemsize for w in weights)   # worst case: dbl-buf
    in_row = H * W * C * cbytes
    per_row = (2 * in_row                      # double-buffered topdown block
               + 2 * L * 4                     # double-buffered laser block
               + oh1 * ow1 * c1 * cbytes       # conv1 scratch
               + oh2 * ow2 * c2 * cbytes       # conv2 scratch
               + 2 * out_dim * 4)              # double-buffered state block (f32)
    phys = _vmem_capacity_bytes()
    budget = int(phys * 0.7) - weight_bytes - (4 << 20)   # headroom for compiler scratch
    tile_m = 16 if cbytes == 2 else 8                     # sublane packing of compute dtype
    tb = max(tile_m, min(256, budget // max(per_row, 1)))
    if batch_tile is not None:
        tb = min(tb, max(tile_m, batch_tile))
    if N > tile_m:
        # keep >=2 grid steps: v7x megacore sharding and DMA/compute overlap need >1 step
        tb = min(tb, max(tile_m, _round_up(N, tile_m) // 2))
    else:
        tb = min(tb, _round_up(max(N, 1), tile_m))
    tb = max(tile_m, (tb // tile_m) * tile_m)
    n_pad = _round_up(N, tb)
    steps = n_pad // tb

    # Optional 3rd input buffer: the topdown block carries ~95% of the HBM bytes.
    needed = weight_bytes + per_row * tb
    in_bufs = 2
    if steps >= 3 and needed + tb * in_row <= int(phys * 0.75):
        in_bufs = 3
        needed += tb * in_row
    vmem_limit = int(min(int(phys * 0.9), max(needed + (6 << 20), 32 << 20)))

    # Flatten NHWC topdown (free, contiguous), cast to the compute dtype, pad the batch.
    td2d = topdown.reshape(N, H * W * C).astype(compute_dtype)
    if n_pad != N:
        td2d = jnp.pad(td2d, ((0, n_pad - N), (0, 0)))
        laser = jnp.pad(laser, ((0, n_pad - N), (0, 0)))

    kernel = functools.partial(_fused_forward_kernel, cfgs=cfgs,
                               sem_dim=sem_dim, apply_relu=apply_relu)

    def build_and_run(use_pipeline_mode):
        # Grid-invariant weights -> single buffer (reclaims ~2.75 MiB bf16 / 5.5 MiB f32).
        if use_pipeline_mode:
            wspec = lambda a: pl.BlockSpec(a.shape, lambda i: (0, 0),
                                           pipeline_mode=pl.Buffered(1))
        else:
            wspec = lambda a: pl.BlockSpec(a.shape, lambda i: (0, 0))
        if use_pipeline_mode and in_bufs != 2:
            td_spec = pl.BlockSpec((tb, H * W * C), lambda i: (i, 0),
                                   pipeline_mode=pl.Buffered(in_bufs))
        else:
            td_spec = pl.BlockSpec((tb, H * W * C), lambda i: (i, 0))

        out = pl.pallas_call(
            kernel,
            out_shape=jax.ShapeDtypeStruct((n_pad, out_dim), jnp.float32),
            grid=(steps,),
            in_specs=[td_spec,
                      pl.BlockSpec((tb, L), lambda i: (i, 0))]
                     + [wspec(w) for w in weights],
            out_specs=pl.BlockSpec((tb, out_dim), lambda i: (i, 0)),
            scratch_shapes=[
                pltpu.VMEM((tb, oh1 * ow1 * c1), compute_dtype),  # conv1 out
                pltpu.VMEM((tb, oh2 * ow2 * c2), compute_dtype),  # conv2 out
            ],
            compiler_params=pltpu.CompilerParams(
                dimension_semantics=("parallel",),
                vmem_limit_bytes=vmem_limit),
        )(td2d, laser, *weights)
        return jax.block_until_ready(out)

    try:
        out = build_and_run(True)
    except Exception:
        # Fallback for Pallas builds that reject pipeline_mode / Buffered(1).
        out = build_and_run(False)

    return {"state": out[:N]}


# -----------------------------------------------------------------------------
# Deterministic PyTorch-style init (uniform(-1/sqrt(fan_in), +1/sqrt(fan_in)))
# -----------------------------------------------------------------------------
def init_params(key, laser_dim, topdown_channels):
    def u(key, shape, fan_in):
        bound = 1.0 / jnp.sqrt(jnp.float32(fan_in))
        return jax.random.uniform(key, shape, jnp.float32, -bound, bound)

    ks = jax.random.split(key, 10)
    c_in = topdown_channels
    return {
        "conv1_w": u(ks[0], (8, c_in, 8, 8), c_in * 8 * 8),
        "conv1_b": u(ks[1], (8,),            c_in * 8 * 8),
        "conv2_w": u(ks[2], (16, 8, 6, 6),   8 * 6 * 6),
        "conv2_b": u(ks[3], (16,),           8 * 6 * 6),
        "conv3_w": u(ks[4], (32, 16, 4, 4),  16 * 4 * 4),
        "conv3_b": u(ks[5], (32,),           16 * 4 * 4),
        "fc1_w":   u(ks[6], (64, laser_dim), laser_dim),
        "fc1_b":   u(ks[7], (64,),           laser_dim),
        "fc2_w":   u(ks[8], (128, 64),       64),
        "fc2_b":   u(ks[9], (128,),          64),
    }


# -----------------------------------------------------------------------------
# Pure-JAX reference (lax.conv, f32) for the correctness sanity check
# -----------------------------------------------------------------------------
def reference_forward(observations, params, apply_relu=True):
    def act(x):
        return jnp.maximum(x, 0.0) if apply_relu else x

    def conv(x, w_oihw, b, s, p):
        w_hwio = jnp.transpose(w_oihw, (2, 3, 1, 0))
        y = lax.conv_general_dilated(
            x, w_hwio, window_strides=(s, s), padding=((p, p), (p, p)),
            dimension_numbers=("NHWC", "HWIO", "NHWC"))
        return act(y + b)

    laser = observations["laser"].astype(jnp.float32)
    td = observations["topdown"].astype(jnp.float32)
    h = conv(td, params["conv1_w"], params["conv1_b"], 4, 2)
    h = conv(h,  params["conv2_w"], params["conv2_b"], 2, 2)
    h = conv(h,  params["conv3_w"], params["conv3_b"], 2, 1)
    sem = h.reshape(h.shape[0], -1)
    p1 = act(laser @ params["fc1_w"].T + params["fc1_b"])
    p2 = act(p1 @ params["fc2_w"].T + params["fc2_b"])
    return {"state": jnp.concatenate([sem, p2], axis=-1)}


if __name__ == "__main__":
    key = jax.random.PRNGKey(0)
    k_td, k_ls, k_p = jax.random.split(key, 3)

    # Small shapes consistent with the module's forward:
    #   topdown NHWC (2, 32, 32, 3): 32 -k8s4p2-> 8 -k6s2p2-> 4 -k4s2p1-> 2
    #   => semantic feature 32*2*2 = 128 ; laser (2, 8) -> 64 -> 128 ; state (2, 256)
    #   (the module's stated 2048+128 output corresponds to a 128x128 topdown)
    observations = {
        "topdown": jax.random.uniform(k_td, (2, 32, 32, 3), jnp.float32),
        "laser":   jax.random.uniform(k_ls, (2, 8), jnp.float32),
    }
    params = init_params(k_p, laser_dim=8, topdown_channels=3)
    ref = jax.block_until_ready(reference_forward(observations, params)["state"])

    # 1) f32 compute path: tight semantic check against the lax.conv reference.
    prep_f32 = prepare_params(params, topdown_hwc=(32, 32, 3), compute_dtype=jnp.float32)
    out_f32 = jax.block_until_ready(baseline_cnn_forward(observations, prep_f32)["state"])
    assert out_f32.shape == (2, 32 * 2 * 2 + 128), out_f32.shape
    err32 = float(jnp.abs(out_f32 - ref).max())
    assert jnp.allclose(out_f32, ref, atol=2e-3, rtol=2e-3), err32

    # 2) bf16 compute path (default / production precision): looser tolerance.
    prep_bf16 = prepare_params(params, topdown_hwc=(32, 32, 3), compute_dtype=jnp.bfloat16)
    out_bf16 = jax.block_until_ready(baseline_cnn_forward(observations, prep_bf16)["state"])
    assert out_bf16.shape == (2, 32 * 2 * 2 + 128), out_bf16.shape
    err16 = float(jnp.abs(out_bf16.astype(jnp.float32) - ref).max())
    assert jnp.allclose(out_bf16.astype(jnp.float32), ref, atol=3e-2, rtol=3e-2), err16

    print("KERNEL_OK")
</pallas_src>

<mosaic_0001>
module attributes {stable_mosaic.version = 11 : i64} {
  func.func @_fused_forward_kernel(%arg0: i32, %arg1: memref<8x3072xf32, #tpu.memory_space<vmem>>, %arg2: memref<8x8xf32, #tpu.memory_space<vmem>>, %arg3: memref<768x64xf32, #tpu.memory_space<vmem>>, %arg4: memref<1x64xf32, #tpu.memory_space<vmem>>, %arg5: memref<384x64xf32, #tpu.memory_space<vmem>>, %arg6: memref<1x64xf32, #tpu.memory_space<vmem>>, %arg7: memref<256x64xf32, #tpu.memory_space<vmem>>, %arg8: memref<1x64xf32, #tpu.memory_space<vmem>>, %arg9: memref<8x64xf32, #tpu.memory_space<vmem>>, %arg10: memref<1x64xf32, #tpu.memory_space<vmem>>, %arg11: memref<64x128xf32, #tpu.memory_space<vmem>>, %arg12: memref<1x128xf32, #tpu.memory_space<vmem>>, %arg13: memref<8x256xf32, #tpu.memory_space<vmem>>, %arg14: memref<8x512xf32, #tpu.memory_space<vmem>>, %arg15: memref<8x256xf32, #tpu.memory_space<vmem>>) attributes {dimension_semantics = [#tpu.dimension_semantics<parallel>], iteration_bounds = array<i64: 1>, scalar_prefetch = 0 : i64, scratch_operands = 2 : i64, tpu.core_type = #tpu.core_type<tc>, window_params = [{transform_indices = @transform_0, window_bounds = array<i64: 8, 3072>}, {transform_indices = @transform_1, window_bounds = array<i64: 8, 8>}, {pipeline_mode = #tpu.pipeline_mode<synchronous>, transform_indices = @transform_2, window_bounds = array<i64: 768, 64>}, {pipeline_mode = #tpu.pipeline_mode<synchronous>, transform_indices = @transform_3, window_bounds = array<i64: 1, 64>}, {pipeline_mode = #tpu.pipeline_mode<synchronous>, transform_indices = @transform_4, window_bounds = array<i64: 384, 64>}, {pipeline_mode = #tpu.pipeline_mode<synchronous>, transform_indices = @transform_5, window_bounds = array<i64: 1, 64>}, {pipeline_mode = #tpu.pipeline_mode<synchronous>, transform_indices = @transform_6, window_bounds = array<i64: 256, 64>}, {pipeline_mode = #tpu.pipeline_mode<synchronous>, transform_indices = @transform_7, window_bounds = array<i64: 1, 64>}, {pipeline_mode = #tpu.pipeline_mode<synchronous>, transform_indices = @transform_8, window_bounds = array<i64: 8, 64>}, {pipeline_mode = #tpu.pipeline_mode<synchronous>, transform_indices = @transform_9, window_bounds = array<i64: 1, 64>}, {pipeline_mode = #tpu.pipeline_mode<synchronous>, transform_indices = @transform_10, window_bounds = array<i64: 64, 128>}, {pipeline_mode = #tpu.pipeline_mode<synchronous>, transform_indices = @transform_11, window_bounds = array<i64: 1, 128>}, {transform_indices = @transform_12, window_bounds = array<i64: 8, 256>}]} {
    %c0 = arith.constant 0 : index
    %c0_0 = arith.constant 0 : index
    %0 = vector.load %arg4[%c0, %c0_0] : memref<1x64xf32, #tpu.memory_space<vmem>>, vector<1x64xf32>
    %c0_1 = arith.constant 0 : index
    %c0_2 = arith.constant 0 : index
    %1 = vector.load %arg1[%c0_1, %c0_2] : memref<8x3072xf32, #tpu.memory_space<vmem>>, vector<8x576xf32>
    %c192 = arith.constant 192 : index
    %c0_3 = arith.constant 0 : index
    %2 = vector.load %arg3[%c192, %c0_3] : memref<768x64xf32, #tpu.memory_space<vmem>>, vector<576x64xf32>
    %cst = arith.constant dense<0.000000e+00> : vector<8x64xf32>
    %3 = tpu.matmul %1, %2, %cst {dimension_numbers = #tpu.dot_dimension_numbers<[1], [0], [0], [1], [0, 0, 1, 1], [], []>} : vector<8x576xf32>, vector<576x64xf32>, vector<8x64xf32> -> vector<8x64xf32>
    %4 = vector.broadcast %0 : vector<1x64xf32> to vector<8x64xf32>
    %5 = arith.addf %3, %4 : vector<8x64xf32>
    %cst_4 = arith.constant 0.000000e+00 : f32
    %6 = vector.broadcast %cst_4 : f32 to vector<8x64xf32>
    %7 = arith.maximumf %5, %6 : vector<8x64xf32>
    %c0_5 = arith.constant 0 : index
    %c0_6 = arith.constant 0 : index
    %8 = vector.load %arg14[%c0_5, %c0_6] : memref<8x512xf32, #tpu.memory_space<vmem>>, vector<8x64xf32>
    tpu.vector_store %arg14[%c0_5, %c0_6], %7 {strides = array<i32>} : memref<8x512xf32, #tpu.memory_space<vmem>>, vector<8x64xf32>,
    %c0_7 = arith.constant 0 : index
    %c192_8 = arith.constant 192 : index
    %9 = vector.load %arg1[%c0_7, %c192_8] : memref<8x3072xf32, #tpu.memory_space<vmem>>, vector<8x768xf32>
    %c0_9 = arith.constant 0 : index
    %c0_10 = arith.constant 0 : index
    %10 = vector.load %arg3[%c0_9, %c0_10] : memref<768x64xf32, #tpu.memory_space<vmem>>, vector<768x64xf32>
    %cst_11 = arith.constant dense<0.000000e+00> : vector<8x64xf32>
    %11 = tpu.matmul %9, %10, %cst_11 {dimension_numbers = #tpu.dot_dimension_numbers<[1], [0], [0], [1], [0, 0, 1, 1], [], []>} : vector<8x768xf32>, vector<768x64xf32>, vector<8x64xf32> -> vector<8x64xf32>
    %12 = vector.broadcast %0 : vector<1x64xf32> to vector<8x64xf32>
    %13 = arith.addf %11, %12 : vector<8x64xf32>
    %cst_12 = arith.constant 0.000000e+00 : f32
    %14 = vector.broadcast %cst_12 : f32 to vector<8x64xf32>
    %15 = arith.maximumf %13, %14 : vector<8x64xf32>
    %c0_13 = arith.constant 0 : index
    %c64 = arith.constant 64 : index
    %16 = vector.load %arg14[%c0_13, %c64] : memref<8x512xf32, #tpu.memory_space<vmem>>, vector<8x64xf32>
    tpu.vector_store %arg14[%c0_13, %c64], %15 {strides = array<i32>} : memref<8x512xf32, #tpu.memory_space<vmem>>, vector<8x64xf32>,
    %c0_14 = arith.constant 0 : index
    %c576 = arith.constant 576 : index
    %17 = vector.load %arg1[%c0_14, %c576] : memref<8x3072xf32, #tpu.memory_space<vmem>>, vector<8x768xf32>
    %c0_15 = arith.constant 0 : index
    %c0_16 = arith.constant 0 : index
    %18 = vector.load %arg3[%c0_15, %c0_16] : memref<768x64xf32, #tpu.memory_space<vmem>>, vector<768x64xf32>
    %cst_17 = arith.constant dense<0.000000e+00> : vector<8x64xf32>
    %19 = tpu.matmul %17, %18, %cst_17 {dimension_numbers = #tpu.dot_dimension_numbers<[1], [0], [0], [1], [0, 0, 1, 1], [], []>} : vector<8x768xf32>, vector<768x64xf32>, vector<8x64xf32> -> vector<8x64xf32>
    %20 = vector.broadcast %0 : vector<1x64xf32> to vector<8x64xf32>
    %21 = arith.addf %19, %20 : vector<8x64xf32>
    %cst_18 = arith.constant 0.000000e+00 : f32
    %22 = vector.broadcast %cst_18 : f32 to vector<8x64xf32>
    %23 = arith.maximumf %21, %22 : vector<8x64xf32>
    %c0_19 = arith.constant 0 : index
    %c128 = arith.constant 128 : index
    %24 = vector.load %arg14[%c0_19, %c128] : memref<8x512xf32, #tpu.memory_space<vmem>>, vector<8x64xf32>
    tpu.vector_store %arg14[%c0_19, %c128], %23 {strides = array<i32>} : memref<8x512xf32, #tpu.memory_space<vmem>>, vector<8x64xf32>,
    %c0_20 = arith.constant 0 : index
    %c960 = arith.constant 960 : index
    %25 = vector.load %arg1[%c0_20, %c960] : memref<8x3072xf32, #tpu.memory_space<vmem>>, vector<8x768xf32>
    %c0_21 = arith.constant 0 : index
    %c0_22 = arith.constant 0 : index
    %26 = vector.load %arg3[%c0_21, %c0_22] : memref<768x64xf32, #tpu.memory_space<vmem>>, vector<768x64xf32>
    %cst_23 = arith.constant dense<0.000000e+00> : vector<8x64xf32>
    %27 = tpu.matmul %25, %26, %cst_23 {dimension_numbers = #tpu.dot_dimension_numbers<[1], [0], [0], [1], [0, 0, 1, 1], [], []>} : vector<8x768xf32>, vector<768x64xf32>, vector<8x64xf32> -> vector<8x64xf32>
    %28 = vector.broadcast %0 : vector<1x64xf32> to vector<8x64xf32>
    %29 = arith.addf %27, %28 : vector<8x64xf32>
    %cst_24 = arith.constant 0.000000e+00 : f32
    %30 = vector.broadcast %cst_24 : f32 to vector<8x64xf32>
    %31 = arith.maximumf %29, %30 : vector<8x64xf32>
    %c0_25 = arith.constant 0 : index
    %c192_26 = arith.constant 192 : index
    %32 = vector.load %arg14[%c0_25, %c192_26] : memref<8x512xf32, #tpu.memory_space<vmem>>, vector<8x64xf32>
    tpu.vector_store %arg14[%c0_25, %c192_26], %31 {strides = array<i32>} : memref<8x512xf32, #tpu.memory_space<vmem>>, vector<8x64xf32>,
    %c0_27 = arith.constant 0 : index
    %c1344 = arith.constant 1344 : index
    %33 = vector.load %arg1[%c0_27, %c1344] : memref<8x3072xf32, #tpu.memory_space<vmem>>, vector<8x768xf32>
    %c0_28 = arith.constant 0 : index
    %c0_29 = arith.constant 0 : index
    %34 = vector.load %arg3[%c0_28, %c0_29] : memref<768x64xf32, #tpu.memory_space<vmem>>, vector<768x64xf32>
    %cst_30 = arith.constant dense<0.000000e+00> : vector<8x64xf32>
    %35 = tpu.matmul %33, %34, %cst_30 {dimension_numbers = #tpu.dot_dimension_numbers<[1], [0], [0], [1], [0, 0, 1, 1], [], []>} : vector<8x768xf32>, vector<768x64xf32>, vector<8x64xf32> -> vector<8x64xf32>
    %36 = vector.broadcast %0 : vector<1x64xf32> to vector<8x64xf32>
    %37 = arith.addf %35, %36 : vector<8x64xf32>
    %cst_31 = arith.constant 0.000000e+00 : f32
    %38 = vector.broadcast %cst_31 : f32 to vector<8x64xf32>
    %39 = arith.maximumf %37, %38 : vector<8x64xf32>
    %c0_32 = arith.constant 0 : index
    %c256 = arith.constant 256 : index
    %40 = vector.load %arg14[%c0_32, %c256] : memref<8x512xf32, #tpu.memory_space<vmem>>, vector<8x64xf32>
    tpu.vector_store %arg14[%c0_32, %c256], %39 {strides = array<i32>} : memref<8x512xf32, #tpu.memory_space<vmem>>, vector<8x64xf32>,
    %c0_33 = arith.constant 0 : index
    %c1728 = arith.constant 1728 : index
    %41 = vector.load %arg1[%c0_33, %c1728] : memref<8x3072xf32, #tpu.memory_space<vmem>>, vector<8x768xf32>
    %c0_34 = arith.constant 0 : index
    %c0_35 = arith.constant 0 : index
    %42 = vector.load %arg3[%c0_34, %c0_35] : memref<768x64xf32, #tpu.memory_space<vmem>>, vector<768x64xf32>
    %cst_36 = arith.constant dense<0.000000e+00> : vector<8x64xf32>
    %43 = tpu.matmul %41, %42, %cst_36 {dimension_numbers = #tpu.dot_dimension_numbers<[1], [0], [0], [1], [0, 0, 1, 1], [], []>} : vector<8x768xf32>, vector<768x64xf32>, vector<8x64xf32> -> vector<8x64xf32>
    %44 = vector.broadcast %0 : vector<1x64xf32> to vector<8x64xf32>
    %45 = arith.addf %43, %44 : vector<8x64xf32>
    %cst_37 = arith.constant 0.000000e+00 : f32
    %46 = vector.broadcast %cst_37 : f32 to vector<8x64xf32>
    %47 = arith.maximumf %45, %46 : vector<8x64xf32>
    %c0_38 = arith.constant 0 : index
    %c320 = arith.constant 320 : index
    %48 = vector.load %arg14[%c0_38, %c320] : memref<8x512xf32, #tpu.memory_space<vmem>>, vector<8x64xf32>
    tpu.vector_store %arg14[%c0_38, %c320], %47 {strides = array<i32>} : memref<8x512xf32, #tpu.memory_space<vmem>>, vector<8x64xf32>,
    %c0_39 = arith.constant 0 : index
    %c2112 = arith.constant 2112 : index
    %49 = vector.load %arg1[%c0_39, %c2112] : memref<8x3072xf32, #tpu.memory_space<vmem>>, vector<8x768xf32>
    %c0_40 = arith.constant 0 : index
    %c0_41 = arith.constant 0 : index
    %50 = vector.load %arg3[%c0_40, %c0_41] : memref<768x64xf32, #tpu.memory_space<vmem>>, vector<768x64xf32>
    %cst_42 = arith.constant dense<0.000000e+00> : vector<8x64xf32>
    %51 = tpu.matmul %49, %50, %cst_42 {dimension_numbers = #tpu.dot_dimension_numbers<[1], [0], [0], [1], [0, 0, 1, 1], [], []>} : vector<8x768xf32>, vector<768x64xf32>, vector<8x64xf32> -> vector<8x64xf32>
    %52 = vector.broadcast %0 : vector<1x64xf32> to vector<8x64xf32>
    %53 = arith.addf %51, %52 : vector<8x64xf32>
    %cst_43 = arith.constant 0.000000e+00 : f32
    %54 = vector.broadcast %cst_43 : f32 to vector<8x64xf32>
    %55 = arith.maximumf %53, %54 : vector<8x64xf32>
    %c0_44 = arith.constant 0 : index
    %c384 = arith.constant 384 : index
    %56 = vector.load %arg14[%c0_44, %c384] : memref<8x512xf32, #tpu.memory_space<vmem>>, vector<8x64xf32>
    tpu.vector_store %arg14[%c0_44, %c384], %55 {strides = array<i32>} : memref<8x512xf32, #tpu.memory_space<vmem>>, vector<8x64xf32>,
    %c0_45 = arith.constant 0 : index
    %c2496 = arith.constant 2496 : index
    %57 = vector.load %arg1[%c0_45, %c2496] : memref<8x3072xf32, #tpu.memory_space<vmem>>, vector<8x576xf32>
    %c0_46 = arith.constant 0 : index
    %c0_47 = arith.constant 0 : index
    %58 = vector.load %arg3[%c0_46, %c0_47] : memref<768x64xf32, #tpu.memory_space<vmem>>, vector<576x64xf32>
    %cst_48 = arith.constant dense<0.000000e+00> : vector<8x64xf32>
    %59 = tpu.matmul %57, %58, %cst_48 {dimension_numbers = #tpu.dot_dimension_numbers<[1], [0], [0], [1], [0, 0, 1, 1], [], []>} : vector<8x576xf32>, vector<576x64xf32>, vector<8x64xf32> -> vector<8x64xf32>
    %60 = vector.broadcast %0 : vector<1x64xf32> to vector<8x64xf32>
    %61 = arith.addf %59, %60 : vector<8x64xf32>
    %cst_49 = arith.constant 0.000000e+00 : f32
    %62 = vector.broadcast %cst_49 : f32 to vector<8x64xf32>
    %63 = arith.maximumf %61, %62 : vector<8x64xf32>
    %c0_50 = arith.constant 0 : index
    %c448 = arith.constant 448 : index
    %64 = vector.load %arg14[%c0_50, %c448] : memref<8x512xf32, #tpu.memory_space<vmem>>, vector<8x64xf32>
    tpu.vector_store %arg14[%c0_50, %c448], %63 {strides = array<i32>} : memref<8x512xf32, #tpu.memory_space<vmem>>, vector<8x64xf32>,
    %c0_51 = arith.constant 0 : index
    %c0_52 = arith.constant 0 : index
    %65 = vector.load %arg6[%c0_51, %c0_52] : memref<1x64xf32, #tpu.memory_space<vmem>>, vector<1x64xf32>
    %c0_53 = arith.constant 0 : index
    %c0_54 = arith.constant 0 : index
    %66 = vector.load %arg14[%c0_53, %c0_54] : memref<8x512xf32, #tpu.memory_space<vmem>>, vector<8x256xf32>
    %c128_55 = arith.constant 128 : index
    %c0_56 = arith.constant 0 : index
    %67 = vector.load %arg5[%c128_55, %c0_56] : memref<384x64xf32, #tpu.memory_space<vmem>>, vector<256x64xf32>
    %cst_57 = arith.constant dense<0.000000e+00> : vector<8x64xf32>
    %68 = tpu.matmul %66, %67, %cst_57 {dimension_numbers = #tpu.dot_dimension_numbers<[1], [0], [0], [1], [0, 0, 1, 1], [], []>} : vector<8x256xf32>, vector<256x64xf32>, vector<8x64xf32> -> vector<8x64xf32>
    %69 = vector.broadcast %65 : vector<1x64xf32> to vector<8x64xf32>
    %70 = arith.addf %68, %69 : vector<8x64xf32>
    %cst_58 = arith.constant 0.000000e+00 : f32
    %71 = vector.broadcast %cst_58 : f32 to vector<8x64xf32>
    %72 = arith.maximumf %70, %71 : vector<8x64xf32>
    %c0_59 = arith.constant 0 : index
    %c0_60 = arith.constant 0 : index
    %73 = vector.load %arg15[%c0_59, %c0_60] : memref<8x256xf32, #tpu.memory_space<vmem>>, vector<8x64xf32>
    tpu.vector_store %arg15[%c0_59, %c0_60], %72 {strides = array<i32>} : memref<8x256xf32, #tpu.memory_space<vmem>>, vector<8x64xf32>,
    %c0_61 = arith.constant 0 : index
    %c0_62 = arith.constant 0 : index
    %74 = vector.load %arg14[%c0_61, %c0_62] : memref<8x512xf32, #tpu.memory_space<vmem>>, vector<8x384xf32>
    %c0_63 = arith.constant 0 : index
    %c0_64 = arith.constant 0 : index
    %75 = vector.load %arg5[%c0_63, %c0_64] : memref<384x64xf32, #tpu.memory_space<vmem>>, vector<384x64xf32>
    %cst_65 = arith.constant dense<0.000000e+00> : vector<8x64xf32>
    %76 = tpu.matmul %74, %75, %cst_65 {dimension_numbers = #tpu.dot_dimension_numbers<[1], [0], [0], [1], [0, 0, 1, 1], [], []>} : vector<8x384xf32>, vector<384x64xf32>, vector<8x64xf32> -> vector<8x64xf32>
    %77 = vector.broadcast %65 : vector<1x64xf32> to vector<8x64xf32>
    %78 = arith.addf %76, %77 : vector<8x64xf32>
    %cst_66 = arith.constant 0.000000e+00 : f32
    %79 = vector.broadcast %cst_66 : f32 to vector<8x64xf32>
    %80 = arith.maximumf %78, %79 : vector<8x64xf32>
    %c0_67 = arith.constant 0 : index
    %c64_68 = arith.constant 64 : index
    %81 = vector.load %arg15[%c0_67, %c64_68] : memref<8x256xf32, #tpu.memory_space<vmem>>, vector<8x64xf32>
    tpu.vector_store %arg15[%c0_67, %c64_68], %80 {strides = array<i32>} : memref<8x256xf32, #tpu.memory_space<vmem>>, vector<8x64xf32>,
    %c0_69 = arith.constant 0 : index
    %c128_70 = arith.constant 128 : index
    %82 = vector.load %arg14[%c0_69, %c128_70] : memref<8x512xf32, #tpu.memory_space<vmem>>, vector<8x384xf32>
    %c0_71 = arith.constant 0 : index
    %c0_72 = arith.constant 0 : index
    %83 = vector.load %arg5[%c0_71, %c0_72] : memref<384x64xf32, #tpu.memory_space<vmem>>, vector<384x64xf32>
    %cst_73 = arith.constant dense<0.000000e+00> : vector<8x64xf32>
    %84 = tpu.matmul %82, %83, %cst_73 {dimension_numbers = #tpu.dot_dimension_numbers<[1], [0], [0], [1], [0, 0, 1, 1], [], []>} : vector<8x384xf32>, vector<384x64xf32>, vector<8x64xf32> -> vector<8x64xf32>
    %85 = vector.broadcast %65 : vector<1x64xf32> to vector<8x64xf32>
    %86 = arith.addf %84, %85 : vector<8x64xf32>
    %cst_74 = arith.constant 0.000000e+00 : f32
    %87 = vector.broadcast %cst_74 : f32 to vector<8x64xf32>
    %88 = arith.maximumf %86, %87 : vector<8x64xf32>
    %c0_75 = arith.constant 0 : index
    %c128_76 = arith.constant 128 : index
    %89 = vector.load %arg15[%c0_75, %c128_76] : memref<8x256xf32, #tpu.memory_space<vmem>>, vector<8x64xf32>
    tpu.vector_store %arg15[%c0_75, %c128_76], %88 {strides = array<i32>} : memref<8x256xf32, #tpu.memory_space<vmem>>, vector<8x64xf32>,
    %c0_77 = arith.constant 0 : index
    %c256_78 = arith.constant 256 : index
    %90 = vector.load %arg14[%c0_77, %c256_78] : memref<8x512xf32, #tpu.memory_space<vmem>>, vector<8x256xf32>
    %c0_79 = arith.constant 0 : index
    %c0_80 = arith.constant 0 : index
    %91 = vector.load %arg5[%c0_79, %c0_80] : memref<384x64xf32, #tpu.memory_space<vmem>>, vector<256x64xf32>
    %cst_81 = arith.constant dense<0.000000e+00> : vector<8x64xf32>
    %92 = tpu.matmul %90, %91, %cst_81 {dimension_numbers = #tpu.dot_dimension_numbers<[1], [0], [0], [1], [0, 0, 1, 1], [], []>} : vector<8x256xf32>, vector<256x64xf32>, vector<8x64xf32> -> vector<8x64xf32>
    %93 = vector.broadcast %65 : vector<1x64xf32> to vector<8x64xf32>
    %94 = arith.addf %92, %93 : vector<8x64xf32>
    %cst_82 = arith.constant 0.000000e+00 : f32
    %95 = vector.broadcast %cst_82 : f32 to vector<8x64xf32>
    %96 = arith.maximumf %94, %95 : vector<8x64xf32>
    %c0_83 = arith.constant 0 : index
    %c192_84 = arith.constant 192 : index
    %97 = vector.load %arg15[%c0_83, %c192_84] : memref<8x256xf32, #tpu.memory_space<vmem>>, vector<8x64xf32>
    tpu.vector_store %arg15[%c0_83, %c192_84], %96 {strides = array<i32>} : memref<8x256xf32, #tpu.memory_space<vmem>>, vector<8x64xf32>,
    %c0_85 = arith.constant 0 : index
    %c0_86 = arith.constant 0 : index
    %98 = vector.load %arg8[%c0_85, %c0_86] : memref<1x64xf32, #tpu.memory_space<vmem>>, vector<1x64xf32>
    %c0_87 = arith.constant 0 : index
    %c0_88 = arith.constant 0 : index
    %99 = vector.load %arg15[%c0_87, %c0_88] : memref<8x256xf32, #tpu.memory_space<vmem>>, vector<8x192xf32>
    %c64_89 = arith.constant 64 : index
    %c0_90 = arith.constant 0 : index
    %100 = vector.load %arg7[%c64_89, %c0_90] : memref<256x64xf32, #tpu.memory_space<vmem>>, vector<192x64xf32>
    %cst_91 = arith.constant dense<0.000000e+00> : vector<8x64xf32>
    %101 = tpu.matmul %99, %100, %cst_91 {dimension_numbers = #tpu.dot_dimension_numbers<[1], [0], [0], [1], [0, 0, 1, 1], [], []>} : vector<8x192xf32>, vector<192x64xf32>, vector<8x64xf32> -> vector<8x64xf32>
    %102 = vector.broadcast %98 : vector<1x64xf32> to vector<8x64xf32>
    %103 = arith.addf %101, %102 : vector<8x64xf32>
    %cst_92 = arith.constant 0.000000e+00 : f32
    %104 = vector.broadcast %cst_92 : f32 to vector<8x64xf32>
    %105 = arith.maximumf %103, %104 : vector<8x64xf32>
    %c0_93 = arith.constant 0 : index
    %c0_94 = arith.constant 0 : index
    %106 = vector.load %arg13[%c0_93, %c0_94] : memref<8x256xf32, #tpu.memory_space<vmem>>, vector<8x64xf32>
    tpu.vector_store %arg13[%c0_93, %c0_94], %105 {strides = array<i32>} : memref<8x256xf32, #tpu.memory_space<vmem>>, vector<8x64xf32>,
    %c0_95 = arith.constant 0 : index
    %c64_96 = arith.constant 64 : index
    %107 = vector.load %arg15[%c0_95, %c64_96] : memref<8x256xf32, #tpu.memory_space<vmem>>, vector<8x192xf32>
    %c0_97 = arith.constant 0 : index
    %c0_98 = arith.constant 0 : index
    %108 = vector.load %arg7[%c0_97, %c0_98] : memref<256x64xf32, #tpu.memory_space<vmem>>, vector<192x64xf32>
    %cst_99 = arith.constant dense<0.000000e+00> : vector<8x64xf32>
    %109 = tpu.matmul %107, %108, %cst_99 {dimension_numbers = #tpu.dot_dimension_numbers<[1], [0], [0], [1], [0, 0, 1, 1], [], []>} : vector<8x192xf32>, vector<192x64xf32>, vector<8x64xf32> -> vector<8x64xf32>
    %110 = vector.broadcast %98 : vector<1x64xf32> to vector<8x64xf32>
    %111 = arith.addf %109, %110 : vector<8x64xf32>
    %cst_100 = arith.constant 0.000000e+00 : f32
    %112 = vector.broadcast %cst_100 : f32 to vector<8x64xf32>
    %113 = arith.maximumf %111, %112 : vector<8x64xf32>
    %c0_101 = arith.constant 0 : index
    %c64_102 = arith.constant 64 : index
    %114 = vector.load %arg13[%c0_101, %c64_102] : memref<8x256xf32, #tpu.memory_space<vmem>>, vector<8x64xf32>
    tpu.vector_store %arg13[%c0_101, %c64_102], %113 {strides = array<i32>} : memref<8x256xf32, #tpu.memory_space<vmem>>, vector<8x64xf32>,
    %c0_103 = arith.constant 0 : index
    %c0_104 = arith.constant 0 : index
    %115 = vector.load %arg2[%c0_103, %c0_104] : memref<8x8xf32, #tpu.memory_space<vmem>>, vector<8x8xf32>
    %c0_105 = arith.constant 0 : index
    %c0_106 = arith.constant 0 : index
    %116 = vector.load %arg9[%c0_105, %c0_106] : memref<8x64xf32, #tpu.memory_space<vmem>>, vector<8x64xf32>
    %cst_107 = arith.constant dense<0.000000e+00> : vector<8x64xf32>
    %117 = tpu.matmul %115, %116, %cst_107 {dimension_numbers = #tpu.dot_dimension_numbers<[1], [0], [0], [1], [0, 0, 1, 1], [], []>} : vector<8x8xf32>, vector<8x64xf32>, vector<8x64xf32> -> vector<8x64xf32>
    %c0_108 = arith.constant 0 : index
    %c0_109 = arith.constant 0 : index
    %118 = vector.load %arg10[%c0_108, %c0_109] : memref<1x64xf32, #tpu.memory_space<vmem>>, vector<1x64xf32>
    %119 = vector.broadcast %118 : vector<1x64xf32> to vector<8x64xf32>
    %120 = arith.addf %117, %119 : vector<8x64xf32>
    %cst_110 = arith.constant 0.000000e+00 : f32
    %121 = vector.broadcast %cst_110 : f32 to vector<8x64xf32>
    %122 = arith.maximumf %120, %121 : vector<8x64xf32>
    %c0_111 = arith.constant 0 : index
    %c0_112 = arith.constant 0 : index
    %123 = vector.load %arg11[%c0_111, %c0_112] : memref<64x128xf32, #tpu.memory_space<vmem>>, vector<64x128xf32>
    %cst_113 = arith.constant dense<0.000000e+00> : vector<8x128xf32>
    %124 = tpu.matmul %122, %123, %cst_113 {dimension_numbers = #tpu.dot_dimension_numbers<[1], [0], [0], [1], [0, 0, 1, 1], [], []>} : vector<8x64xf32>, vector<64x128xf32>, vector<8x128xf32> -> vector<8x128xf32>
    %c0_114 = arith.constant 0 : index
    %c0_115 = arith.constant 0 : index
    %125 = vector.load %arg12[%c0_114, %c0_115] : memref<1x128xf32, #tpu.memory_space<vmem>>, vector<1x128xf32>
    %126 = vector.broadcast %125 : vector<1x128xf32> to vector<8x128xf32>
    %127 = arith.addf %124, %126 : vector<8x128xf32>
    %cst_116 = arith.constant 0.000000e+00 : f32
    %128 = vector.broadcast %cst_116 : f32 to vector<8x128xf32>
    %129 = arith.maximumf %127, %128 : vector<8x128xf32>
    %c0_117 = arith.constant 0 : index
    %c128_118 = arith.constant 128 : index
    %130 = vector.load %arg13[%c0_117, %c128_118] : memref<8x256xf32, #tpu.memory_space<vmem>>, vector<8x128xf32>
    tpu.vector_store %arg13[%c0_117, %c128_118], %129 {strides = array<i32>} : memref<8x256xf32, #tpu.memory_space<vmem>>, vector<8x128xf32>,
    return
  }
  func.func @transform_0(%arg0: i32) -> (i32, i32) {
    %c0_i32 = arith.constant 0 : i32
    %c0_i32_0 = arith.constant 0 : i32
    return %arg0, %c0_i32 : i32, i32
  }
  func.func @transform_1(%arg0: i32) -> (i32, i32) {
    %c0_i32 = arith.constant 0 : i32
    %c0_i32_0 = arith.constant 0 : i32
    return %arg0, %c0_i32 : i32, i32
  }
  func.func @transform_2(%arg0: i32) -> (i32, i32) {
    %c0_i32 = arith.constant 0 : i32
    %c0_i32_0 = arith.constant 0 : i32
    %c0_i32_1 = arith.constant 0 : i32
    return %c0_i32, %c0_i32_0 : i32, i32
  }
  func.func @transform_3(%arg0: i32) -> (i32, i32) {
    %c0_i32 = arith.constant 0 : i32
    %c0_i32_0 = arith.constant 0 : i32
    %c0_i32_1 = arith.constant 0 : i32
    return %c0_i32, %c0_i32_0 : i32, i32
  }
  func.func @transform_4(%arg0: i32) -> (i32, i32) {
    %c0_i32 = arith.constant 0 : i32
    %c0_i32_0 = arith.constant 0 : i32
    %c0_i32_1 = arith.constant 0 : i32
    return %c0_i32, %c0_i32_0 : i32, i32
  }
  func.func @transform_5(%arg0: i32) -> (i32, i32) {
    %c0_i32 = arith.constant 0 : i32
    %c0_i32_0 = arith.constant 0 : i32
    %c0_i32_1 = arith.constant 0 : i32
    return %c0_i32, %c0_i32_0 : i32, i32
  }
  func.func @transform_6(%arg0: i32) -> (i32, i32) {
    %c0_i32 = arith.constant 0 : i32
    %c0_i32_0 = arith.constant 0 : i32
    %c0_i32_1 = arith.constant 0 : i32
    return %c0_i32, %c0_i32_0 : i32, i32
  }
  func.func @transform_7(%arg0: i32) -> (i32, i32) {
    %c0_i32 = arith.constant 0 : i32
    %c0_i32_0 = arith.constant 0 : i32
    %c0_i32_1 = arith.constant 0 : i32
    return %c0_i32, %c0_i32_0 : i32, i32
  }
  func.func @transform_8(%arg0: i32) -> (i32, i32) {
    %c0_i32 = arith.constant 0 : i32
    %c0_i32_0 = arith.constant 0 : i32
    %c0_i32_1 = arith.constant 0 : i32
    return %c0_i32, %c0_i32_0 : i32, i32
  }
  func.func @transform_9(%arg0: i32) -> (i32, i32) {
    %c0_i32 = arith.constant 0 : i32
    %c0_i32_0 = arith.constant 0 : i32
    %c0_i32_1 = arith.constant 0 : i32
    return %c0_i32, %c0_i32_0 : i32, i32
  }
  func.func @transform_10(%arg0: i32) -> (i32, i32) {
    %c0_i32 = arith.constant 0 : i32
    %c0_i32_0 = arith.constant 0 : i32
    %c0_i32_1 = arith.constant 0 : i32
    return %c0_i32, %c0_i32_0 : i32, i32
  }
  func.func @transform_11(%arg0: i32) -> (i32, i32) {
    %c0_i32 = arith.constant 0 : i32
    %c0_i32_0 = arith.constant 0 : i32
    %c0_i32_1 = arith.constant 0 : i32
    return %c0_i32, %c0_i32_0 : i32, i32
  }
  func.func @transform_12(%arg0: i32) -> (i32, i32) {
    %c0_i32 = arith.constant 0 : i32
    %c0_i32_0 = arith.constant 0 : i32
    return %arg0, %c0_i32 : i32, i32
  }
}

module attributes {stable_mosaic.version = 11 : i64} {
  func.func @_fused_forward_kernel(%arg0: i32, %arg1: memref<8x3072xf32, #tpu.memory_space<vmem>>, %arg2: memref<8x8xf32, #tpu.memory_space<vmem>>, %arg3: memref<768x64xf32, #tpu.memory_space<vmem>>, %arg4: memref<1x64xf32, #tpu.memory_space<vmem>>, %arg5: memref<384x64xf32, #tpu.memory_space<vmem>>, %arg6: memref<1x64xf32, #tpu.memory_space<vmem>>, %arg7: memref<256x64xf32, #tpu.memory_space<vmem>>, %arg8: memref<1x64xf32, #tpu.memory_space<vmem>>, %arg9: memref<8x64xf32, #tpu.memory_space<vmem>>, %arg10: memref<1x64xf32, #tpu.memory_space<vmem>>, %arg11: memref<64x128xf32, #tpu.memory_space<vmem>>, %arg12: memref<1x128xf32, #tpu.memory_space<vmem>>, %arg13: memref<8x256xf32, #tpu.memory_space<vmem>>, %arg14: memref<8x512xf32, #tpu.memory_space<vmem>>, %arg15: memref<8x256xf32, #tpu.memory_space<vmem>>) attributes {dimension_semantics = [#tpu.dimension_semantics<parallel>], iteration_bounds = array<i64: 1>, scalar_prefetch = 0 : i64, scratch_operands = 2 : i64, tpu.core_type = #tpu.core_type<tc>, window_params = [{transform_indices = @transform_0, window_bounds = array<i64: 8, 3072>}, {transform_indices = @transform_1, window_bounds = array<i64: 8, 8>}, {pipeline_mode = #tpu.pipeline_mode<synchronous>, transform_indices = @transform_2, window_bounds = array<i64: 768, 64>}, {pipeline_mode = #tpu.pipeline_mode<synchronous>, transform_indices = @transform_3, window_bounds = array<i64: 1, 64>}, {pipeline_mode = #tpu.pipeline_mode<synchronous>, transform_indices = @transform_4, window_bounds = array<i64: 384, 64>}, {pipeline_mode = #tpu.pipeline_mode<synchronous>, transform_indices = @transform_5, window_bounds = array<i64: 1, 64>}, {pipeline_mode = #tpu.pipeline_mode<synchronous>, transform_indices = @transform_6, window_bounds = array<i64: 256, 64>}, {pipeline_mode = #tpu.pipeline_mode<synchronous>, transform_indices = @transform_7, window_bounds = array<i64: 1, 64>}, {pipeline_mode = #tpu.pipeline_mode<synchronous>, transform_indices = @transform_8, window_bounds = array<i64: 8, 64>}, {pipeline_mode = #tpu.pipeline_mode<synchronous>, transform_indices = @transform_9, window_bounds = array<i64: 1, 64>}, {pipeline_mode = #tpu.pipeline_mode<synchronous>, transform_indices = @transform_10, window_bounds = array<i64: 64, 128>}, {pipeline_mode = #tpu.pipeline_mode<synchronous>, transform_indices = @transform_11, window_bounds = array<i64: 1, 128>}, {transform_indices = @transform_12, window_bounds = array<i64: 8, 256>}]} {
    %c0 = arith.constant 0 : index
    %c0_0 = arith.constant 0 : index
    %0 = vector.load %arg4[%c0, %c0_0] : memref<1x64xf32, #tpu.memory_space<vmem>>, vector<1x64xf32>
    %c0_1 = arith.constant 0 : index
    %c0_2 = arith.constant 0 : index
    %1 = vector.load %arg1[%c0_1, %c0_2] : memref<8x3072xf32, #tpu.memory_space<vmem>>, vector<8x576xf32>
    %c192 = arith.constant 192 : index
    %c0_3 = arith.constant 0 : index
    %2 = vector.load %arg3[%c192, %c0_3] : memref<768x64xf32, #tpu.memory_space<vmem>>, vector<576x64xf32>
    %cst = arith.constant dense<0.000000e+00> : vector<8x64xf32>
    %3 = tpu.matmul %1, %2, %cst {dimension_numbers = #tpu.dot_dimension_numbers<[1], [0], [0], [1], [0, 0, 1, 1], [], []>} : vector<8x576xf32>, vector<576x64xf32>, vector<8x64xf32> -> vector<8x64xf32>
    %4 = vector.broadcast %0 : vector<1x64xf32> to vector<8x64xf32>
    %5 = arith.addf %3, %4 : vector<8x64xf32>
    %cst_4 = arith.constant 0.000000e+00 : f32
    %6 = vector.broadcast %cst_4 : f32 to vector<8x64xf32>
    %7 = arith.maximumf %5, %6 : vector<8x64xf32>
    %c0_5 = arith.constant 0 : index
    %c0_6 = arith.constant 0 : index
    %8 = vector.load %arg14[%c0_5, %c0_6] : memref<8x512xf32, #tpu.memory_space<vmem>>, vector<8x64xf32>
    tpu.vector_store %arg14[%c0_5, %c0_6], %7 {strides = array<i32>} : memref<8x512xf32, #tpu.memory_space<vmem>>, vector<8x64xf32>,
    %c0_7 = arith.constant 0 : index
    %c192_8 = arith.constant 192 : index
    %9 = vector.load %arg1[%c0_7, %c192_8] : memref<8x3072xf32, #tpu.memory_space<vmem>>, vector<8x768xf32>
    %c0_9 = arith.constant 0 : index
    %c0_10 = arith.constant 0 : index
    %10 = vector.load %arg3[%c0_9, %c0_10] : memref<768x64xf32, #tpu.memory_space<vmem>>, vector<768x64xf32>
    %cst_11 = arith.constant dense<0.000000e+00> : vector<8x64xf32>
    %11 = tpu.matmul %9, %10, %cst_11 {dimension_numbers = #tpu.dot_dimension_numbers<[1], [0], [0], [1], [0, 0, 1, 1], [], []>} : vector<8x768xf32>, vector<768x64xf32>, vector<8x64xf32> -> vector<8x64xf32>
    %12 = vector.broadcast %0 : vector<1x64xf32> to vector<8x64xf32>
    %13 = arith.addf %11, %12 : vector<8x64xf32>
    %cst_12 = arith.constant 0.000000e+00 : f32
    %14 = vector.broadcast %cst_12 : f32 to vector<8x64xf32>
    %15 = arith.maximumf %13, %14 : vector<8x64xf32>
    %c0_13 = arith.constant 0 : index
    %c64 = arith.constant 64 : index
    %16 = vector.load %arg14[%c0_13, %c64] : memref<8x512xf32, #tpu.memory_space<vmem>>, vector<8x64xf32>
    tpu.vector_store %arg14[%c0_13, %c64], %15 {strides = array<i32>} : memref<8x512xf32, #tpu.memory_space<vmem>>, vector<8x64xf32>,
    %c0_14 = arith.constant 0 : index
    %c576 = arith.constant 576 : index
    %17 = vector.load %arg1[%c0_14, %c576] : memref<8x3072xf32, #tpu.memory_space<vmem>>, vector<8x768xf32>
    %c0_15 = arith.constant 0 : index
    %c0_16 = arith.constant 0 : index
    %18 = vector.load %arg3[%c0_15, %c0_16] : memref<768x64xf32, #tpu.memory_space<vmem>>, vector<768x64xf32>
    %cst_17 = arith.constant dense<0.000000e+00> : vector<8x64xf32>
    %19 = tpu.matmul %17, %18, %cst_17 {dimension_numbers = #tpu.dot_dimension_numbers<[1], [0], [0], [1], [0, 0, 1, 1], [], []>} : vector<8x768xf32>, vector<768x64xf32>, vector<8x64xf32> -> vector<8x64xf32>
    %20 = vector.broadcast %0 : vector<1x64xf32> to vector<8x64xf32>
    %21 = arith.addf %19, %20 : vector<8x64xf32>
    %cst_18 = arith.constant 0.000000e+00 : f32
    %22 = vector.broadcast %cst_18 : f32 to vector<8x64xf32>
    %23 = arith.maximumf %21, %22 : vector<8x64xf32>
    %c0_19 = arith.constant 0 : index
    %c128 = arith.constant 128 : index
    %24 = vector.load %arg14[%c0_19, %c128] : memref<8x512xf32, #tpu.memory_space<vmem>>, vector<8x64xf32>
    tpu.vector_store %arg14[%c0_19, %c128], %23 {strides = array<i32>} : memref<8x512xf32, #tpu.memory_space<vmem>>, vector<8x64xf32>,
    %c0_20 = arith.constant 0 : index
    %c960 = arith.constant 960 : index
    %25 = vector.load %arg1[%c0_20, %c960] : memref<8x3072xf32, #tpu.memory_space<vmem>>, vector<8x768xf32>
    %c0_21 = arith.constant 0 : index
    %c0_22 = arith.constant 0 : index
    %26 = vector.load %arg3[%c0_21, %c0_22] : memref<768x64xf32, #tpu.memory_space<vmem>>, vector<768x64xf32>
    %cst_23 = arith.constant dense<0.000000e+00> : vector<8x64xf32>
    %27 = tpu.matmul %25, %26, %cst_23 {dimension_numbers = #tpu.dot_dimension_numbers<[1], [0], [0], [1], [0, 0, 1, 1], [], []>} : vector<8x768xf32>, vector<768x64xf32>, vector<8x64xf32> -> vector<8x64xf32>
    %28 = vector.broadcast %0 : vector<1x64xf32> to vector<8x64xf32>
    %29 = arith.addf %27, %28 : vector<8x64xf32>
    %cst_24 = arith.constant 0.000000e+00 : f32
    %30 = vector.broadcast %cst_24 : f32 to vector<8x64xf32>
    %31 = arith.maximumf %29, %30 : vector<8x64xf32>
    %c0_25 = arith.constant 0 : index
    %c192_26 = arith.constant 192 : index
    %32 = vector.load %arg14[%c0_25, %c192_26] : memref<8x512xf32, #tpu.memory_space<vmem>>, vector<8x64xf32>
    tpu.vector_store %arg14[%c0_25, %c192_26], %31 {strides = array<i32>} : memref<8x512xf32, #tpu.memory_space<vmem>>, vector<8x64xf32>,
    %c0_27 = arith.constant 0 : index
    %c1344 = arith.constant 1344 : index
    %33 = vector.load %arg1[%c0_27, %c1344] : memref<8x3072xf32, #tpu.memory_space<vmem>>, vector<8x768xf32>
    %c0_28 = arith.constant 0 : index
    %c0_29 = arith.constant 0 : index
    %34 = vector.load %arg3[%c0_28, %c0_29] : memref<768x64xf32, #tpu.memory_space<vmem>>, vector<768x64xf32>
    %cst_30 = arith.constant dense<0.000000e+00> : vector<8x64xf32>
    %35 = tpu.matmul %33, %34, %cst_30 {dimension_numbers = #tpu.dot_dimension_numbers<[1], [0], [0], [1], [0, 0, 1, 1], [], []>} : vector<8x768xf32>, vector<768x64xf32>, vector<8x64xf32> -> vector<8x64xf32>
    %36 = vector.broadcast %0 : vector<1x64xf32> to vector<8x64xf32>
    %37 = arith.addf %35, %36 : vector<8x64xf32>
    %cst_31 = arith.constant 0.000000e+00 : f32
    %38 = vector.broadcast %cst_31 : f32 to vector<8x64xf32>
    %39 = arith.maximumf %37, %38 : vector<8x64xf32>
    %c0_32 = arith.constant 0 : index
    %c256 = arith.constant 256 : index
    %40 = vector.load %arg14[%c0_32, %c256] : memref<8x512xf32, #tpu.memory_space<vmem>>, vector<8x64xf32>
    tpu.vector_store %arg14[%c0_32, %c256], %39 {strides = array<i32>} : memref<8x512xf32, #tpu.memory_space<vmem>>, vector<8x64xf32>,
    %c0_33 = arith.constant 0 : index
    %c1728 = arith.constant 1728 : index
    %41 = vector.load %arg1[%c0_33, %c1728] : memref<8x3072xf32, #tpu.memory_space<vmem>>, vector<8x768xf32>
    %c0_34 = arith.constant 0 : index
    %c0_35 = arith.constant 0 : index
    %42 = vector.load %arg3[%c0_34, %c0_35] : memref<768x64xf32, #tpu.memory_space<vmem>>, vector<768x64xf32>
    %cst_36 = arith.constant dense<0.000000e+00> : vector<8x64xf32>
    %43 = tpu.matmul %41, %42, %cst_36 {dimension_numbers = #tpu.dot_dimension_numbers<[1], [0], [0], [1], [0, 0, 1, 1], [], []>} : vector<8x768xf32>, vector<768x64xf32>, vector<8x64xf32> -> vector<8x64xf32>
    %44 = vector.broadcast %0 : vector<1x64xf32> to vector<8x64xf32>
    %45 = arith.addf %43, %44 : vector<8x64xf32>
    %cst_37 = arith.constant 0.000000e+00 : f32
    %46 = vector.broadcast %cst_37 : f32 to vector<8x64xf32>
    %47 = arith.maximumf %45, %46 : vector<8x64xf32>
    %c0_38 = arith.constant 0 : index
    %c320 = arith.constant 320 : index
    %48 = vector.load %arg14[%c0_38, %c320] : memref<8x512xf32, #tpu.memory_space<vmem>>, vector<8x64xf32>
    tpu.vector_store %arg14[%c0_38, %c320], %47 {strides = array<i32>} : memref<8x512xf32, #tpu.memory_space<vmem>>, vector<8x64xf32>,
    %c0_39 = arith.constant 0 : index
    %c2112 = arith.constant 2112 : index
    %49 = vector.load %arg1[%c0_39, %c2112] : memref<8x3072xf32, #tpu.memory_space<vmem>>, vector<8x768xf32>
    %c0_40 = arith.constant 0 : index
    %c0_41 = arith.constant 0 : index
    %50 = vector.load %arg3[%c0_40, %c0_41] : memref<768x64xf32, #tpu.memory_space<vmem>>, vector<768x64xf32>
    %cst_42 = arith.constant dense<0.000000e+00> : vector<8x64xf32>
    %51 = tpu.matmul %49, %50, %cst_42 {dimension_numbers = #tpu.dot_dimension_numbers<[1], [0], [0], [1], [0, 0, 1, 1], [], []>} : vector<8x768xf32>, vector<768x64xf32>, vector<8x64xf32> -> vector<8x64xf32>
    %52 = vector.broadcast %0 : vector<1x64xf32> to vector<8x64xf32>
    %53 = arith.addf %51, %52 : vector<8x64xf32>
    %cst_43 = arith.constant 0.000000e+00 : f32
    %54 = vector.broadcast %cst_43 : f32 to vector<8x64xf32>
    %55 = arith.maximumf %53, %54 : vector<8x64xf32>
    %c0_44 = arith.constant 0 : index
    %c384 = arith.constant 384 : index
    %56 = vector.load %arg14[%c0_44, %c384] : memref<8x512xf32, #tpu.memory_space<vmem>>, vector<8x64xf32>
    tpu.vector_store %arg14[%c0_44, %c384], %55 {strides = array<i32>} : memref<8x512xf32, #tpu.memory_space<vmem>>, vector<8x64xf32>,
    %c0_45 = arith.constant 0 : index
    %c2496 = arith.constant 2496 : index
    %57 = vector.load %arg1[%c0_45, %c2496] : memref<8x3072xf32, #tpu.memory_space<vmem>>, vector<8x576xf32>
    %c0_46 = arith.constant 0 : index
    %c0_47 = arith.constant 0 : index
    %58 = vector.load %arg3[%c0_46, %c0_47] : memref<768x64xf32, #tpu.memory_space<vmem>>, vector<576x64xf32>
    %cst_48 = arith.constant dense<0.000000e+00> : vector<8x64xf32>
    %59 = tpu.matmul %57, %58, %cst_48 {dimension_numbers = #tpu.dot_dimension_numbers<[1], [0], [0], [1], [0, 0, 1, 1], [], []>} : vector<8x576xf32>, vector<576x64xf32>, vector<8x64xf32> -> vector<8x64xf32>
    %60 = vector.broadcast %0 : vector<1x64xf32> to vector<8x64xf32>
    %61 = arith.addf %59, %60 : vector<8x64xf32>
    %cst_49 = arith.constant 0.000000e+00 : f32
    %62 = vector.broadcast %cst_49 : f32 to vector<8x64xf32>
    %63 = arith.maximumf %61, %62 : vector<8x64xf32>
    %c0_50 = arith.constant 0 : index
    %c448 = arith.constant 448 : index
    %64 = vector.load %arg14[%c0_50, %c448] : memref<8x512xf32, #tpu.memory_space<vmem>>, vector<8x64xf32>
    tpu.vector_store %arg14[%c0_50, %c448], %63 {strides = array<i32>} : memref<8x512xf32, #tpu.memory_space<vmem>>, vector<8x64xf32>,
    %c0_51 = arith.constant 0 : index
    %c0_52 = arith.constant 0 : index
    %65 = vector.load %arg6[%c0_51, %c0_52] : memref<1x64xf32, #tpu.memory_space<vmem>>, vector<1x64xf32>
    %c0_53 = arith.constant 0 : index
    %c0_54 = arith.constant 0 : index
    %66 = vector.load %arg14[%c0_53, %c0_54] : memref<8x512xf32, #tpu.memory_space<vmem>>, vector<8x256xf32>
    %c128_55 = arith.constant 128 : index
    %c0_56 = arith.constant 0 : index
    %67 = vector.load %arg5[%c128_55, %c0_56] : memref<384x64xf32, #tpu.memory_space<vmem>>, vector<256x64xf32>
    %cst_57 = arith.constant dense<0.000000e+00> : vector<8x64xf32>
    %68 = tpu.matmul %66, %67, %cst_57 {dimension_numbers = #tpu.dot_dimension_numbers<[1], [0], [0], [1], [0, 0, 1, 1], [], []>} : vector<8x256xf32>, vector<256x64xf32>, vector<8x64xf32> -> vector<8x64xf32>
    %69 = vector.broadcast %65 : vector<1x64xf32> to vector<8x64xf32>
    %70 = arith.addf %68, %69 : vector<8x64xf32>
    %cst_58 = arith.constant 0.000000e+00 : f32
    %71 = vector.broadcast %cst_58 : f32 to vector<8x64xf32>
    %72 = arith.maximumf %70, %71 : vector<8x64xf32>
    %c0_59 = arith.constant 0 : index
    %c0_60 = arith.constant 0 : index
    %73 = vector.load %arg15[%c0_59, %c0_60] : memref<8x256xf32, #tpu.memory_space<vmem>>, vector<8x64xf32>
    tpu.vector_store %arg15[%c0_59, %c0_60], %72 {strides = array<i32>} : memref<8x256xf32, #tpu.memory_space<vmem>>, vector<8x64xf32>,
    %c0_61 = arith.constant 0 : index
    %c0_62 = arith.constant 0 : index
    %74 = vector.load %arg14[%c0_61, %c0_62] : memref<8x512xf32, #tpu.memory_space<vmem>>, vector<8x384xf32>
    %c0_63 = arith.constant 0 : index
    %c0_64 = arith.constant 0 : index
    %75 = vector.load %arg5[%c0_63, %c0_64] : memref<384x64xf32, #tpu.memory_space<vmem>>, vector<384x64xf32>
    %cst_65 = arith.constant dense<0.000000e+00> : vector<8x64xf32>
    %76 = tpu.matmul %74, %75, %cst_65 {dimension_numbers = #tpu.dot_dimension_numbers<[1], [0], [0], [1], [0, 0, 1, 1], [], []>} : vector<8x384xf32>, vector<384x64xf32>, vector<8x64xf32> -> vector<8x64xf32>
    %77 = vector.broadcast %65 : vector<1x64xf32> to vector<8x64xf32>
    %78 = arith.addf %76, %77 : vector<8x64xf32>
    %cst_66 = arith.constant 0.000000e+00 : f32
    %79 = vector.broadcast %cst_66 : f32 to vector<8x64xf32>
    %80 = arith.maximumf %78, %79 : vector<8x64xf32>
    %c0_67 = arith.constant 0 : index
    %c64_68 = arith.constant 64 : index
    %81 = vector.load %arg15[%c0_67, %c64_68] : memref<8x256xf32, #tpu.memory_space<vmem>>, vector<8x64xf32>
    tpu.vector_store %arg15[%c0_67, %c64_68], %80 {strides = array<i32>} : memref<8x256xf32, #tpu.memory_space<vmem>>, vector<8x64xf32>,
    %c0_69 = arith.constant 0 : index
    %c128_70 = arith.constant 128 : index
    %82 = vector.load %arg14[%c0_69, %c128_70] : memref<8x512xf32, #tpu.memory_space<vmem>>, vector<8x384xf32>
    %c0_71 = arith.constant 0 : index
    %c0_72 = arith.constant 0 : index
    %83 = vector.load %arg5[%c0_71, %c0_72] : memref<384x64xf32, #tpu.memory_space<vmem>>, vector<384x64xf32>
    %cst_73 = arith.constant dense<0.000000e+00> : vector<8x64xf32>
    %84 = tpu.matmul %82, %83, %cst_73 {dimension_numbers = #tpu.dot_dimension_numbers<[1], [0], [0], [1], [0, 0, 1, 1], [], []>} : vector<8x384xf32>, vector<384x64xf32>, vector<8x64xf32> -> vector<8x64xf32>
    %85 = vector.broadcast %65 : vector<1x64xf32> to vector<8x64xf32>
    %86 = arith.addf %84, %85 : vector<8x64xf32>
    %cst_74 = arith.constant 0.000000e+00 : f32
    %87 = vector.broadcast %cst_74 : f32 to vector<8x64xf32>
    %88 = arith.maximumf %86, %87 : vector<8x64xf32>
    %c0_75 = arith.constant 0 : index
    %c128_76 = arith.constant 128 : index
    %89 = vector.load %arg15[%c0_75, %c128_76] : memref<8x256xf32, #tpu.memory_space<vmem>>, vector<8x64xf32>
    tpu.vector_store %arg15[%c0_75, %c128_76], %88 {strides = array<i32>} : memref<8x256xf32, #tpu.memory_space<vmem>>, vector<8x64xf32>,
    %c0_77 = arith.constant 0 : index
    %c256_78 = arith.constant 256 : index
    %90 = vector.load %arg14[%c0_77, %c256_78] : memref<8x512xf32, #tpu.memory_space<vmem>>, vector<8x256xf32>
    %c0_79 = arith.constant 0 : index
    %c0_80 = arith.constant 0 : index
    %91 = vector.load %arg5[%c0_79, %c0_80] : memref<384x64xf32, #tpu.memory_space<vmem>>, vector<256x64xf32>
    %cst_81 = arith.constant dense<0.000000e+00> : vector<8x64xf32>
    %92 = tpu.matmul %90, %91, %cst_81 {dimension_numbers = #tpu.dot_dimension_numbers<[1], [0], [0], [1], [0, 0, 1, 1], [], []>} : vector<8x256xf32>, vector<256x64xf32>, vector<8x64xf32> -> vector<8x64xf32>
    %93 = vector.broadcast %65 : vector<1x64xf32> to vector<8x64xf32>
    %94 = arith.addf %92, %93 : vector<8x64xf32>
    %cst_82 = arith.constant 0.000000e+00 : f32
    %95 = vector.broadcast %cst_82 : f32 to vector<8x64xf32>
    %96 = arith.maximumf %94, %95 : vector<8x64xf32>
    %c0_83 = arith.constant 0 : index
    %c192_84 = arith.constant 192 : index
    %97 = vector.load %arg15[%c0_83, %c192_84] : memref<8x256xf32, #tpu.memory_space<vmem>>, vector<8x64xf32>
    tpu.vector_store %arg15[%c0_83, %c192_84], %96 {strides = array<i32>} : memref<8x256xf32, #tpu.memory_space<vmem>>, vector<8x64xf32>,
    %c0_85 = arith.constant 0 : index
    %c0_86 = arith.constant 0 : index
    %98 = vector.load %arg8[%c0_85, %c0_86] : memref<1x64xf32, #tpu.memory_space<vmem>>, vector<1x64xf32>
    %c0_87 = arith.constant 0 : index
    %c0_88 = arith.constant 0 : index
    %99 = vector.load %arg15[%c0_87, %c0_88] : memref<8x256xf32, #tpu.memory_space<vmem>>, vector<8x192xf32>
    %c64_89 = arith.constant 64 : index
    %c0_90 = arith.constant 0 : index
    %100 = vector.load %arg7[%c64_89, %c0_90] : memref<256x64xf32, #tpu.memory_space<vmem>>, vector<192x64xf32>
    %cst_91 = arith.constant dense<0.000000e+00> : vector<8x64xf32>
    %101 = tpu.matmul %99, %100, %cst_91 {dimension_numbers = #tpu.dot_dimension_numbers<[1], [0], [0], [1], [0, 0, 1, 1], [], []>} : vector<8x192xf32>, vector<192x64xf32>, vector<8x64xf32> -> vector<8x64xf32>
    %102 = vector.broadcast %98 : vector<1x64xf32> to vector<8x64xf32>
    %103 = arith.addf %101, %102 : vector<8x64xf32>
    %cst_92 = arith.constant 0.000000e+00 : f32
    %104 = vector.broadcast %cst_92 : f32 to vector<8x64xf32>
    %105 = arith.maximumf %103, %104 : vector<8x64xf32>
    %c0_93 = arith.constant 0 : index
    %c0_94 = arith.constant 0 : index
    %106 = vector.load %arg13[%c0_93, %c0_94] : memref<8x256xf32, #tpu.memory_space<vmem>>, vector<8x64xf32>
    tpu.vector_store %arg13[%c0_93, %c0_94], %105 {strides = array<i32>} : memref<8x256xf32, #tpu.memory_space<vmem>>, vector<8x64xf32>,
    %c0_95 = arith.constant 0 : index
    %c64_96 = arith.constant 64 : index
    %107 = vector.load %arg15[%c0_95, %c64_96] : memref<8x256xf32, #tpu.memory_space<vmem>>, vector<8x192xf32>
    %c0_97 = arith.constant 0 : index
    %c0_98 = arith.constant 0 : index
    %108 = vector.load %arg7[%c0_97, %c0_98] : memref<256x64xf32, #tpu.memory_space<vmem>>, vector<192x64xf32>
    %cst_99 = arith.constant dense<0.000000e+00> : vector<8x64xf32>
    %109 = tpu.matmul %107, %108, %cst_99 {dimension_numbers = #tpu.dot_dimension_numbers<[1], [0], [0], [1], [0, 0, 1, 1], [], []>} : vector<8x192xf32>, vector<192x64xf32>, vector<8x64xf32> -> vector<8x64xf32>
    %110 = vector.broadcast %98 : vector<1x64xf32> to vector<8x64xf32>
    %111 = arith.addf %109, %110 : vector<8x64xf32>
    %cst_100 = arith.constant 0.000000e+00 : f32
    %112 = vector.broadcast %cst_100 : f32 to vector<8x64xf32>
    %113 = arith.maximumf %111, %112 : vector<8x64xf32>
    %c0_101 = arith.constant 0 : index
    %c64_102 = arith.constant 64 : index
    %114 = vector.load %arg13[%c0_101, %c64_102] : memref<8x256xf32, #tpu.memory_space<vmem>>, vector<8x64xf32>
    tpu.vector_store %arg13[%c0_101, %c64_102], %113 {strides = array<i32>} : memref<8x256xf32, #tpu.memory_space<vmem>>, vector<8x64xf32>,
    %c0_103 = arith.constant 0 : index
    %c0_104 = arith.constant 0 : index
    %115 = vector.load %arg2[%c0_103, %c0_104] : memref<8x8xf32, #tpu.memory_space<vmem>>, vector<8x8xf32>
    %c0_105 = arith.constant 0 : index
    %c0_106 = arith.constant 0 : index
    %116 = vector.load %arg9[%c0_105, %c0_106] : memref<8x64xf32, #tpu.memory_space<vmem>>, vector<8x64xf32>
    %cst_107 = arith.constant dense<0.000000e+00> : vector<8x64xf32>
    %117 = tpu.matmul %115, %116, %cst_107 {dimension_numbers = #tpu.dot_dimension_numbers<[1], [0], [0], [1], [0, 0, 1, 1], [], []>} : vector<8x8xf32>, vector<8x64xf32>, vector<8x64xf32> -> vector<8x64xf32>
    %c0_108 = arith.constant 0 : index
    %c0_109 = arith.constant 0 : index
    %118 = vector.load %arg10[%c0_108, %c0_109] : memref<1x64xf32, #tpu.memory_space<vmem>>, vector<1x64xf32>
    %119 = vector.broadcast %118 : vector<1x64xf32> to vector<8x64xf32>
    %120 = arith.addf %117, %119 : vector<8x64xf32>
    %cst_110 = arith.constant 0.000000e+00 : f32
    %121 = vector.broadcast %cst_110 : f32 to vector<8x64xf32>
    %122 = arith.maximumf %120, %121 : vector<8x64xf32>
    %c0_111 = arith.constant 0 : index
    %c0_112 = arith.constant 0 : index
    %123 = vector.load %arg11[%c0_111, %c0_112] : memref<64x128xf32, #tpu.memory_space<vmem>>, vector<64x128xf32>
    %cst_113 = arith.constant dense<0.000000e+00> : vector<8x128xf32>
    %124 = tpu.matmul %122, %123, %cst_113 {dimension_numbers = #tpu.dot_dimension_numbers<[1], [0], [0], [1], [0, 0, 1, 1], [], []>} : vector<8x64xf32>, vector<64x128xf32>, vector<8x128xf32> -> vector<8x128xf32>
    %c0_114 = arith.constant 0 : index
    %c0_115 = arith.constant 0 : index
    %125 = vector.load %arg12[%c0_114, %c0_115] : memref<1x128xf32, #tpu.memory_space<vmem>>, vector<1x128xf32>
    %126 = vector.broadcast %125 : vector<1x128xf32> to vector<8x128xf32>
    %127 = arith.addf %124, %126 : vector<8x128xf32>
    %cst_116 = arith.constant 0.000000e+00 : f32
    %128 = vector.broadcast %cst_116 : f32 to vector<8x128xf32>
    %129 = arith.maximumf %127, %128 : vector<8x128xf32>
    %c0_117 = arith.constant 0 : index
    %c128_118 = arith.constant 128 : index
    %130 = vector.load %arg13[%c0_117, %c128_118] : memref<8x256xf32, #tpu.memory_space<vmem>>, vector<8x128xf32>
    tpu.vector_store %arg13[%c0_117, %c128_118], %129 {strides = array<i32>} : memref<8x256xf32, #tpu.memory_space<vmem>>, vector<8x128xf32>,
    return
  }
  func.func @transform_0(%arg0: i32) -> (i32, i32) {
    %c0_i32 = arith.constant 0 : i32
    %c0_i32_0 = arith.constant 0 : i32
    return %arg0, %c0_i32 : i32, i32
  }
  func.func @transform_1(%arg0: i32) -> (i32, i32) {
    %c0_i32 = arith.constant 0 : i32
    %c0_i32_0 = arith.constant 0 : i32
    return %arg0, %c0_i32 : i32, i32
  }
  func.func @transform_2(%arg0: i32) -> (i32, i32) {
    %c0_i32 = arith.constant 0 : i32
    %c0_i32_0 = arith.constant 0 : i32
    %c0_i32_1 = arith.constant 0 : i32
    return %c0_i32, %c0_i32_0 : i32, i32
  }
  func.func @transform_3(%arg0: i32) -> (i32, i32) {
    %c0_i32 = arith.constant 0 : i32
    %c0_i32_0 = arith.constant 0 : i32
    %c0_i32_1 = arith.constant 0 : i32
    return %c0_i32, %c0_i32_0 : i32, i32
  }
  func.func @transform_4(%arg0: i32) -> (i32, i32) {
    %c0_i32 = arith.constant 0 : i32
    %c0_i32_0 = arith.constant 0 : i32
    %c0_i32_1 = arith.constant 0 : i32
    return %c0_i32, %c0_i32_0 : i32, i32
  }
  func.func @transform_5(%arg0: i32) -> (i32, i32) {
    %c0_i32 = arith.constant 0 : i32
    %c0_i32_0 = arith.constant 0 : i32
    %c0_i32_1 = arith.constant 0 : i32
    return %c0_i32, %c0_i32_0 : i32, i32
  }
  func.func @transform_6(%arg0: i32) -> (i32, i32) {
    %c0_i32 = arith.constant 0 : i32
    %c0_i32_0 = arith.constant 0 : i32
    %c0_i32_1 = arith.constant 0 : i32
    return %c0_i32, %c0_i32_0 : i32, i32
  }
  func.func @transform_7(%arg0: i32) -> (i32, i32) {
    %c0_i32 = arith.constant 0 : i32
    %c0_i32_0 = arith.constant 0 : i32
    %c0_i32_1 = arith.constant 0 : i32
    return %c0_i32, %c0_i32_0 : i32, i32
  }
  func.func @transform_8(%arg0: i32) -> (i32, i32) {
    %c0_i32 = arith.constant 0 : i32
    %c0_i32_0 = arith.constant 0 : i32
    %c0_i32_1 = arith.constant 0 : i32
    return %c0_i32, %c0_i32_0 : i32, i32
  }
  func.func @transform_9(%arg0: i32) -> (i32, i32) {
    %c0_i32 = arith.constant 0 : i32
    %c0_i32_0 = arith.constant 0 : i32
    %c0_i32_1 = arith.constant 0 : i32
    return %c0_i32, %c0_i32_0 : i32, i32
  }
  func.func @transform_10(%arg0: i32) -> (i32, i32) {
    %c0_i32 = arith.constant 0 : i32
    %c0_i32_0 = arith.constant 0 : i32
    %c0_i32_1 = arith.constant 0 : i32
    return %c0_i32, %c0_i32_0 : i32, i32
  }
  func.func @transform_11(%arg0: i32) -> (i32, i32) {
    %c0_i32 = arith.constant 0 : i32
    %c0_i32_0 = arith.constant 0 : i32
    %c0_i32_1 = arith.constant 0 : i32
    return %c0_i32, %c0_i32_0 : i32, i32
  }
  func.func @transform_12(%arg0: i32) -> (i32, i32) {
    %c0_i32 = arith.constant 0 : i32
    %c0_i32_0 = arith.constant 0 : i32
    return %arg0, %c0_i32 : i32, i32
  }
}

</mosaic_0001>

<bundles_post_ra>
// kernel: tpu_custom_call.1
= control target key start
LH: loop header
LB: loop body
LE: loop exit
PB: predicated region body
PF: predicated region fallthrough
CT: control target
= control target key end

     0   :  { %s6011_s21 = smov 64   ;;  %s8486_s0 = inlined_call_operand.vmem [shape: f32[8,3072], index: 0, kind: input, shape index: {}]   ;;  %s8487_s1 = inlined_call_operand.vmem [shape: f32[8,8], index: 1, kind: input, shape index: {}]   ;;  %s8488_s2 = inlined_call_operand.vmem [shape: f32[768,64], index: 2, kind: input, shape index: {}]   ;;  %s8489_s3 = inlined_call_operand.vmem [shape: f32[1,64], index: 3, kind: input, shape index: {}]   ;;  %s8490_s4 = inlined_call_operand.vmem [shape: f32[384,64], index: 4, kind: input, shape index: {}]   ;;  %s8491_s5 = inlined_call_operand.vmem [shape: f32[1,64], index: 5, kind: input, shape index: {}]   ;;  %s8492_s6 = inlined_call_operand.vmem [shape: f32[256,64], index: 6, kind: input, shape index: {}]   ;;  %s8493_s7 = inlined_call_operand.vmem [shape: f32[1,64], index: 7, kind: input, shape index: {}]   ;;  %s8494_s8 = inlined_call_operand.vmem [shape: f32[8,64], index: 8, kind: input, shape index: {}]   ;;  %s8495_s9 = inlined_call_operand.vmem [shape: f32[1,64], index: 9, kind: input, shape index: {}]   ;;  %s8496_s10 = inlined_call_operand.vmem [shape: f32[64,128], index: 10, kind: input, shape index: {}]   ;;  %s8497_s11 = inlined_call_operand.vmem [shape: f32[1,128], index: 11, kind: input, shape index: {}]   ;;  %s8498_s12 = inlined_call_operand.hbm [shape: f32[8,256], index: 12, kind: output, shape index: {}]  }
   0x1   :  { %v6084_v0 = vld [vmem:[%s8486_s0 + $0x20] sm:$0xff]  ;;  %v346_v1 = vld [vmem:[%s8486_s0 + $0x28] sm:$0xff]  ;;  %v6092_v2 = vld [vmem:[%s8486_s0 + $0x10] sm:$0xff] }
   0x2   :  { %v5896_v3 = vpack.i.bf16 %v346_v1, %v6084_v0  ;;  %v344_v4 = vld [vmem:[%s8486_s0 + $0x18] sm:$0xff]  ;;  %v342_v5 = vld [vmem:[%s8486_s0 + $0x8] sm:$0xff]  ;;  %v347_v6 = vld [vmem:[%s8486_s0 + $0x30] sm:$0xff] }
   0x3   :  { %v5891_v7 = vpack.i.bf16 %v344_v4, %v6092_v2  ;;  %v6108_v8 = vld [vmem:[%s8486_s0 + $0x38] sm:$0xff]  ;;  %v64_v9 = vld [vmem:[%s8488_s2 + $0x140] sm:$0xff]  ;;  %v65_v10 = vld [vmem:[%s8488_s2 + $0x148] sm:$0xff]  ;;  %194 = vmatprep.mubr.f32.mxu0 %v342_v5  ;;  %264 = vmatprep.mubr.f32.mxu1 %v344_v4  ;;  %v5906_v29 = vpack.i.bf16 %v347_v6, %v346_v1 }
   0x4   :  { %5897 = vrot.lane.b32.xlu1 %v5896_v3, %s6011_s21  ;;  %v5901_v11 = vpack.i.bf16 %v6108_v8, %v347_v6  ;;  %v6118_v12 = vpack.c.bf16 %v65_v10, %v64_v9  ;;  %v48_v13 = vld [vmem:[%s8488_s2 + $0xc0] sm:$0xff]  ;;  %v49_v14 = vld [vmem:[%s8488_s2 + $0xc8] sm:$0xff]  ;;  %v66_v15 = vld [vmem:[%s8488_s2 + $0x150] sm:$0xff] }
   0x5   :  { %5892 = vrot.lane.b32.xlu0 %v5891_v7, %s6011_s21  ;;  %v6130_v16 = vpack.c.bf16 %v49_v14, %v48_v13  ;;  %v67_v17 = vld [vmem:[%s8488_s2 + $0x158] sm:$0xff]  ;;  %v50_v18 = vld [vmem:[%s8488_s2 + $0xd0] sm:$0xff]  ;;  %v68_v21 = vld [vmem:[%s8488_s2 + $0x160] sm:$0xff] }
   0x6   :  { %v51_v19 = vld [vmem:[%s8488_s2 + $0xd8] sm:$0xff]  ;;  %4899 = vmatprep.subr.bf16.mxu0 %v6118_v12  ;;  %v6142_v20 = vpack.c.bf16 %v67_v17, %v66_v15  ;;  %v69_v22 = vld [vmem:[%s8488_s2 + $0x168] sm:$0xff]  ;;  %v52_v24 = vld [vmem:[%s8488_s2 + $0xe0] sm:$0xff] }
   0x7   :  { %4901 = vmatpush3.bf16.msra.mxu0 %v6130_v16  ;;  %v6151_v23 = vpack.c.bf16 %v51_v19, %v50_v18  ;;  %v6158_v25 = vpack.c.bf16 %v69_v22, %v68_v21  ;;  %v53_v26 = vld [vmem:[%s8488_s2 + $0xe8] sm:$0xff]  ;;  %v70_v27 = vld [vmem:[%s8488_s2 + $0x170] sm:$0xff]  ;;  %v71_v28 = vld [vmem:[%s8488_s2 + $0x178] sm:$0xff] }
   0x8   :  { %5902 = vrot.lane.b32.xlu1 %v5901_v11, %s6011_s21  ;;  %4903 = vmatprep.subr.bf16.mxu0 %v6142_v20  ;;  %v96_v30 = vld [vmem:[%s8488_s2 + $0x240] sm:$0xff]  ;;  %v97_v31 = vld [vmem:[%s8488_s2 + $0x248] sm:$0xff]  ;;  %v6188_v36 = vpack.c.bf16 %v53_v26, %v52_v24  ;;  %v54_v37 = vld [vmem:[%s8488_s2 + $0xf0] sm:$0xff]  ;;  %v6204_v41 = vpack.c.bf16 %v71_v28, %v70_v27 }
   0x9   :  { %452 = vrot.lane.b32.xlu0 %v342_v5, %s6011_s21  ;;  %v80_v32 = vld [vmem:[%s8488_s2 + $0x1c0] sm:$0xff]  ;;  %v6182_v34 = vpack.c.bf16 %v97_v31, %v96_v30  ;;  %v81_v35 = vld [vmem:[%s8488_s2 + $0x1c8] sm:$0xff]  ;;  %v55_v38 = vld [vmem:[%s8488_s2 + $0xf8] sm:$0xff] }
   0xa   :  { %v699_v33 = vld [vmem:[%s8486_s0 + $0x40] sm:$0xff]  ;;  %v6196_v39 = vpack.c.bf16 %v81_v35, %v80_v32  ;;  %v98_v40 = vld [vmem:[%s8488_s2 + $0x250] sm:$0xff]  ;;  %v99_v42 = vld [vmem:[%s8488_s2 + $0x258] sm:$0xff]  ;;  %v6236_v52 = vpack.c.bf16 %v55_v38, %v54_v37 }
   0xb   :  { %4905 = vmatpush3.bf16.msra.mxu0 %v6151_v23  ;;  %v82_v43 = vld [vmem:[%s8488_s2 + $0x1d0] sm:$0xff]  ;;  %v83_v44 = vld [vmem:[%s8488_s2 + $0x1d8] sm:$0xff]  ;;  %v5911_v45 = vpack.i.bf16 %v699_v33, %v6108_v8  ;;  %4931 = vmatprep.subr.bf16.mxu1 %v6182_v34  ;;  %v72_v46 = vld [vmem:[%s8488_s2 + $0x180] sm:$0xff]  ;;  %v6224_v48 = vpack.c.bf16 %v99_v42, %v98_v40 }
   0xc   :  { %805 = vrot.lane.b32.xlu1 %v6084_v0, %s6011_s21  ;;  %4907 = vmatprep.subr.bf16.mxu0 %v6158_v25  ;;  %v73_v47 = vld [vmem:[%s8488_s2 + $0x188] sm:$0xff]  ;;  %v6227_v49 = vpack.c.bf16 %v83_v44, %v82_v43  ;;  %v100_v50 = vld [vmem:[%s8488_s2 + $0x260] sm:$0xff]  ;;  %v6262_v60 = vld [vmem:[%s8486_s0 + $0x50] sm:$0xff] }
   0xd   :  { %5907 = vrot.lane.b32.xlu0 %v5906_v29, %s6011_s21  ;;  %4933 = vmatpush3.bf16.msra.mxu1 %v6196_v39  ;;  %v101_v51 = vld [vmem:[%s8488_s2 + $0x268] sm:$0xff]  ;;  %v56_v53 = vld [vmem:[%s8488_s2 + $0x100] sm:$0xff]  ;;  %v6251_v57 = vpack.c.bf16 %v73_v47, %v72_v46  ;;  %v74_v61 = vld [vmem:[%s8488_s2 + $0x190] sm:$0xff] }
   0xe   :  { %4935 = vmatprep.subr.bf16.mxu1 %v6224_v48  ;;  %v6242_v54 = vpack.c.bf16 %v101_v51, %v100_v50  ;;  %v84_v55 = vld [vmem:[%s8488_s2 + $0x1e0] sm:$0xff]  ;;  %v85_v56 = vld [vmem:[%s8488_s2 + $0x1e8] sm:$0xff]  ;;  %v75_v62 = vld [vmem:[%s8488_s2 + $0x198] sm:$0xff] }
   0xf   :  { %4909 = vmatpush3.bf16.msra.mxu0 %v6188_v36  ;;  %v57_v58 = vld [vmem:[%s8488_s2 + $0x108] sm:$0xff]  ;;  %v102_v1 = vld [vmem:[%s8488_s2 + $0x270] sm:$0xff]  ;;  %v6276_v4 = vpack.c.bf16 %v85_v56, %v84_v55  ;;  %v103_v5 = vld [vmem:[%s8488_s2 + $0x278] sm:$0xff]  ;;  %v6297_v13 = vpack.c.bf16 %v75_v62, %v74_v61 }
  0x10   :  { %4911 = vmatprep.subr.bf16.mxu0 %v6204_v41  ;;  %v700_v59 = vld [vmem:[%s8486_s0 + $0x48] sm:$0xff]  ;;  %v6282_v6 = vpack.c.bf16 %v57_v58, %v56_v53  ;;  %v58_v7 = vld [vmem:[%s8488_s2 + $0x110] sm:$0xff]  ;;  %v6288_v9 = vpack.c.bf16 %v103_v5, %v102_v1  ;;  %v87_v11 = vld [vmem:[%s8488_s2 + $0x1f8] sm:$0xff] }
  0x11   :  { %5912 = vrot.lane.b32.xlu0 %v5911_v45, %s6011_s21  ;;  %v5916_v63 = vpack.i.bf16 %v6262_v60, %v700_v59  ;;  %v5921_v3 = vpack.i.bf16 %v700_v59, %v699_v33  ;;  %4937 = vmatpush3.bf16.msra.mxu1 %v6227_v49  ;;  %v86_v10 = vld [vmem:[%s8488_s2 + $0x1f0] sm:$0xff]  ;;  %v59_v14 = vld [vmem:[%s8488_s2 + $0x118] sm:$0xff]  ;;  %v104_v15 = vld [vmem:[%s8488_s2 + $0x280] sm:$0xff] }
  0x12   :  { %4939 = vmatprep.subr.bf16.mxu1 %v6242_v54  ;;  %v105_v17 = vld [vmem:[%s8488_s2 + $0x288] sm:$0xff]  ;;  %v76_v18 = vld [vmem:[%s8488_s2 + $0x1a0] sm:$0xff]  ;;  %v6317_v21 = vpack.c.bf16 %v87_v11, %v86_v10  ;;  %v6320_v22 = vpack.c.bf16 %v59_v14, %v58_v7  ;;  %v106_v31 = vld [vmem:[%s8488_s2 + $0x290] sm:$0xff] }
  0x13   :  { %4913 = vmatpush3.bf16.msra.mxu0 %v6236_v52  ;;  %5917 = vrot.lane.b32.xlu1 %v5916_v63, %s6011_s21  ;;  %v77_v19 = vld [vmem:[%s8488_s2 + $0x1a8] sm:$0xff]  ;;  %v60_v24 = vld [vmem:[%s8488_s2 + $0x120] sm:$0xff]  ;;  %v6326_v26 = vpack.c.bf16 %v105_v17, %v104_v15  ;;  %v107_v32 = vld [vmem:[%s8488_s2 + $0x298] sm:$0xff] }
  0x14   :  { %4915 = vmatprep.subr.bf16.mxu0 %v6251_v57  ;;  %v88_v27 = vld [vmem:[%s8488_s2 + $0x200] sm:$0xff]  ;;  %v89_v28 = vld [vmem:[%s8488_s2 + $0x208] sm:$0xff]  ;;  %v6335_v29 = vpack.c.bf16 %v77_v19, %v76_v18  ;;  %v78_v33 = vld [vmem:[%s8488_s2 + $0x1b0] sm:$0xff]  ;;  %v6364_v40 = vpack.c.bf16 %v107_v32, %v106_v31  ;;  %v8501_v19 = vmov 0.0|0.0  }
  0x15   :  { %5922 = vrot.lane.b32.xlu0 %v5921_v3, %s6011_s21  ;;  %4941 = vmatpush3.bf16.msra.mxu1 %v6276_v4  ;;  %v61_v30 = vld [vmem:[%s8488_s2 + $0x128] sm:$0xff]  ;;  %v79_v35 = vld [vmem:[%s8488_s2 + $0x1b8] sm:$0xff]  ;;  %v6355_v37 = vpack.c.bf16 %v89_v28, %v88_v27  ;;  %v90_v42 = vld [vmem:[%s8488_s2 + $0x210] sm:$0xff] }
  0x16   :  { %4943 = vmatprep.subr.bf16.mxu1 %v6288_v9  ;;  %v6358_v38 = vpack.c.bf16 %v61_v30, %v60_v24  ;;  %v91_v43 = vld [vmem:[%s8488_s2 + $0x218] sm:$0xff]  ;;  %v6373_v44 = vpack.c.bf16 %v79_v35, %v78_v33  ;;  %v108_v46 = vld [vmem:[%s8488_s2 + $0x2a0] sm:$0xff]  ;;  %v109_v47 = vld [vmem:[%s8488_s2 + $0x2a8] sm:$0xff] }
  0x17   :  { %4917 = vmatpush3.bf16.msra.mxu0 %v6282_v6  ;;  %1153 = vrot.lane.b32.xlu1 %v6108_v8, %s6011_s21  ;;  %v62_v8 = vld [vmem:[%s8488_s2 + $0x130] sm:$0xff]  ;;  %v63_v45 = vld [vmem:[%s8488_s2 + $0x138] sm:$0xff]  ;;  %v112_v50 = vld [vmem:[%s8488_s2 + $0x2c0] sm:$0xff]  ;;  %v6388_v51 = vpack.c.bf16 %v91_v43, %v90_v42  ;;  %v6394_v55 = vpack.c.bf16 %v109_v47, %v108_v46 }
  0x18   :  { %4919 = vmatprep.subr.bf16.mxu0 %v6297_v13  ;;  %v6391_v53 = vpack.c.bf16 %v63_v45, %v62_v8  ;;  %v92_v56 = vld [vmem:[%s8488_s2 + $0x220] sm:$0xff]  ;;  %v93_v58 = vld [vmem:[%s8488_s2 + $0x228] sm:$0xff]  ;;  %v1047_v59 = vld [vmem:[%s8486_s0 + $0x58] sm:$0xff] }
  0x19   :  { %4945 = vmatpush3.bf16.msra.mxu1 %v6317_v21  ;;  %v113_v61 = vld [vmem:[%s8488_s2 + $0x2c8] sm:$0xff]  ;;  %v110_v62 = vld [vmem:[%s8488_s2 + $0x2b0] sm:$0xff]  ;;  %v111_v63 = vld [vmem:[%s8488_s2 + $0x2b8] sm:$0xff]  ;;  %v5926_v1 = vpack.i.bf16 %v1047_v59, %v6262_v60  ;;  %v6423_v7 = vpack.c.bf16 %v93_v58, %v92_v56 }
  0x1a   :  { %4947 = vmatprep.subr.bf16.mxu1 %v6326_v26  ;;  %v43_v3 = vld [vmem:[%s8486_s0] sm:$0xff]  ;;  %v114_v5 = vld [vmem:[%s8488_s2 + $0x2d0] sm:$0xff]  ;;  %v6430_v11 = vpack.c.bf16 %v113_v61, %v112_v50  ;;  %v6433_v14 = vpack.c.bf16 %v111_v63, %v110_v62  ;;  %v95_v15 = vld [vmem:[%s8488_s2 + $0x238] sm:$0xff] }
  0x1b   :  { %4921 = vmatpush3.bf16.msra.mxu0 %v6320_v22  ;;  %v94_v10 = vld [vmem:[%s8488_s2 + $0x230] sm:$0xff]  ;;  %5927 = vrot.lane.b32.xlu0 %v5926_v1, %s6011_s21  ;;  %v1048_v17 = vld [vmem:[%s8486_s0 + $0x60] sm:$0xff]  ;;  %v6444_v18 = vld [vmem:[%s8486_s0 + $0x68] sm:$0xff] }
  0x1c   :  { %4923 = vmatprep.subr.bf16.mxu0 %v6335_v29  ;;  %v115_v24 = vld [vmem:[%s8488_s2 + $0x2d8] sm:$0xff]  ;;  %v365_v27 = vld [vmem:[%s8488_s2 + $0x80] sm:$0xff]  ;;  %v366_v28 = vld [vmem:[%s8488_s2 + $0x88] sm:$0xff]  ;;  %v5931_v30 = vpack.i.bf16 %v6444_v18, %v1048_v17  ;;  %v5936_v31 = vpack.i.bf16 %v1048_v17, %v1047_v59  ;;  %v6461_v33 = vpack.c.bf16 %v95_v15, %v94_v10 }
  0x1d   :  { %4949 = vmatpush3.bf16.msra.mxu1 %v6355_v37  ;;  %v116_v32 = vld [vmem:[%s8488_s2 + $0x2e0] sm:$0xff] }
  0x1e   :  { %4951 = vmatprep.subr.bf16.mxu1 %v6364_v40 }
  0x1f   :  { %4925 = vmatpush3.bf16.msra.mxu0 %v6358_v38 }
  0x20   :  { %4927 = vmatprep.subr.bf16.mxu0 %v6373_v44 }
  0x21   :  { %4953 = vmatpush3.bf16.msra.mxu1 %v6388_v51 }
  0x22   :  { %4955 = vmatprep.subr.bf16.mxu1 %v6394_v55 }
  0x23   :  { %4929 = vmatpush3.bf16.msra.mxu0 %v6391_v53 }
  0x24   :  { %4962 = vmatprep.subr.bf16.mxu0 %v8501_v19 }
  0x25   :  { %4957 = vmatpush3.bf16.msra.mxu1 %v6423_v7 }
  0x26   :  { %195 = vmatmul.mubr.f32.vlgmr.msra.gmra.mrb[0].mxu0 %v43_v3 }
  0x27   :  { %17 = vsyncpa [#allocation5], 0  ;;  %4964 = vmatpush3.bf16.msra.mxu0 %v6430_v11  ;;  %v6464_v35 = vpack.c.bf16 %v115_v24, %v114_v5  ;;  %4959 = vmatprep.subr.bf16.mxu1 %v6433_v14  ;;  %v6467_v8 = vpack.c.bf16 %v366_v28, %v365_v27  ;;  %v349_v42 = vld [vmem:[%s8488_s2] sm:$0xff]  ;;  %v350_v43 = vld [vmem:[%s8488_s2 + $0x8] sm:$0xff]  ;;  %vm6013_vm0 = vmmov 0   ;;  %v8499_v47 = vmov 0.0  }
  0x28   :  { %v6478_v45 = vld [vmem:[%s8486_s0 + $0x70] sm:$0xff]  ;;  %4965 = vmatprep.subr.bf16.mxu0 %v8501_v19  ;;  %v117_v46 = vld [vmem:[%s8488_s2 + $0x2e8] sm:$0xff]  ;;  %4782 = vmatprep.mubr.msk.f32.mxu0 %vm6013_vm0, %v8499_v47  ;;  %v368_v56 = vld [vmem:[%s8488_s2 + $0x98] sm:$0xff]  ;;  %v6495_v58 = vpack.c.bf16 %v350_v43, %v349_v42  ;;  %vm126_vm1 = vcmask 523264   ;;  %vm693_vm2 = vcmask 1048064   ;;  %vm3603_vm3 = vcmask 64512  }
  0x29   :  { %v367_v50 = vld [vmem:[%s8488_s2 + $0x90] sm:$0xff]  ;;  %5932 = vrot.lane.b32.xlu1 %v5931_v30, %s6011_s21  ;;  %5937 = vrot.lane.b32.xlu0 %v5936_v31, %s6011_s21  ;;  %v5941_v59 = vpack.i.bf16 %v6478_v45, %v6444_v18  ;;  %v1400_v61 = vld [vmem:[%s8486_s0 + $0x78] sm:$0xff]  ;;  %v6508_v63 = vpack.c.bf16 %v117_v46, %v116_v32 }
  0x2a   :  { %4961 = vmatpush3.bf16.msra.mxu1 %v6461_v33  ;;  %v6505_v62 = vld [vmem:[%s8486_s0 + $0x80] sm:$0xff]  ;;  %v118_v1 = vld [vmem:[%s8488_s2 + $0x2f0] sm:$0xff]  ;;  %v6514_v3 = vpack.c.bf16 %v368_v56, %v367_v50  ;;  %v352_v10 = vld [vmem:[%s8488_s2 + $0x18] sm:$0xff] }
  0x2b   :  { %4967 = vmatpush3.bf16.msra.mxu0 %v6464_v35  ;;  %4975 = vmatprep.subr.bf16.mxu1 %v6467_v8  ;;  %v351_v5 = vld [vmem:[%s8488_s2 + $0x10] sm:$0xff]  ;;  %v119_v15 = vld [vmem:[%s8488_s2 + $0x2f8] sm:$0xff]  ;;  %v369_v17 = vld [vmem:[%s8488_s2 + $0xa0] sm:$0xff]  ;;  %v5946_v27 = vpack.i.bf16 %v6505_v62, %v1400_v61 }
  0x2c   :  { %4968 = vmatprep.subr.bf16.mxu0 %v8501_v19  ;;  %v370_v24 = vld [vmem:[%s8488_s2 + $0xa8] sm:$0xff]  ;;  %v6537_v28 = vpack.c.bf16 %v352_v10, %v351_v5  ;;  %v6541_v30 = vpack.c.bf16 %v119_v15, %v118_v1  ;;  %v371_v32 = vld [vmem:[%s8488_s2 + $0xb0] sm:$0xff]  ;;  %v372_v42 = vld [vmem:[%s8488_s2 + $0xb8] sm:$0xff] }
  0x2d   :  { %265 = vmatmul.mubr.f32.vlgmr.msra.gmra.mrb[0].mxu1 %v6092_v2  ;;  %1505 = vrot.lane.b32.xlu1 %v6262_v60, %s6011_s21  ;;  %v6544_v31 = vpack.c.bf16 %v370_v24, %v369_v17  ;;  %v353_v2 = vld [vmem:[%s8488_s2 + $0x20] sm:$0xff]  ;;  %v354_v60 = vld [vmem:[%s8488_s2 + $0x28] sm:$0xff]  ;;  %v6565_v46 = vpack.c.bf16 %v372_v42, %v371_v32  ;;  %v355_v50 = vld [vmem:[%s8488_s2 + $0x30] sm:$0xff]  ;;  %v5951_v17 = vpack.i.bf16 %v1400_v61, %v6478_v45 }
  0x2e   :  { %4977 = vmatpush3.bf16.msra.mxu1 %v6495_v58  ;;  %5942 = vrot.lane.b32.xlu0 %v5941_v59, %s6011_s21  ;;  %v6561_v43 = vpack.c.bf16 %v354_v60, %v353_v2  ;;  %v356_v56 = vld [vmem:[%s8488_s2 + $0x38] sm:$0xff]  ;;  %v357_v1 = vld [vmem:[%s8488_s2 + $0x40] sm:$0xff]  ;;  %v358_v5 = vld [vmem:[%s8488_s2 + $0x48] sm:$0xff] }
  0x2f   :  { %4970 = vmatpush3.bf16.msra.mxu0 %v6508_v63  ;;  %4979 = vmatprep.subr.bf16.mxu1 %v6514_v3  ;;  %v6579_v59 = vpack.c.bf16 %v356_v56, %v355_v50  ;;  %v360_v10 = vld [vmem:[%s8488_s2 + $0x58] sm:$0xff]  ;;  %v361_v24 = vld [vmem:[%s8488_s2 + $0x60] sm:$0xff]  ;;  %v1747_v45 = vld [vmem:[%s8486_s0 + $0x88] sm:$0xff] }
  0x30   :  { %4971 = vmatprep.subr.bf16.mxu0 %v8501_v19  ;;  %v363_v61 = vld [vmem:[%s8488_s2 + $0x70] sm:$0xff]  ;;  %v364_v60 = vld [vmem:[%s8488_s2 + $0x78] sm:$0xff]  ;;  %v5956_v32 = vpack.i.bf16 %v1747_v45, %v6505_v62 }
  0x31   :  { %5947 = vrot.lane.b32.xlu1 %v5946_v27, %s6011_s21  ;;  %v362_v27 = vld [vmem:[%s8488_s2 + $0x68] sm:$0xff]  ;;  %v6634_v42 = vpack.c.bf16 %v364_v60, %v363_v61 }
  0x32   :  { %4981 = vmatpush3.bf16.msra.mxu1 %v6537_v28  ;;  %5952 = vrot.lane.b32.xlu0 %v5951_v17, %s6011_s21  ;;  %v6617_v2 = vpack.c.bf16 %v362_v27, %v361_v24 }
  0x33   :  { %4973 = vmatpush3.bf16.msra.mxu0 %v6541_v30  ;;  %4983 = vmatprep.subr.bf16.mxu1 %v6544_v31 }
  0x34   :  { %5007 = vmatprep.subr.bf16.mxu0 %v6251_v57 }
  0x35   :  { %1853 = vrot.lane.b32.xlu1 %v6444_v18, %s6011_s21  ;;  %v359_v18 = vld [vmem:[%s8488_s2 + $0x50] sm:$0xff] }
  0x36   :  { %4783 = vmatmul.mubr.msk.f32.vlgmr.msra.gmra.mrb[2].mxu0 %vm126_vm1, %v6084_v0  ;;  %4985 = vmatpush3.bf16.msra.mxu1 %v6561_v43  ;;  %v6591_v0 = vpack.c.bf16 %v358_v5, %v357_v1  ;;  %v6603_v15 = vpack.c.bf16 %v360_v10, %v359_v18 }
  0x37   :  { %5009 = vmatpush3.bf16.msra.mxu0 %v6282_v6  ;;  %4987 = vmatprep.subr.bf16.mxu1 %v6565_v46 }
  0x38   :  { %5011 = vmatprep.subr.bf16.mxu0 %v6297_v13  ;;  %5957 = vrot.lane.b32.xlu0 %v5956_v32, %s6011_s21 }
  0x3a   :  { %4989 = vmatpush3.bf16.msra.mxu1 %v6579_v59 }
  0x3b   :  { %5013 = vmatpush3.bf16.msra.mxu0 %v6320_v22  ;;  %4991 = vmatprep.subr.bf16.mxu1 %v6130_v16 }
  0x3c   :  { %5015 = vmatprep.subr.bf16.mxu0 %v6335_v29 }
  0x3e   :  { %4993 = vmatpush3.bf16.msra.mxu1 %v6591_v0 }
  0x3f   :  { %5017 = vmatpush3.bf16.msra.mxu0 %v6358_v38  ;;  %4995 = vmatprep.subr.bf16.mxu1 %v6151_v23 }
  0x40   :  { %5019 = vmatprep.subr.bf16.mxu0 %v6373_v44 }
  0x42   :  { %4997 = vmatpush3.bf16.msra.mxu1 %v6603_v15 }
  0x43   :  { %5021 = vmatpush3.bf16.msra.mxu0 %v6391_v53  ;;  %4999 = vmatprep.subr.bf16.mxu1 %v6188_v36 }
  0x44   :  { %5023 = vmatprep.subr.bf16.mxu0 %v6196_v39  ;;  %v1748_v39 = vld [vmem:[%s8486_s0 + $0x90] sm:$0xff] }
  0x46   :  { %5001 = vmatpush3.bf16.msra.mxu1 %v6617_v2 }
  0x47   :  { %5025 = vmatpush3.bf16.msra.mxu0 %v6118_v12  ;;  %5003 = vmatprep.subr.bf16.mxu1 %v6236_v52  ;;  %v1749_v12 = vld [vmem:[%s8486_s0 + $0x98] sm:$0xff] }
  0x48   :  { %5027 = vmatprep.subr.bf16.mxu0 %v6227_v49  ;;  %v5961_v49 = vpack.i.bf16 %v1749_v12, %v1748_v39 }
  0x4a   :  { %5005 = vmatpush3.bf16.msra.mxu1 %v6634_v42  ;;  %5962 = vrot.lane.b32.xlu1 %v5961_v49, %s6011_s21 }
  0x4b   :  { %5029 = vmatpush3.bf16.msra.mxu0 %v6142_v20  ;;  %5039 = vmatprep.subr.bf16.mxu1 %v6326_v26  ;;  %v5966_v20 = vpack.i.bf16 %v1748_v39, %v1747_v45 }
  0x4c   :  { %5031 = vmatprep.subr.bf16.mxu0 %v6276_v4 }
  0x4d   :  { %5967 = vrot.lane.b32.xlu0 %v5966_v20, %s6011_s21 }
  0x4e   :  { %2205 = vrot.lane.b32.xlu1 %v6505_v62, %s6011_s21 }
  0x4f   :  { %5033 = vmatpush3.bf16.msra.mxu0 %v6158_v25  ;;  %v6660_v25 = vld [vmem:[%s8486_s0 + $0xa0] sm:$0xff] }
  0x50   :  { %5035 = vmatprep.subr.bf16.mxu0 %v6317_v21  ;;  %v5971_v4 = vpack.i.bf16 %v6660_v25, %v1749_v12 }
  0x52   :  { %5972 = vrot.lane.b32.xlu0 %v5971_v4, %s6011_s21  ;;  %v2100_v4 = vld [vmem:[%s8486_s0 + $0xa8] sm:$0xff] }
  0x53   :  { %5037 = vmatpush3.bf16.msra.mxu0 %v6204_v41 }
  0x54   :  { %5071 = vmatprep.subr.bf16.mxu0 %v6467_v8 }
  0x76   :  { %v6664_v21 = vpop.permute.xlu1 %5897 }
  0x77   :  { %v5900_v41 = vunpack.i.h.bf16 %v6664_v21  ;;  %v5899_v50 = vunpack.i.l.bf16 %v6664_v21  ;;  %v5893_v56 = vpop.permute.xlu0 %5892  ;;  %v745_v21 = vld [vmem:[%s8488_s2 + $0x158] sm:$0xff] }
  0x78   :  { %v5895_v62 = vunpack.i.h.bf16 %v5893_v56  ;;  %v5894_v1 = vunpack.i.l.bf16 %v5893_v56 }
  0x79   :  { %v469_v5 = vsel %vm126_vm1, %v5899_v50, %v5900_v41 }
  0x7a   :  { %v467_v18 = vsel %vm126_vm1, %v5894_v1, %v5895_v62  ;;  %612 = vmatprep.mubr.f32.mxu0 %v469_v5  ;;  %v468_v10 = vsel %vm126_vm1, %v5895_v62, %v5899_v50  ;;  %v6673_v17 = vpop.permute.xlu1 %5902  ;;  %v6699_v50 = vld [vmem:[%s8486_s0 + $0xb0] sm:$0xff]  ;;  %v763_v5 = vld [vmem:[%s8488_s2 + $0x1e8] sm:$0xff] }
  0x7b   :  { %v453_v24 = vpop.permute.xlu0 %452  ;;  %542 = vmatprep.mubr.f32.mxu1 %v467_v18  ;;  %613 = vmatmul.mubr.f32.vlgmr.msra.gmra.mrb[4].mxu0 %v468_v10  ;;  %v5905_v27 = vunpack.i.h.bf16 %v6673_v17  ;;  %v5904_v45 = vunpack.i.l.bf16 %v6673_v17  ;;  %v5976_v56 = vpack.i.bf16 %v6699_v50, %v2100_v4  ;;  %v778_v10 = vld [vmem:[%s8488_s2 + $0x260] sm:$0xff]  ;;  %v779_v17 = vld [vmem:[%s8488_s2 + $0x268] sm:$0xff] }
  0x7c   :  { %v466_v61 = vsel %vm126_vm1, %v453_v24, %v5894_v1  ;;  %5073 = vmatpush3.bf16.msra.mxu0 %v6495_v58 }
  0x7d   :  { %543 = vmatmul.mubr.f32.vlgmr.msra.gmra.mrb[2].mxu1 %v466_v61  ;;  %5075 = vmatprep.subr.bf16.mxu0 %v6514_v3  ;;  %v471_v60 = vsel %vm126_vm1, %v5904_v45, %v5905_v27  ;;  %v6848_v61 = vpack.c.bf16 %v779_v17, %v778_v10  ;;  %v1086_v10 = vld [vmem:[%s8488_s2 + $0x120] sm:$0xff] }
  0x7e   :  { %5041 = vmatpush3.bf16.msra.mxu1 %v6355_v37  ;;  %682 = vmatprep.mubr.f32.mxu1 %v471_v60  ;;  %v806_v62 = vpop.permute.xlu1 %805  ;;  %v764_v60 = vld [vmem:[%s8488_s2 + $0x1f0] sm:$0xff] }
  0x7f   :  { %5043 = vmatprep.subr.bf16.mxu1 %v6364_v40  ;;  %v6683_v32 = vpop.permute.xlu0 %5907  ;;  %5977 = vrot.lane.b32.xlu1 %v5976_v56, %s6011_s21  ;;  %v1098_v56 = vld [vmem:[%s8488_s2 + $0x180] sm:$0xff] }
  0x80   :  { %5077 = vmatpush3.bf16.msra.mxu0 %v6537_v28  ;;  %v5910_v39 = vunpack.i.h.bf16 %v6683_v32  ;;  %v5909_v49 = vunpack.i.l.bf16 %v6683_v32  ;;  %v1087_v32 = vld [vmem:[%s8488_s2 + $0x128] sm:$0xff] }
  0x81   :  { %5079 = vmatprep.subr.bf16.mxu0 %v6544_v31 }
  0x82   :  { %5045 = vmatpush3.bf16.msra.mxu1 %v6388_v51  ;;  %v820_v20 = vsel %vm126_vm1, %v5909_v49, %v5910_v39 }
  0x83   :  { %5047 = vmatprep.subr.bf16.mxu1 %v6394_v55  ;;  %895 = vmatprep.mubr.f32.mxu0 %v820_v20  ;;  %v780_v20 = vld [vmem:[%s8488_s2 + $0x270] sm:$0xff] }
  0x84   :  { %5081 = vmatpush3.bf16.msra.mxu0 %v6561_v43  ;;  %2525 = vrot.lane.b32.xlu1 %v1749_v12, %s6011_s21  ;;  %v6728_v12 = vpop.permute.xlu0 %5912 }
  0x85   :  { %5083 = vmatprep.subr.bf16.mxu0 %v6565_v46 }
  0x86   :  { %5049 = vmatpush3.bf16.msra.mxu1 %v6423_v7 }
  0x87   :  { %5051 = vmatprep.subr.bf16.mxu1 %v6433_v14 }
  0x88   :  { %5085 = vmatpush3.bf16.msra.mxu0 %v6579_v59  ;;  %v6826_v18 = vpop.permute.xlu0 %5922 }
  0x89   :  { %5087 = vmatprep.subr.bf16.mxu0 %v6130_v16  ;;  %v6720_v16 = vpop.permute.xlu1 %5917 }
  0x8a   :  { %5053 = vmatpush3.bf16.msra.mxu1 %v6461_v33 }
  0x8b   :  { %5055 = vmatprep.subr.bf16.mxu1 %v6430_v11 }
  0x8c   :  { %5089 = vmatpush3.bf16.msra.mxu0 %v6591_v0 }
  0x8d   :  { %5091 = vmatprep.subr.bf16.mxu0 %v6151_v23  ;;  %v5920_v23 = vunpack.i.h.bf16 %v6720_v16 }
  0x8e   :  { %5057 = vmatpush3.bf16.msra.mxu1 %v6182_v34  ;;  %v5919_v34 = vunpack.i.l.bf16 %v6720_v16 }
  0x8f   :  { %5059 = vmatprep.subr.bf16.mxu1 %v6464_v35 }
  0x90   :  { %5093 = vmatpush3.bf16.msra.mxu0 %v6603_v15  ;;  %v824_v1 = vsel %vm126_vm1, %v5919_v34, %v5920_v23 }
  0x91   :  { %5095 = vmatprep.subr.bf16.mxu0 %v6188_v36  ;;  %v5915_v36 = vunpack.i.h.bf16 %v6728_v12 }
  0x92   :  { %5061 = vmatpush3.bf16.msra.mxu1 %v6224_v48  ;;  %v819_v48 = vsel %vm126_vm1, %v806_v62, %v5909_v49  ;;  %v765_v49 = vld [vmem:[%s8488_s2 + $0x1f8] sm:$0xff]  ;;  %v6872_v62 = vpop.permute.xlu0 %5927 }
  0x93   :  { %5063 = vmatprep.subr.bf16.mxu1 %v6508_v63  ;;  %v6875_v23 = vpack.c.bf16 %v765_v49, %v764_v60  ;;  %v1075_v60 = vld [vmem:[%s8488_s2 + $0xc8] sm:$0xff]  ;;  %v1077_v49 = vld [vmem:[%s8488_s2 + $0xd8] sm:$0xff] }
  0x94   :  { %5097 = vmatpush3.bf16.msra.mxu0 %v6617_v2 }
  0x95   :  { %5099 = vmatprep.subr.bf16.mxu0 %v6236_v52  ;;  %v5914_v52 = vunpack.i.l.bf16 %v6728_v12  ;;  %v1105_v12 = vld [vmem:[%s8488_s2 + $0x1b8] sm:$0xff] }
  0x96   :  { %5065 = vmatpush3.bf16.msra.mxu1 %v6242_v54 }
  0x97   :  { %5067 = vmatprep.subr.bf16.mxu1 %v6541_v30  ;;  %v822_v54 = vsel %vm126_vm1, %v5914_v52, %v5915_v36 }
  0x98   :  { %5101 = vmatpush3.bf16.msra.mxu0 %v6634_v42 }
  0x99   :  { %5135 = vmatprep.subr.bf16.mxu0 %v6326_v26  ;;  %v470_v26 = vsel %vm126_vm1, %v5900_v41, %v5904_v45  ;;  %v747_v45 = vld [vmem:[%s8488_s2 + $0x168] sm:$0xff] }
  0x9a   :  { %5069 = vmatpush3.bf16.msra.mxu1 %v6288_v9  ;;  %v759_v9 = vld [vmem:[%s8488_s2 + $0x1c8] sm:$0xff] }
  0x9b   :  { %896 = vmatmul.mubr.f32.vlgmr.msra.gmra.mrb[6].mxu0 %v819_v48  ;;  %5103 = vmatprep.subr.bf16.mxu1 %v6251_v57  ;;  %v5981_v57 = vpack.i.bf16 %v2100_v4, %v6660_v25  ;;  %v781_v4 = vld [vmem:[%s8488_s2 + $0x278] sm:$0xff]  ;;  %v748_v48 = vld [vmem:[%s8488_s2 + $0x170] sm:$0xff] }
  0x9c   :  { %5137 = vmatpush3.bf16.msra.mxu0 %v6355_v37  ;;  %1035 = vmatprep.mubr.f32.mxu0 %v824_v1  ;;  %v749_v1 = vld [vmem:[%s8488_s2 + $0x178] sm:$0xff] }
  0x9d   :  { %683 = vmatmul.mubr.f32.vlgmr.msra.gmra.mrb[4].mxu1 %v470_v26  ;;  %5139 = vmatprep.subr.bf16.mxu0 %v6364_v40  ;;  %v742_v40 = vld [vmem:[%s8488_s2 + $0x140] sm:$0xff] }
  0x9e   :  { %5105 = vmatpush3.bf16.msra.mxu1 %v6282_v6  ;;  %965 = vmatprep.mubr.f32.mxu1 %v822_v54  ;;  %v758_v6 = vld [vmem:[%s8488_s2 + $0x1c0] sm:$0xff]  ;;  %v6884_v54 = vpack.c.bf16 %v781_v4, %v780_v20  ;;  %v1079_v20 = vld [vmem:[%s8488_s2 + $0xe8] sm:$0xff]  ;;  %v1080_v4 = vld [vmem:[%s8488_s2 + $0xf0] sm:$0xff] }
  0x9f   :  { %5107 = vmatprep.subr.bf16.mxu1 %v6297_v13  ;;  %5982 = vrot.lane.b32.xlu0 %v5981_v57, %s6011_s21  ;;  %v774_v13 = vld [vmem:[%s8488_s2 + $0x240] sm:$0xff]  ;;  %v6778_v37 = vpack.c.bf16 %v759_v9, %v758_v6  ;;  %v1083_v6 = vld [vmem:[%s8488_s2 + $0x108] sm:$0xff]  ;;  %v8504_v9 = vunpack.i.h.bf16 %v6872_v62 }
  0xa0   :  { %5141 = vmatpush3.bf16.msra.mxu0 %v6388_v51  ;;  %v743_v51 = vld [vmem:[%s8488_s2 + $0x148] sm:$0xff]  ;;  %v1082_v57 = vld [vmem:[%s8488_s2 + $0x100] sm:$0xff] }
  0xa1   :  { %5143 = vmatprep.subr.bf16.mxu0 %v6394_v55  ;;  %v761_v55 = vld [vmem:[%s8488_s2 + $0x1d8] sm:$0xff] }
  0xa2   :  { %5109 = vmatpush3.bf16.msra.mxu1 %v6320_v22  ;;  %v775_v22 = vld [vmem:[%s8488_s2 + $0x248] sm:$0xff] }
  0xa3   :  { %5111 = vmatprep.subr.bf16.mxu1 %v6335_v29  ;;  %v2447_v29 = vld [vmem:[%s8486_s0 + $0xb8] sm:$0xff]  ;;  %2531 = vrot.lane.b32.xlu0 %v6699_v50, %s6011_s21 }
  0xa4   :  { %5145 = vmatpush3.bf16.msra.mxu0 %v6423_v7  ;;  %2533 = vrot.lane.b32.xlu1 %v2447_v29, %s6011_s21  ;;  %v776_v7 = vld [vmem:[%s8488_s2 + $0x250] sm:$0xff]  ;;  %v1101_v29 = vld [vmem:[%s8488_s2 + $0x198] sm:$0xff] }
  0xa5   :  { %5147 = vmatprep.subr.bf16.mxu0 %v6433_v14  ;;  %v777_v14 = vld [vmem:[%s8488_s2 + $0x258] sm:$0xff] }
  0xa6   :  { %5113 = vmatpush3.bf16.msra.mxu1 %v6358_v38  ;;  %v6788_v38 = vpack.c.bf16 %v775_v22, %v774_v13  ;;  %v6818_v41 = vpack.c.bf16 %v777_v14, %v776_v7  ;;  %v5929_v13 = vunpack.i.l.bf16 %v6872_v62  ;;  %v6898_v22 = vpack.c.bf16 %v749_v1, %v748_v48  ;;  %v1084_v14 = vld [vmem:[%s8488_s2 + $0x110] sm:$0xff]  ;;  %v1419_v48 = vld [vmem:[%s8488_s2 + $0x88] sm:$0xff]  ;;  %v7036_v1 = vpop.permute.xlu0 %5937 }
  0xa7   :  { %5115 = vmatprep.subr.bf16.mxu1 %v6373_v44  ;;  %v760_v44 = vld [vmem:[%s8488_s2 + $0x1d0] sm:$0xff] }
  0xa8   :  { %5149 = vmatpush3.bf16.msra.mxu0 %v6461_v33  ;;  %v6806_v33 = vpack.c.bf16 %v743_v51, %v742_v40  ;;  %v6809_v25 = vpack.c.bf16 %v761_v55, %v760_v44  ;;  %v5925_v40 = vunpack.i.h.bf16 %v6826_v18  ;;  %v5924_v51 = vunpack.i.l.bf16 %v6826_v18  ;;  %v1117_v18 = vld [vmem:[%s8488_s2 + $0x218] sm:$0xff] }
  0xa9   :  { %5151 = vmatprep.subr.bf16.mxu0 %v6430_v11  ;;  %v744_v11 = vld [vmem:[%s8488_s2 + $0x150] sm:$0xff]  ;;  %v823_v44 = vsel %vm126_vm1, %v5915_v36, %v5919_v34  ;;  %v6915_v55 = vpack.c.bf16 %v1083_v6, %v1082_v57  ;;  %v1170_v16 = vsel %vm126_vm1, %v5929_v13, %v8504_v9  ;;  %v1102_v34 = vld [vmem:[%s8488_s2 + $0x1a0] sm:$0xff]  ;;  %v1103_v36 = vld [vmem:[%s8488_s2 + $0x1a8] sm:$0xff] }
  0xaa   :  { %5117 = vmatpush3.bf16.msra.mxu1 %v6391_v53  ;;  %v762_v53 = vld [vmem:[%s8488_s2 + $0x1e0] sm:$0xff]  ;;  %v6836_v24 = vpack.c.bf16 %v745_v21, %v744_v11  ;;  %v1085_v11 = vld [vmem:[%s8488_s2 + $0x118] sm:$0xff]  ;;  %v1168_v21 = vsel %vm126_vm1, %v5924_v51, %v5925_v40  ;;  %v1131_v6 = vld [vmem:[%s8488_s2 + $0x288] sm:$0xff]  ;;  %v7288_v19 = vpop.permute.xlu0 %5942 }
  0xab   :  { %5119 = vmatprep.subr.bf16.mxu1 %v6778_v37  ;;  %v6839_v27 = vpack.c.bf16 %v763_v5, %v762_v53  ;;  %v821_v53 = vsel %vm126_vm1, %v5910_v39, %v5914_v52  ;;  %v6950_v5 = vpack.c.bf16 %v1085_v11, %v1084_v14  ;;  %v1104_v39 = vld [vmem:[%s8488_s2 + $0x1b0] sm:$0xff]  ;;  %v6970_v52 = vpack.c.bf16 %v1087_v32, %v1086_v10 }
  0xac   :  { %5153 = vmatpush3.bf16.msra.mxu0 %v6788_v38  ;;  %v6973_v17 = vpack.c.bf16 %v1105_v12, %v1104_v39  ;;  %v8503_v14 = vunpack.i.h.bf16 %v7036_v1  ;;  %v5939_v11 = vunpack.i.l.bf16 %v7036_v1  ;;  %v1169_v32 = vsel %vm126_vm1, %v5925_v40, %v5929_v13  ;;  %v1132_v12 = vld [vmem:[%s8488_s2 + $0x290] sm:$0xff]  ;;  %v1405_v13 = vld [vmem:[%s8488_s2 + $0x18] sm:$0xff] }
  0xad   :  { %5155 = vmatprep.subr.bf16.mxu0 %v6464_v35  ;;  %v746_v35 = vld [vmem:[%s8488_s2 + $0x160] sm:$0xff] }
  0xae   :  { %5121 = vmatpush3.bf16.msra.mxu1 %v6806_v33  ;;  %v6864_v50 = vpack.c.bf16 %v747_v45, %v746_v35  ;;  %v1089_v35 = vld [vmem:[%s8488_s2 + $0x138] sm:$0xff]  ;;  %v1074_v45 = vld [vmem:[%s8488_s2 + $0xc0] sm:$0xff] }
  0xaf   :  { %5123 = vmatprep.subr.bf16.mxu1 %v6809_v25 }
  0xb0   :  { %5157 = vmatpush3.bf16.msra.mxu0 %v6818_v41 }
  0xb1   :  { %5159 = vmatprep.subr.bf16.mxu0 %v6508_v63  ;;  %v1099_v63 = vld [vmem:[%s8488_s2 + $0x188] sm:$0xff] }
  0xb2   :  { %5125 = vmatpush3.bf16.msra.mxu1 %v6836_v24  ;;  %v6887_v26 = vpack.c.bf16 %v1099_v63, %v1098_v56  ;;  %v1081_v56 = vld [vmem:[%s8488_s2 + $0xf8] sm:$0xff]  ;;  %v1154_v63 = vpop.permute.xlu1 %1153 }
  0xb3   :  { %5127 = vmatprep.subr.bf16.mxu1 %v6839_v27  ;;  %v7039_v57 = vpack.c.bf16 %v1081_v56, %v1080_v4 }
  0xb4   :  { %5161 = vmatpush3.bf16.msra.mxu0 %v6848_v61 }
  0xb5   :  { %5163 = vmatprep.subr.bf16.mxu0 %v6541_v30  ;;  %v1100_v30 = vld [vmem:[%s8488_s2 + $0x190] sm:$0xff] }
  0xb6   :  { %5129 = vmatpush3.bf16.msra.mxu1 %v6864_v50  ;;  %v6918_v7 = vpack.c.bf16 %v1101_v29, %v1100_v30  ;;  %v1402_v29 = vld [vmem:[%s8488_s2] sm:$0xff] }
  0xb7   :  { %5131 = vmatprep.subr.bf16.mxu1 %v6875_v23 }
  0xb8   :  { %5165 = vmatpush3.bf16.msra.mxu0 %v6884_v54 }
  0xb9   :  { %5199 = vmatprep.subr.bf16.mxu0 %v6887_v26 }
  0xba   :  { %5133 = vmatpush3.bf16.msra.mxu1 %v6898_v22 }
  0xbb   :  { %1036 = vmatmul.mubr.f32.vlgmr.msra.gmra.mrb[8].mxu0 %v823_v44  ;;  %5167 = vmatprep.subr.bf16.mxu1 %v6467_v8  ;;  %v6953_v8 = vpack.c.bf16 %v1103_v36, %v1102_v34  ;;  %v1403_v44 = vld [vmem:[%s8488_s2 + $0x8] sm:$0xff]  ;;  %v1421_v34 = vld [vmem:[%s8488_s2 + $0x98] sm:$0xff]  ;;  %v7066_v36 = vpop.permute.xlu1 %5932 }
  0xbc   :  { %5201 = vmatpush3.bf16.msra.mxu0 %v6915_v55  ;;  %1313 = vmatprep.mubr.f32.mxu0 %v1170_v16  ;;  %v1420_v16 = vld [vmem:[%s8488_s2 + $0x90] sm:$0xff]  ;;  %v5935_v10 = vunpack.i.h.bf16 %v7066_v36  ;;  %v7084_v39 = vpack.c.bf16 %v1403_v44, %v1402_v29  ;;  %v5934_v40 = vunpack.i.l.bf16 %v7066_v36 }
  0xbd   :  { %966 = vmatmul.mubr.f32.vlgmr.msra.gmra.mrb[6].mxu1 %v821_v53  ;;  %5203 = vmatprep.subr.bf16.mxu0 %v6918_v7  ;;  %v1114_v53 = vld [vmem:[%s8488_s2 + $0x200] sm:$0xff]  ;;  %v1424_v44 = vld [vmem:[%s8488_s2 + $0xb0] sm:$0xff] }
  0xbe   :  { %5169 = vmatpush3.bf16.msra.mxu1 %v6495_v58  ;;  %1243 = vmatprep.mubr.f32.mxu1 %v1168_v21  ;;  %v1088_v58 = vld [vmem:[%s8488_s2 + $0x130] sm:$0xff] }
  0xbf   :  { %5171 = vmatprep.subr.bf16.mxu1 %v6514_v3  ;;  %v6984_v3 = vpack.c.bf16 %v1089_v35, %v1088_v58  ;;  %v1133_v58 = vld [vmem:[%s8488_s2 + $0x298] sm:$0xff]  ;;  %v7093_v35 = vpack.c.bf16 %v1421_v34, %v1420_v16 }
  0xc0   :  { %5205 = vmatpush3.bf16.msra.mxu0 %v6950_v5  ;;  %v7120_v4 = vpack.c.bf16 %v1133_v58, %v1132_v12  ;;  %v1425_v16 = vld [vmem:[%s8488_s2 + $0xb8] sm:$0xff] }
  0xc1   :  { %5207 = vmatprep.subr.bf16.mxu0 %v6953_v8  ;;  %v1137_v12 = vld [vmem:[%s8488_s2 + $0x2b8] sm:$0xff]  ;;  %v7177_v58 = vpack.c.bf16 %v1425_v16, %v1424_v44  ;;  %v1140_v16 = vld [vmem:[%s8488_s2 + $0x2d0] sm:$0xff] }
  0xc2   :  { %5173 = vmatpush3.bf16.msra.mxu1 %v6537_v28  ;;  %v6995_v28 = vpack.c.bf16 %v1075_v60, %v1074_v45  ;;  %v1404_v45 = vld [vmem:[%s8488_s2 + $0x10] sm:$0xff]  ;;  %v1520_v60 = vsel %vm126_vm1, %v5939_v11, %v8503_v14  ;;  %v5945_v14 = vunpack.i.h.bf16 %v7288_v19 }
  0xc3   :  { %5175 = vmatprep.subr.bf16.mxu1 %v6544_v31  ;;  %v1076_v31 = vld [vmem:[%s8488_s2 + $0xd0] sm:$0xff]  ;;  %v7132_v56 = vpack.c.bf16 %v1405_v13, %v1404_v45  ;;  %v1409_v13 = vld [vmem:[%s8488_s2 + $0x38] sm:$0xff] }
  0xc4   :  { %5209 = vmatpush3.bf16.msra.mxu0 %v6970_v52  ;;  %v1408_v45 = vld [vmem:[%s8488_s2 + $0x30] sm:$0xff] }
  0xc5   :  { %5211 = vmatprep.subr.bf16.mxu0 %v6973_v17 }
  0xc6   :  { %5177 = vmatpush3.bf16.msra.mxu1 %v6561_v43  ;;  %v7007_v43 = vpack.c.bf16 %v1077_v49, %v1076_v31  ;;  %v1167_v31 = vsel %vm126_vm1, %v1154_v63, %v5924_v51  ;;  %v1172_v51 = vsel %vm126_vm1, %v5934_v40, %v5935_v10  ;;  %v1134_v63 = vld [vmem:[%s8488_s2 + $0x2a0] sm:$0xff] }
  0xc7   :  { %5179 = vmatprep.subr.bf16.mxu1 %v6565_v46  ;;  %v1078_v46 = vld [vmem:[%s8488_s2 + $0xe0] sm:$0xff] }
  0xc8   :  { %5213 = vmatpush3.bf16.msra.mxu0 %v6984_v3 }
  0xc9   :  { %5215 = vmatprep.subr.bf16.mxu0 %v6778_v37 }
  0xca   :  { %5181 = vmatpush3.bf16.msra.mxu1 %v6579_v59  ;;  %v7019_v59 = vpack.c.bf16 %v1079_v20, %v1078_v46  ;;  %v1422_v46 = vld [vmem:[%s8488_s2 + $0xa0] sm:$0xff]  ;;  %v1423_v20 = vld [vmem:[%s8488_s2 + $0xa8] sm:$0xff] }
  0xcb   :  { %5183 = vmatprep.subr.bf16.mxu1 %v6995_v28 }
  0xcc   :  { %5217 = vmatpush3.bf16.msra.mxu0 %v6806_v33 }
  0xcd   :  { %5219 = vmatprep.subr.bf16.mxu0 %v6809_v25 }
  0xce   :  { %5185 = vmatpush3.bf16.msra.mxu1 %v6591_v0  ;;  %v1418_v0 = vld [vmem:[%s8488_s2 + $0x80] sm:$0xff] }
  0xcf   :  { %5187 = vmatprep.subr.bf16.mxu1 %v7007_v43  ;;  %v7049_v30 = vpack.c.bf16 %v1419_v48, %v1418_v0  ;;  %v1135_v0 = vld [vmem:[%s8488_s2 + $0x2a8] sm:$0xff]  ;;  %v7141_v48 = vpack.c.bf16 %v1423_v20, %v1422_v46  ;;  %v1120_v46 = vld [vmem:[%s8488_s2 + $0x230] sm:$0xff]  ;;  %v1121_v20 = vld [vmem:[%s8488_s2 + $0x238] sm:$0xff] }
  0xd0   :  { %5221 = vmatpush3.bf16.msra.mxu0 %v6836_v24  ;;  %v7159_v34 = vpack.c.bf16 %v1135_v0, %v1134_v63  ;;  %v1410_v63 = vld [vmem:[%s8488_s2 + $0x40] sm:$0xff]  ;;  %v1411_v0 = vld [vmem:[%s8488_s2 + $0x48] sm:$0xff] }
  0xd1   :  { %5223 = vmatprep.subr.bf16.mxu0 %v6839_v27  ;;  %v7220_v44 = vpack.c.bf16 %v1411_v0, %v1410_v63 }
  0xd2   :  { %5189 = vmatpush3.bf16.msra.mxu1 %v6603_v15  ;;  %v1130_v15 = vld [vmem:[%s8488_s2 + $0x280] sm:$0xff] }
  0xd3   :  { %5191 = vmatprep.subr.bf16.mxu1 %v7019_v59  ;;  %v7069_v21 = vpack.c.bf16 %v1131_v6, %v1130_v15  ;;  %v1406_v15 = vld [vmem:[%s8488_s2 + $0x20] sm:$0xff]  ;;  %v1407_v6 = vld [vmem:[%s8488_s2 + $0x28] sm:$0xff] }
  0xd4   :  { %5225 = vmatpush3.bf16.msra.mxu0 %v6864_v50  ;;  %v7168_v10 = vpack.c.bf16 %v1407_v6, %v1406_v15  ;;  %v7214_v15 = vpack.c.bf16 %v1121_v20, %v1120_v46  ;;  %v1143_v46 = vld [vmem:[%s8488_s2 + $0x2e8] sm:$0xff]  ;;  %v1414_v20 = vld [vmem:[%s8488_s2 + $0x60] sm:$0xff] }
  0xd5   :  { %5227 = vmatprep.subr.bf16.mxu0 %v6875_v23  ;;  %8506 = vst [vmem:[#allocation7_spill] sm:$0xff] %v7069_v21 }
  0xd6   :  { %5193 = vmatpush3.bf16.msra.mxu1 %v6617_v2  ;;  %v1115_v2 = vld [vmem:[%s8488_s2 + $0x208] sm:$0xff] }
  0xd7   :  { %5195 = vmatprep.subr.bf16.mxu1 %v7039_v57  ;;  %v7111_v49 = vpack.c.bf16 %v1115_v2, %v1114_v53  ;;  %v1118_v53 = vld [vmem:[%s8488_s2 + $0x220] sm:$0xff]  ;;  %v1119_v2 = vld [vmem:[%s8488_s2 + $0x228] sm:$0xff] }
  0xd8   :  { %5229 = vmatpush3.bf16.msra.mxu0 %v6898_v22 }
  0xd9   :  { %5263 = vmatprep.subr.bf16.mxu0 %v7049_v30 }
  0xda   :  { %5197 = vmatpush3.bf16.msra.mxu1 %v6634_v42  ;;  %v1116_v42 = vld [vmem:[%s8488_s2 + $0x210] sm:$0xff] }
  0xdb   :  { %1314 = vmatmul.mubr.f32.vlgmr.msra.gmra.mrb[10].mxu0 %v1169_v32  ;;  %5231 = vmatprep.subr.bf16.mxu1 %v7069_v21  ;;  %v7150_v29 = vpack.c.bf16 %v1117_v18, %v1116_v42  ;;  %v1136_v32 = vld [vmem:[%s8488_s2 + $0x2b0] sm:$0xff]  ;;  %v7198_v42 = vpack.c.bf16 %v1409_v13, %v1408_v45  ;;  %v1138_v18 = vld [vmem:[%s8488_s2 + $0x2c0] sm:$0xff] }
  0xdc   :  { %5265 = vmatpush3.bf16.msra.mxu0 %v7084_v39  ;;  %1595 = vmatprep.mubr.f32.mxu0 %v1520_v60  ;;  %v7186_v60 = vpack.c.bf16 %v1119_v2, %v1118_v53  ;;  %v1141_v53 = vld [vmem:[%s8488_s2 + $0x2d8] sm:$0xff]  ;;  %v1412_v2 = vld [vmem:[%s8488_s2 + $0x50] sm:$0xff]  ;;  %v1142_v13 = vld [vmem:[%s8488_s2 + $0x2e0] sm:$0xff] }
  0xdd   :  { %1244 = vmatmul.mubr.f32.vlgmr.msra.gmra.mrb[8].mxu1 %v1167_v31  ;;  %5267 = vmatprep.subr.bf16.mxu0 %v7093_v35  ;;  %v7189_v31 = vpack.c.bf16 %v1137_v12, %v1136_v32  ;;  %v1413_v32 = vld [vmem:[%s8488_s2 + $0x58] sm:$0xff]  ;;  %v7237_v12 = vpack.c.bf16 %v1141_v53, %v1140_v16  ;;  %v7257_v63 = vpack.c.bf16 %v1143_v46, %v1142_v13  ;;  %v1144_v16 = vld [vmem:[%s8488_s2 + $0x2f0] sm:$0xff] }
  0xde   :  { %5233 = vmatpush3.bf16.msra.mxu1 %v7111_v49  ;;  %1383 = vmatprep.mubr.f32.mxu1 %v1172_v51  ;;  %v1139_v51 = vld [vmem:[%s8488_s2 + $0x2c8] sm:$0xff]  ;;  %v7240_v45 = vpack.c.bf16 %v1413_v32, %v1412_v2  ;;  %v1145_v53 = vld [vmem:[%s8488_s2 + $0x2f8] sm:$0xff]  ;;  %v1416_v2 = vld [vmem:[%s8488_s2 + $0x70] sm:$0xff] }
  0xdf   :  { %5235 = vmatprep.subr.bf16.mxu1 %v7120_v4  ;;  %v7217_v6 = vpack.c.bf16 %v1139_v51, %v1138_v18  ;;  %v1415_v18 = vld [vmem:[%s8488_s2 + $0x68] sm:$0xff]  ;;  %v1506_v51 = vpop.permute.xlu1 %1505  ;;  %v1417_v32 = vld [vmem:[%s8488_s2 + $0x78] sm:$0xff]  ;;  %v7279_v46 = vpack.c.bf16 %v1145_v53, %v1144_v16  ;;  %v5944_v53 = vunpack.i.l.bf16 %v7288_v19  ;;  %v1806_v19 = vld [vmem:[%s8488_s2 + $0x1c0] sm:$0xff] }
  0xe0   :  { %5269 = vmatpush3.bf16.msra.mxu0 %v7132_v56  ;;  %v7260_v0 = vpack.c.bf16 %v1415_v18, %v1414_v20  ;;  %v7282_v20 = vpack.c.bf16 %v1417_v32, %v1416_v2  ;;  %v1519_v16 = vsel %vm126_vm1, %v1506_v51, %v5939_v11 }
  0xe1   :  { %5271 = vmatprep.subr.bf16.mxu0 %v7141_v48  ;;  %v1522_v11 = vsel %vm126_vm1, %v5944_v53, %v5945_v14 }
  0xe2   :  { %5237 = vmatpush3.bf16.msra.mxu1 %v7150_v29 }
  0xe3   :  { %5239 = vmatprep.subr.bf16.mxu1 %v7159_v34  ;;  %v7276_v13 = vpop.permute.xlu1 %5947 }
  0xe4   :  { %5273 = vmatpush3.bf16.msra.mxu0 %v7168_v10  ;;  %v5950_v18 = vunpack.i.h.bf16 %v7276_v13  ;;  %v5949_v47 = vunpack.i.l.bf16 %v7276_v13 }
  0xe5   :  { %5275 = vmatprep.subr.bf16.mxu0 %v7177_v58 }
  0xe6   :  { %5241 = vmatpush3.bf16.msra.mxu1 %v7186_v60  ;;  %v1524_v2 = vsel %vm126_vm1, %v5949_v47, %v5950_v18 }
  0xe7   :  { %5243 = vmatprep.subr.bf16.mxu1 %v7189_v31 }
  0xe8   :  { %5277 = vmatpush3.bf16.msra.mxu0 %v7198_v42 }
  0xe9   :  { %5279 = vmatprep.subr.bf16.mxu0 %v6995_v28 }
  0xea   :  { %5245 = vmatpush3.bf16.msra.mxu1 %v7214_v15 }
  0xeb   :  { %5247 = vmatprep.subr.bf16.mxu1 %v7217_v6 }
  0xec   :  { %5281 = vmatpush3.bf16.msra.mxu0 %v7220_v44 }
  0xed   :  { %5283 = vmatprep.subr.bf16.mxu0 %v7007_v43 }
  0xee   :  { %5249 = vmatpush3.bf16.msra.mxu1 %v6788_v38 }
  0xef   :  { %5251 = vmatprep.subr.bf16.mxu1 %v7237_v12 }
  0xf0   :  { %5285 = vmatpush3.bf16.msra.mxu0 %v7240_v45 }
  0xf1   :  { %5287 = vmatprep.subr.bf16.mxu0 %v7019_v59 }
  0xf2   :  { %5253 = vmatpush3.bf16.msra.mxu1 %v6818_v41 }
  0xf3   :  { %5255 = vmatprep.subr.bf16.mxu1 %v7257_v63 }
  0xf4   :  { %5289 = vmatpush3.bf16.msra.mxu0 %v7260_v0 }
  0xf5   :  { %5291 = vmatprep.subr.bf16.mxu0 %v7039_v57 }
  0xf6   :  { %5257 = vmatpush3.bf16.msra.mxu1 %v6848_v61 }
  0xf7   :  { %5259 = vmatprep.subr.bf16.mxu1 %v7279_v46 }
  0xf8   :  { %5293 = vmatpush3.bf16.msra.mxu0 %v7282_v20 }
  0xf9   :  { %5327 = vmatprep.subr.bf16.mxu0 %v7069_v21  ;;  %v3825_v32 = vpop.f32.mrb[0].mxu0  ;;  %v8507_v21 = vunpack.i.h.bf16 %v6872_v62 }
  0xfa   :  { %5261 = vmatpush3.bf16.msra.mxu1 %v6884_v54  ;;  %v3826_v9 = vpop.f32.mrb[1].mxu0 }
  0xfb   :  { %1596 = vmatmul.mubr.f32.vlgmr.msra.gmra.mrb[12].mxu0 %v1519_v16  ;;  %5295 = vmatprep.subr.bf16.mxu1 %v6887_v26  ;;  %v3827_v51 = vadd.f32 %v3826_v9, %v3825_v32  ;;  %v1171_v18 = vsel %vm126_vm1, %v8507_v21, %v5934_v40  ;;  %v7318_v16 = vld [vmem:[%s8489_s3] ss:$0 sm:$0xff] }
  0xfc   :  { %5329 = vmatpush3.bf16.msra.mxu0 %v7111_v49  ;;  %1735 = vmatprep.mubr.f32.mxu0 %v1524_v2 }
  0xfd   :  { %1384 = vmatmul.mubr.f32.vlgmr.msra.gmra.mrb[10].mxu1 %v1171_v18  ;;  %5331 = vmatprep.subr.bf16.mxu0 %v7120_v4  ;;  %v197_v62 = vadd.f32 %v3827_v51, %v7318_v16  ;;  %v7336_v18 = vpop.permute.xlu0 %5952 }
  0xfe   :  { %5297 = vmatpush3.bf16.msra.mxu1 %v6915_v55  ;;  %1665 = vmatprep.mubr.f32.mxu1 %v1522_v11 }
  0xff   :  { %5299 = vmatprep.subr.bf16.mxu1 %v6918_v7 }
 0x100   :  { %5333 = vmatpush3.bf16.msra.mxu0 %v7150_v29  ;;  %v3860_v9 = vpop.f32.mrb[0].mxu1 }
 0x101   :  { %5335 = vmatprep.subr.bf16.mxu0 %v7159_v34  ;;  %v3861_v36 = vpop.f32.mrb[1].mxu1 }
 0x102   :  { %5301 = vmatpush3.bf16.msra.mxu1 %v6950_v5  ;;  %v3862_v21 = vadd.f32 %v3861_v36, %v3860_v9  ;;  %v1813_v9 = vld [vmem:[%s8488_s2 + $0x1f8] sm:$0xff] }
 0x103   :  { %5303 = vmatprep.subr.bf16.mxu1 %v6953_v8 }
 0x104   :  { %5337 = vmatpush3.bf16.msra.mxu0 %v7186_v60  ;;  %v267_v40 = vadd.f32 %v3862_v21, %v197_v62  ;;  %v1795_v62 = vld [vmem:[%s8488_s2 + $0x168] sm:$0xff] }
 0x105   :  { %5339 = vmatprep.subr.bf16.mxu0 %v7189_v31 }
 0x106   :  { %5305 = vmatpush3.bf16.msra.mxu1 %v6970_v52 }
 0x107   :  { %5307 = vmatprep.subr.bf16.mxu1 %v6973_v17 }
 0x108   :  { %5341 = vmatpush3.bf16.msra.mxu0 %v7214_v15 }
 0x109   :  { %5343 = vmatprep.subr.bf16.mxu0 %v7217_v6  ;;  %v336_v2 = vpop.f32.mrb[2].mxu0 }
 0x10a   :  { %5309 = vmatpush3.bf16.msra.mxu1 %v6984_v3  ;;  %v337_v32 = vadd.f32 %v336_v2, %v267_v40  ;;  %v4784_v11 = vpop.f32.mrb[3].mxu0  ;;  %v1796_v40 = vld [vmem:[%s8488_s2 + $0x170] sm:$0xff]  ;;  %v1797_v2 = vld [vmem:[%s8488_s2 + $0x178] sm:$0xff] }
 0x10b   :  { %5311 = vmatprep.subr.bf16.mxu1 %v6778_v37  ;;  %v7345_v37 = vpop.permute.xlu0 %5957  ;;  %v7469_v11 = vpack.c.bf16 %v1797_v2, %v1796_v40  ;;  %v2166_v2 = vld [vmem:[%s8488_s2 + $0x200] sm:$0xff] }
 0x10c   :  { %5345 = vmatpush3.bf16.msra.mxu0 %v6788_v38  ;;  %v340_v51 = vmax.f32 %v337_v32, 0.0  ;;  %v5960_v38 = vunpack.i.h.bf16 %v7345_v37  ;;  %v1854_v32 = vpop.permute.xlu1 %1853 }
 0x10d   :  { %5347 = vmatprep.subr.bf16.mxu0 %v7237_v12 }
 0x10e   :  { %5313 = vmatpush3.bf16.msra.mxu1 %v6806_v33  ;;  %341 = vst.msk [vmem:[#allocation2] sm:$0xff] %vm126_vm1, %v340_v51  ;;  %v5959_v33 = vunpack.i.l.bf16 %v7345_v37  ;;  %v2170_v37 = vld [vmem:[%s8488_s2 + $0x220] sm:$0xff] }
 0x10f   :  { %5315 = vmatprep.subr.bf16.mxu1 %v6809_v25  ;;  %v5955_v25 = vunpack.i.h.bf16 %v7336_v18 }
 0x110   :  { %5349 = vmatpush3.bf16.msra.mxu0 %v6818_v41  ;;  %v5954_v41 = vunpack.i.l.bf16 %v7336_v18  ;;  %v2126_v18 = vld [vmem:[%s8488_s2 + $0xc0] sm:$0xff] }
 0x111   :  { %5351 = vmatprep.subr.bf16.mxu0 %v7257_v63 }
 0x112   :  { %5317 = vmatpush3.bf16.msra.mxu1 %v6836_v24  ;;  %v1523_v24 = vsel %vm126_vm1, %v5945_v14, %v5949_v47  ;;  %v8508_v47 = vunpack.i.h.bf16 %v7036_v1  ;;  %v1811_v1 = vld [vmem:[%s8488_s2 + $0x1e8] sm:$0xff] }
 0x113   :  { %5319 = vmatprep.subr.bf16.mxu1 %v6839_v27  ;;  %v1870_v27 = vsel %vm126_vm1, %v5959_v33, %v5960_v38 }
 0x114   :  { %5353 = vmatpush3.bf16.msra.mxu0 %v6848_v61  ;;  %v1868_v61 = vsel %vm126_vm1, %v5954_v41, %v5955_v25 }
 0x115   :  { %5355 = vmatprep.subr.bf16.mxu0 %v7279_v46 }
 0x116   :  { %5321 = vmatpush3.bf16.msra.mxu1 %v6864_v50  ;;  %v1521_v50 = vsel %vm126_vm1, %v8508_v47, %v5944_v53  ;;  %v1794_v53 = vld [vmem:[%s8488_s2 + $0x160] sm:$0xff] }
 0x117   :  { %5323 = vmatprep.subr.bf16.mxu1 %v6875_v23  ;;  %v1807_v23 = vld [vmem:[%s8488_s2 + $0x1c8] sm:$0xff]  ;;  %v7453_v36 = vpack.c.bf16 %v1795_v62, %v1794_v53  ;;  %v1829_v62 = vld [vmem:[%s8488_s2 + $0x278] sm:$0xff] }
 0x118   :  { %5357 = vmatpush3.bf16.msra.mxu0 %v6884_v54  ;;  %v7396_v54 = vpack.c.bf16 %v1807_v23, %v1806_v19  ;;  %v8509_v19 = vld [vmem:[#allocation7_spill] sm:$0xff] }
 0x119   :  { %5391 = vmatprep.subr.bf16.mxu0 %v6887_v26  ;;  %v1790_v26 = vld [vmem:[%s8488_s2 + $0x140] sm:$0xff] }
 0x11a   :  { %5325 = vmatpush3.bf16.msra.mxu1 %v6898_v22  ;;  %v1791_v22 = vld [vmem:[%s8488_s2 + $0x148] sm:$0xff] }
 0x11b   :  { %1736 = vmatmul.mubr.f32.vlgmr.msra.gmra.mrb[14].mxu0 %v1523_v24  ;;  %5359 = vmatprep.subr.bf16.mxu1 %v7049_v30 }
 0x11c   :  { %5393 = vmatpush3.bf16.msra.mxu0 %v6915_v55  ;;  %2013 = vmatprep.mubr.f32.mxu0 %v1870_v27  ;;  %v1808_v55 = vld [vmem:[%s8488_s2 + $0x1d0] sm:$0xff]  ;;  %v7475_v27 = vpop.permute.xlu1 %5962 }
 0x11d   :  { %1666 = vmatmul.mubr.f32.vlgmr.msra.gmra.mrb[12].mxu1 %v1521_v50  ;;  %5395 = vmatprep.subr.bf16.mxu0 %v6918_v7  ;;  %v1809_v7 = vld [vmem:[%s8488_s2 + $0x1d8] sm:$0xff]  ;;  %v5964_v47 = vunpack.i.l.bf16 %v7475_v27  ;;  %v1867_v50 = vsel %vm126_vm1, %v1854_v32, %v5954_v41  ;;  %v2167_v32 = vld [vmem:[%s8488_s2 + $0x208] sm:$0xff] }
 0x11e   :  { %5361 = vmatpush3.bf16.msra.mxu1 %v7084_v39  ;;  %1943 = vmatprep.mubr.f32.mxu1 %v1868_v61  ;;  %v5965_v61 = vunpack.i.h.bf16 %v7475_v27 }
 0x11f   :  { %5363 = vmatprep.subr.bf16.mxu1 %v7093_v35 }
 0x120   :  { %5397 = vmatpush3.bf16.msra.mxu0 %v6950_v5  ;;  %v7413_v5 = vpack.c.bf16 %v1791_v22, %v1790_v26  ;;  %v2206_v41 = vpop.permute.xlu1 %2205  ;;  %v1827_v26 = vld [vmem:[%s8488_s2 + $0x268] sm:$0xff] }
 0x121   :  { %5399 = vmatprep.subr.bf16.mxu0 %v6953_v8  ;;  %v7416_v8 = vpack.c.bf16 %v1809_v7, %v1808_v55 }
 0x122   :  { %5365 = vmatpush3.bf16.msra.mxu1 %v7132_v56 }
 0x123   :  { %5367 = vmatprep.subr.bf16.mxu1 %v7141_v48 }
 0x124   :  { %5401 = vmatpush3.bf16.msra.mxu0 %v6970_v52  ;;  %v1792_v52 = vld [vmem:[%s8488_s2 + $0x150] sm:$0xff]  ;;  %v7585_v53 = vpop.permute.xlu1 %5977 }
 0x125   :  { %5403 = vmatprep.subr.bf16.mxu0 %v6973_v17  ;;  %v1793_v17 = vld [vmem:[%s8488_s2 + $0x158] sm:$0xff] }
 0x126   :  { %5369 = vmatpush3.bf16.msra.mxu1 %v7168_v10  ;;  %v7433_v14 = vpack.c.bf16 %v1793_v17, %v1792_v52 }
 0x127   :  { %5371 = vmatprep.subr.bf16.mxu1 %v7177_v58 }
 0x128   :  { %5405 = vmatpush3.bf16.msra.mxu0 %v6984_v3  ;;  %v1810_v3 = vld [vmem:[%s8488_s2 + $0x1e0] sm:$0xff] }
 0x129   :  { %5407 = vmatprep.subr.bf16.mxu0 %v7396_v54  ;;  %v7436_v13 = vpack.c.bf16 %v1811_v1, %v1810_v3  ;;  %v2182_v3 = vld [vmem:[%s8488_s2 + $0x280] sm:$0xff]  ;;  %v2183_v1 = vld [vmem:[%s8488_s2 + $0x288] sm:$0xff] }
 0x12a   :  { %5373 = vmatpush3.bf16.msra.mxu1 %v7198_v42  ;;  %v5518_v40 = vpack.c.bf16 %v2183_v1, %v2182_v3  ;;  %v2188_v3 = vld [vmem:[%s8488_s2 + $0x2b0] sm:$0xff]  ;;  %v2189_v1 = vld [vmem:[%s8488_s2 + $0x2b8] sm:$0xff] }
 0x12b   :  { %5375 = vmatprep.subr.bf16.mxu1 %v6995_v28  ;;  %v1812_v28 = vld [vmem:[%s8488_s2 + $0x1f0] sm:$0xff] }
 0x12c   :  { %5409 = vmatpush3.bf16.msra.mxu0 %v7413_v5  ;;  %v7456_v21 = vpack.c.bf16 %v1813_v9, %v1812_v28  ;;  %v2150_v9 = vld [vmem:[%s8488_s2 + $0x180] sm:$0xff] }
 0x12d   :  { %5411 = vmatprep.subr.bf16.mxu0 %v7416_v8 }
 0x12e   :  { %5377 = vmatpush3.bf16.msra.mxu1 %v7220_v44 }
 0x12f   :  { %5379 = vmatprep.subr.bf16.mxu1 %v7007_v43  ;;  %v7465_v43 = vpop.permute.xlu0 %5967 }
 0x130   :  { %5413 = vmatpush3.bf16.msra.mxu0 %v7433_v14  ;;  %v5970_v51 = vunpack.i.h.bf16 %v7465_v43  ;;  %v5969_v24 = vunpack.i.l.bf16 %v7465_v43 }
 0x131   :  { %5415 = vmatprep.subr.bf16.mxu0 %v7436_v13 }
 0x132   :  { %5381 = vmatpush3.bf16.msra.mxu1 %v7240_v45 }
 0x133   :  { %5383 = vmatprep.subr.bf16.mxu1 %v7019_v59  ;;  %v1869_v59 = vsel %vm126_vm1, %v5955_v25, %v5959_v33  ;;  %v2133_v25 = vld [vmem:[%s8488_s2 + $0xf8] sm:$0xff] }
 0x134   :  { %5417 = vmatpush3.bf16.msra.mxu0 %v7453_v36 }
 0x135   :  { %5419 = vmatprep.subr.bf16.mxu0 %v7456_v21 }
 0x136   :  { %5385 = vmatpush3.bf16.msra.mxu1 %v7260_v0 }
 0x137   :  { %5387 = vmatprep.subr.bf16.mxu1 %v7039_v57  ;;  %v2220_v57 = vsel %vm126_vm1, %v5969_v24, %v5970_v51 }
 0x138   :  { %5421 = vmatpush3.bf16.msra.mxu0 %v7469_v11 }
 0x139   :  { %5455 = vmatprep.subr.bf16.mxu0 %v7049_v30  ;;  %v1872_v30 = vsel %vm126_vm1, %v5964_v47, %v5965_v61  ;;  %v5979_v61 = vunpack.i.l.bf16 %v7585_v53 }
 0x13a   :  { %5389 = vmatpush3.bf16.msra.mxu1 %v7282_v20 }
 0x13b   :  { %2014 = vmatmul.mubr.f32.vlgmr.msra.gmra.mrb[16].mxu0 %v1869_v59  ;;  %5423 = vmatprep.subr.bf16.mxu1 %v8509_v19  ;;  %v7620_v19 = vpop.permute.xlu0 %5972 }
 0x13c   :  { %5457 = vmatpush3.bf16.msra.mxu0 %v7084_v39  ;;  %2295 = vmatprep.mubr.f32.mxu0 %v2220_v57  ;;  %v2127_v39 = vld [vmem:[%s8488_s2 + $0xc8] sm:$0xff]  ;;  %v2184_v57 = vld [vmem:[%s8488_s2 + $0x290] sm:$0xff] }
 0x13d   :  { %1944 = vmatmul.mubr.f32.vlgmr.msra.gmra.mrb[14].mxu1 %v1867_v50  ;;  %5459 = vmatprep.subr.bf16.mxu0 %v7093_v35  ;;  %v7516_v35 = vpack.c.bf16 %v2127_v39, %v2126_v18  ;;  %v2185_v50 = vld [vmem:[%s8488_s2 + $0x298] sm:$0xff]  ;;  %v2134_v39 = vld [vmem:[%s8488_s2 + $0x100] sm:$0xff] }
 0x13e   :  { %5425 = vmatpush3.bf16.msra.mxu1 %v7111_v49  ;;  %2083 = vmatprep.mubr.f32.mxu1 %v1872_v30  ;;  %v2128_v49 = vld [vmem:[%s8488_s2 + $0xd0] sm:$0xff] }
 0x13f   :  { %5427 = vmatprep.subr.bf16.mxu1 %v7120_v4  ;;  %v2129_v4 = vld [vmem:[%s8488_s2 + $0xd8] sm:$0xff] }
 0x140   :  { %5461 = vmatpush3.bf16.msra.mxu0 %v7132_v56  ;;  %v1822_v56 = vld [vmem:[%s8488_s2 + $0x240] sm:$0xff] }
 0x141   :  { %5463 = vmatprep.subr.bf16.mxu0 %v7141_v48  ;;  %v1823_v48 = vld [vmem:[%s8488_s2 + $0x248] sm:$0xff] }
 0x142   :  { %5429 = vmatpush3.bf16.msra.mxu1 %v7150_v29  ;;  %v7534_v29 = vpack.c.bf16 %v2129_v4, %v2128_v49  ;;  %v2135_v49 = vld [vmem:[%s8488_s2 + $0x108] sm:$0xff]  ;;  %v5975_v4 = vunpack.i.h.bf16 %v7620_v19 }
 0x143   :  { %5431 = vmatprep.subr.bf16.mxu1 %v7159_v34  ;;  %v7537_v34 = vpack.c.bf16 %v1823_v48, %v1822_v56  ;;  %v2219_v56 = vsel %vm126_vm1, %v2206_v41, %v5969_v24  ;;  %v7638_v48 = vpack.c.bf16 %v2167_v32, %v2166_v2  ;;  %v2169_v24 = vld [vmem:[%s8488_s2 + $0x218] sm:$0xff]  ;;  %v5530_v2 = vpack.c.bf16 %v2189_v1, %v2188_v3  ;;  %v2172_v32 = vld [vmem:[%s8488_s2 + $0x230] sm:$0xff] }
 0x144   :  { %5465 = vmatpush3.bf16.msra.mxu0 %v7168_v10  ;;  %v2130_v10 = vld [vmem:[%s8488_s2 + $0xe0] sm:$0xff] }
 0x145   :  { %5467 = vmatprep.subr.bf16.mxu0 %v7177_v58  ;;  %v2131_v58 = vld [vmem:[%s8488_s2 + $0xe8] sm:$0xff] }
 0x146   :  { %5433 = vmatpush3.bf16.msra.mxu1 %v7186_v60  ;;  %v1824_v60 = vld [vmem:[%s8488_s2 + $0x250] sm:$0xff] }
 0x147   :  { %5435 = vmatprep.subr.bf16.mxu1 %v7189_v31  ;;  %v1825_v31 = vld [vmem:[%s8488_s2 + $0x258] sm:$0xff] }
 0x148   :  { %5469 = vmatpush3.bf16.msra.mxu0 %v7198_v42  ;;  %v7554_v42 = vpack.c.bf16 %v2131_v58, %v2130_v10  ;;  %v7557_v33 = vpack.c.bf16 %v1825_v31, %v1824_v60  ;;  %v2153_v10 = vld [vmem:[%s8488_s2 + $0x198] sm:$0xff]  ;;  %v5522_v58 = vpack.c.bf16 %v2185_v50, %v2184_v57  ;;  %v5974_v60 = vunpack.i.l.bf16 %v7620_v19  ;;  %v2190_v50 = vld [vmem:[%s8488_s2 + $0x2c0] sm:$0xff] }
 0x149   :  { %5471 = vmatprep.subr.bf16.mxu0 %v7516_v35 }
 0x14a   :  { %5437 = vmatpush3.bf16.msra.mxu1 %v7214_v15 }
 0x14b   :  { %5439 = vmatprep.subr.bf16.mxu1 %v7217_v6  ;;  %v2132_v6 = vld [vmem:[%s8488_s2 + $0xf0] sm:$0xff] }
 0x14c   :  { %5473 = vmatpush3.bf16.msra.mxu0 %v7220_v44  ;;  %v1826_v44 = vld [vmem:[%s8488_s2 + $0x260] sm:$0xff]  ;;  %v7574_v52 = vpack.c.bf16 %v2133_v25, %v2132_v6  ;;  %v2187_v25 = vld [vmem:[%s8488_s2 + $0x2a8] sm:$0xff] }
 0x14d   :  { %5475 = vmatprep.subr.bf16.mxu0 %v7534_v29  ;;  %v2186_v6 = vld [vmem:[%s8488_s2 + $0x2a0] sm:$0xff] }
 0x14e   :  { %5441 = vmatpush3.bf16.msra.mxu1 %v7537_v34  ;;  %v3939_v15 = vpop.f32.mrb[4].mxu0  ;;  %v5526_v27 = vpack.c.bf16 %v2187_v25, %v2186_v6  ;;  %v2194_v25 = vld [vmem:[%s8488_s2 + $0x2e0] sm:$0xff] }
 0x14f   :  { %v3940_v23 = vpop.f32.mrb[5].mxu0  ;;  %5443 = vmatprep.subr.bf16.mxu1 %v7237_v12  ;;  %v7577_v12 = vpack.c.bf16 %v1827_v26, %v1826_v44  ;;  %v2137_v44 = vld [vmem:[%s8488_s2 + $0x118] sm:$0xff]  ;;  %v2222_v26 = vsel %vm126_vm1, %v5974_v60, %v5975_v4 }
 0x150   :  { %v3904_v22 = vpop.f32.mrb[2].mxu1  ;;  %v3941_v55 = vadd.f32 %v3940_v23, %v3939_v15  ;;  %5477 = vmatpush3.bf16.msra.mxu0 %v7240_v45  ;;  %v1828_v45 = vld [vmem:[%s8488_s2 + $0x270] sm:$0xff]  ;;  %v7657_v15 = vpack.c.bf16 %v2135_v49, %v2134_v39  ;;  %v2191_v39 = vld [vmem:[%s8488_s2 + $0x2c8] sm:$0xff] }
 0x151   :  { %v3905_v7 = vpop.f32.mrb[3].mxu1  ;;  %5479 = vmatprep.subr.bf16.mxu0 %v7554_v42  ;;  %v7612_v59 = vpack.c.bf16 %v1829_v62, %v1828_v45  ;;  %v2136_v23 = vld [vmem:[%s8488_s2 + $0x110] sm:$0xff]  ;;  %v2138_v62 = vld [vmem:[%s8488_s2 + $0x120] sm:$0xff] }
 0x152   :  { %v3906_v17 = vadd.f32 %v3905_v7, %v3904_v22  ;;  %5445 = vmatpush3.bf16.msra.mxu1 %v7557_v33  ;;  %v1871_v22 = vsel %vm126_vm1, %v5960_v38, %v5964_v47  ;;  %v2154_v7 = vld [vmem:[%s8488_s2 + $0x1a0] sm:$0xff]  ;;  %v2171_v38 = vld [vmem:[%s8488_s2 + $0x228] sm:$0xff]  ;;  %v7700_v47 = vpack.c.bf16 %v2137_v44, %v2136_v23 }
 0x153   :  { %5447 = vmatprep.subr.bf16.mxu1 %v7257_v63  ;;  %v2151_v63 = vld [vmem:[%s8488_s2 + $0x188] sm:$0xff] }
 0x154   :  { %v545_v28 = vadd.f32 %v3906_v17, %v7318_v16  ;;  %5481 = vmatpush3.bf16.msra.mxu0 %v7260_v0  ;;  %v5980_v0 = vunpack.i.h.bf16 %v7585_v53  ;;  %v7625_v18 = vpack.c.bf16 %v2151_v63, %v2150_v9  ;;  %v2155_v17 = vld [vmem:[%s8488_s2 + $0x1a8] sm:$0xff]  ;;  %v7718_v9 = vpack.c.bf16 %v2171_v38, %v2170_v37  ;;  %v2156_v63 = vld [vmem:[%s8488_s2 + $0x1b0] sm:$0xff]  ;;  %v7786_v38 = vpop.permute.xlu0 %5982 }
 0x155   :  { %5483 = vmatprep.subr.bf16.mxu0 %v7574_v52  ;;  %v7709_v45 = vpack.c.bf16 %v2155_v17, %v2154_v7  ;;  %v2195_v23 = vld [vmem:[%s8488_s2 + $0x2e8] sm:$0xff] }
 0x156   :  { %5449 = vmatpush3.bf16.msra.mxu1 %v7577_v12  ;;  %v7622_v30 = vadd.f32 %v3941_v55, %v545_v28  ;;  %v2224_v31 = vsel %vm126_vm1, %v5979_v61, %v5980_v0  ;;  %v2139_v28 = vld [vmem:[%s8488_s2 + $0x128] sm:$0xff]  ;;  %v2173_v0 = vld [vmem:[%s8488_s2 + $0x238] sm:$0xff]  ;;  %v5542_v44 = vpack.c.bf16 %v2195_v23, %v2194_v25 }
 0x157   :  { %5451 = vmatprep.subr.bf16.mxu1 %v7279_v46  ;;  %v2152_v46 = vld [vmem:[%s8488_s2 + $0x190] sm:$0xff]  ;;  %v7733_v57 = vpack.c.bf16 %v2139_v28, %v2138_v62  ;;  %v2469_v25 = vld [vmem:[%s8488_s2 + $0xa8] sm:$0xff] }
 0x158   :  { %5485 = vmatpush3.bf16.msra.mxu0 %v7282_v20  ;;  %v2168_v20 = vld [vmem:[%s8488_s2 + $0x210] sm:$0xff]  ;;  %v7666_v41 = vpack.c.bf16 %v2153_v10, %v2152_v46  ;;  %v2141_v46 = vld [vmem:[%s8488_s2 + $0x138] sm:$0xff]  ;;  %v7751_v10 = vpack.c.bf16 %v2173_v0, %v2172_v32  ;;  %v7801_v32 = vpop.permute.xlu0 %2531  ;;  %v2449_v0 = vld [vmem:[%s8488_s2 + $0x8] sm:$0xff] }
 0x159   :  { %5519 = vmatprep.subr.bf16.mxu0 %v5518_v40  ;;  %v7685_v55 = vpack.c.bf16 %v2169_v24, %v2168_v20  ;;  %v2157_v40 = vld [vmem:[%s8488_s2 + $0x1b8] sm:$0xff]  ;;  %v2192_v24 = vld [vmem:[%s8488_s2 + $0x2d0] sm:$0xff] }
 0x15a   :  { %5453 = vmatpush3.bf16.msra.mxu1 %v7612_v59  ;;  %v7742_v49 = vpack.c.bf16 %v2157_v40, %v2156_v63  ;;  %v2465_v63 = vld [vmem:[%s8488_s2 + $0x88] sm:$0xff] }
 0x15b   :  { %2296 = vmatmul.mubr.f32.vlgmr.msra.gmra.mrb[18].mxu0 %v2219_v56  ;;  %5487 = vmatprep.subr.bf16.mxu1 %v7625_v18  ;;  %v2140_v56 = vld [vmem:[%s8488_s2 + $0x130] sm:$0xff] }
 0x15c   :  { %5521 = vmatpush3.bf16.msra.mxu0 %v7638_v48  ;;  %2435 = vmatprep.mubr.f32.mxu0 %v2224_v31  ;;  %v7754_v20 = vpack.c.bf16 %v2141_v46, %v2140_v56  ;;  %v2193_v31 = vld [vmem:[%s8488_s2 + $0x2d8] sm:$0xff]  ;;  %v2223_v56 = vsel %vm126_vm1, %v5975_v4, %v5979_v61  ;;  %v2466_v46 = vld [vmem:[%s8488_s2 + $0x90] sm:$0xff] }
 0x15d   :  { %2084 = vmatmul.mubr.f32.vlgmr.msra.gmra.mrb[16].mxu1 %v1871_v22  ;;  %5523 = vmatprep.subr.bf16.mxu0 %v5522_v58  ;;  %v5534_v58 = vpack.c.bf16 %v2191_v39, %v2190_v50  ;;  %v5538_v6 = vpack.c.bf16 %v2193_v31, %v2192_v24  ;;  %v2197_v22 = vld [vmem:[%s8488_s2 + $0x2f8] sm:$0xff]  ;;  %v5985_v50 = vunpack.i.h.bf16 %v7786_v38  ;;  %v5984_v39 = vunpack.i.l.bf16 %v7786_v38  ;;  %v2450_v4 = vld [vmem:[%s8488_s2 + $0x10] sm:$0xff] }
 0x15e   :  { %5489 = vmatpush3.bf16.msra.mxu1 %v7657_v15  ;;  %2365 = vmatprep.mubr.f32.mxu1 %v2222_v26  ;;  %v2196_v26 = vld [vmem:[%s8488_s2 + $0x2f0] sm:$0xff]  ;;  %v2451_v24 = vld [vmem:[%s8488_s2 + $0x18] sm:$0xff]  ;;  %v2221_v31 = vsel %vm126_vm1, %v5970_v51, %v5974_v60  ;;  %v2452_v51 = vld [vmem:[%s8488_s2 + $0x20] sm:$0xff] }
 0x15f   :  { %5491 = vmatprep.subr.bf16.mxu1 %v7666_v41  ;;  %v5546_v1 = vpack.c.bf16 %v2197_v22, %v2196_v26  ;;  %v5556_v19 = vpack.c.bf16 %v2451_v24, %v2450_v4  ;;  %v2453_v60 = vld [vmem:[%s8488_s2 + $0x28] sm:$0xff]  ;;  %v2454_v26 = vld [vmem:[%s8488_s2 + $0x30] sm:$0xff]  ;;  %v2896_v4 = vld [vmem:[%s8490_s4 + $0x98] sm:$0xff] }
 0x160   :  { %5525 = vmatpush3.bf16.msra.mxu0 %v7685_v55  ;;  %v5560_v23 = vpack.c.bf16 %v2453_v60, %v2452_v51  ;;  %v2879_v24 = vld [vmem:[%s8490_s4 + $0x10] sm:$0xff]  ;;  %v2898_v60 = vld [vmem:[%s8490_s4 + $0xa8] sm:$0xff] }
 0x161   :  { %5527 = vmatprep.subr.bf16.mxu0 %v5526_v27  ;;  %v7781_v27 = vpop.permute.xlu1 %2525 }
 0x162   :  { %5493 = vmatpush3.bf16.msra.mxu1 %v7700_v47 }
 0x163   :  { %5495 = vmatprep.subr.bf16.mxu1 %v7709_v45 }
 0x164   :  { %5529 = vmatpush3.bf16.msra.mxu0 %v7718_v9 }
 0x165   :  { %5531 = vmatprep.subr.bf16.mxu0 %v5530_v2  ;;  %v7799_v2 = vpop.permute.xlu1 %2533 }
 0x166   :  { %5497 = vmatpush3.bf16.msra.mxu1 %v7733_v57 }
 0x167   :  { %5499 = vmatprep.subr.bf16.mxu1 %v7742_v49 }
 0x168   :  { %5533 = vmatpush3.bf16.msra.mxu0 %v7751_v10 }
 0x169   :  { %5535 = vmatprep.subr.bf16.mxu0 %v5534_v58  ;;  %v2467_v58 = vld [vmem:[%s8488_s2 + $0x98] sm:$0xff] }
 0x16a   :  { %5501 = vmatpush3.bf16.msra.mxu1 %v7754_v20  ;;  %v5554_v61 = vpack.c.bf16 %v2467_v58, %v2466_v46  ;;  %v2782_v58 = vld [vmem:[%s8490_s4 + $0x110] sm:$0xff] }
 0x16b   :  { %5503 = vmatprep.subr.bf16.mxu1 %v7396_v54 }
 0x16c   :  { %5537 = vmatpush3.bf16.msra.mxu0 %v7537_v34 }
 0x16d   :  { %5539 = vmatprep.subr.bf16.mxu0 %v5538_v6  ;;  %v2468_v6 = vld [vmem:[%s8488_s2 + $0xa0] sm:$0xff] }
 0x16e   :  { %5505 = vmatpush3.bf16.msra.mxu1 %v7413_v5  ;;  %v4009_v7 = vpop.f32.mrb[6].mxu0  ;;  %v5558_v43 = vpack.c.bf16 %v2469_v25, %v2468_v6  ;;  %v2784_v25 = vld [vmem:[%s8490_s4 + $0x120] sm:$0xff] }
 0x16f   :  { %5507 = vmatprep.subr.bf16.mxu1 %v7416_v8  ;;  %v4010_v17 = vpop.f32.mrb[7].mxu0 }
 0x170   :  { %v3974_v37 = vpop.f32.mrb[4].mxu1  ;;  %5541 = vmatpush3.bf16.msra.mxu0 %v7557_v33  ;;  %v7784_v34 = vadd.f32 %v4010_v17, %v4009_v7  ;;  %v2464_v33 = vld [vmem:[%s8488_s2 + $0x80] sm:$0xff]  ;;  %v2457_v7 = vld [vmem:[%s8488_s2 + $0x48] sm:$0xff] }
 0x171   :  { %v3975_v3 = vpop.f32.mrb[5].mxu1  ;;  %5543 = vmatprep.subr.bf16.mxu0 %v5542_v44 }
 0x172   :  { %v3976_v62 = vadd.f32 %v3975_v3, %v3974_v37  ;;  %5509 = vmatpush3.bf16.msra.mxu1 %v7433_v14  ;;  %v2461_v3 = vld [vmem:[%s8488_s2 + $0x68] sm:$0xff] }
 0x173   :  { %5511 = vmatprep.subr.bf16.mxu1 %v7436_v13 }
 0x174   :  { %v685_v28 = vadd.f32 %v3976_v62, %v7622_v30  ;;  %5545 = vmatpush3.bf16.msra.mxu0 %v7577_v12  ;;  %v5550_v30 = vpack.c.bf16 %v2465_v63, %v2464_v33  ;;  %v2448_v12 = vld [vmem:[%s8488_s2] sm:$0xff]  ;;  %v2462_v33 = vld [vmem:[%s8488_s2 + $0x70] sm:$0xff]  ;;  %v2463_v63 = vld [vmem:[%s8488_s2 + $0x78] sm:$0xff] }
 0x175   :  { %5547 = vmatprep.subr.bf16.mxu0 %v5546_v1  ;;  %v5552_v53 = vpack.c.bf16 %v2449_v0, %v2448_v12  ;;  %v2877_v0 = vld [vmem:[%s8490_s4] sm:$0xff] }
 0x176   :  { %v688_v40 = vmax.f32 %v685_v28, 0.0  ;;  %5513 = vmatpush3.bf16.msra.mxu1 %v7453_v36 }
 0x177   :  { %5515 = vmatprep.subr.bf16.mxu1 %v7456_v21 }
 0x178   :  { %690 = vrot.lane.b32.xlu1 %v688_v40, %s6011_s21  ;;  %5549 = vmatpush3.bf16.msra.mxu0 %v7612_v59  ;;  %v2538_v59 = vsel %vm126_vm1, %v7801_v32, %v7799_v2 }
 0x179   :  { %5583 = vmatprep.subr.bf16.mxu0 %v7625_v18  ;;  %v2536_v18 = vsel %vm126_vm1, %v5984_v39, %v5985_v50 }
 0x17a   :  { %5517 = vmatpush3.bf16.msra.mxu1 %v7469_v11 }
 0x17b   :  { %2436 = vmatmul.mubr.f32.vlgmr.msra.gmra.mrb[20].mxu0 %v2223_v56  ;;  %5551 = vmatprep.subr.bf16.mxu1 %v5550_v30 }
 0x17c   :  { %5585 = vmatpush3.bf16.msra.mxu0 %v7657_v15  ;;  %2679 = vmatprep.mubr.f32.mxu0 %v2538_v59  ;;  %v2470_v15 = vld [vmem:[%s8488_s2 + $0xb0] sm:$0xff]  ;;  %v2783_v59 = vld [vmem:[%s8490_s4 + $0x118] sm:$0xff] }
 0x17d   :  { %2366 = vmatmul.mubr.f32.vlgmr.msra.gmra.mrb[18].mxu1 %v2221_v31  ;;  %5587 = vmatprep.subr.bf16.mxu0 %v7666_v41  ;;  %v2471_v41 = vld [vmem:[%s8488_s2 + $0xb8] sm:$0xff] }
 0x17e   :  { %5553 = vmatpush3.bf16.msra.mxu1 %v5552_v53  ;;  %2609 = vmatprep.mubr.f32.mxu1 %v2536_v18  ;;  %v5562_v44 = vpack.c.bf16 %v2471_v41, %v2470_v15  ;;  %v2895_v53 = vld [vmem:[%s8490_s4 + $0x90] sm:$0xff]  ;;  %v2880_v18 = vld [vmem:[%s8490_s4 + $0x18] sm:$0xff]  ;;  %v2881_v15 = vld [vmem:[%s8490_s4 + $0x20] sm:$0xff] }
 0x17f   :  { %5555 = vmatprep.subr.bf16.mxu1 %v5554_v61  ;;  %v7987_v31 = vpack.c.bf16 %v2896_v4, %v2895_v53  ;;  %v7989_v6 = vpack.c.bf16 %v2880_v18, %v2879_v24  ;;  %v2882_v41 = vld [vmem:[%s8490_s4 + $0x28] sm:$0xff]  ;;  %v2891_v53 = vld [vmem:[%s8490_s4 + $0x70] sm:$0xff]  ;;  %v2892_v4 = vld [vmem:[%s8490_s4 + $0x78] sm:$0xff] }
 0x180   :  { %5589 = vmatpush3.bf16.msra.mxu0 %v7700_v47  ;;  %v2455_v47 = vld [vmem:[%s8488_s2 + $0x38] sm:$0xff] }
 0x181   :  { %5591 = vmatprep.subr.bf16.mxu0 %v7709_v45  ;;  %v5564_v22 = vpack.c.bf16 %v2455_v47, %v2454_v26  ;;  %v2456_v45 = vld [vmem:[%s8488_s2 + $0x40] sm:$0xff]  ;;  %v2786_v26 = vld [vmem:[%s8490_s4 + $0x130] sm:$0xff]  ;;  %v2787_v47 = vld [vmem:[%s8490_s4 + $0x138] sm:$0xff] }
 0x182   :  { %5557 = vmatpush3.bf16.msra.mxu1 %v5556_v19  ;;  %v5568_v17 = vpack.c.bf16 %v2457_v7, %v2456_v45  ;;  %v2785_v19 = vld [vmem:[%s8490_s4 + $0x128] sm:$0xff]  ;;  %v8029_v45 = vpack.c.bf16 %v2787_v47, %v2786_v26  ;;  %v2900_v7 = vld [vmem:[%s8490_s4 + $0xb8] sm:$0xff] }
 0x183   :  { %5559 = vmatprep.subr.bf16.mxu1 %v5558_v43  ;;  %v2897_v43 = vld [vmem:[%s8490_s4 + $0xa0] sm:$0xff]  ;;  %v8003_v51 = vpack.c.bf16 %v2785_v19, %v2784_v25  ;;  %v8157_v25 = vpack.c.bf16 %v2892_v4, %v2891_v53 }
 0x184   :  { %5593 = vmatpush3.bf16.msra.mxu0 %v7733_v57  ;;  %v2458_v57 = vld [vmem:[%s8488_s2 + $0x50] sm:$0xff] }
 0x185   :  { %5595 = vmatprep.subr.bf16.mxu0 %v7742_v49  ;;  %v2459_v49 = vld [vmem:[%s8488_s2 + $0x58] sm:$0xff] }
 0x186   :  { %5561 = vmatpush3.bf16.msra.mxu1 %v5560_v23  ;;  %v5572_v37 = vpack.c.bf16 %v2459_v49, %v2458_v57  ;;  %v8015_v23 = vpack.c.bf16 %v2898_v60, %v2897_v43  ;;  %v2884_v57 = vld [vmem:[%s8490_s4 + $0x38] sm:$0xff] }
 0x187   :  { %5563 = vmatprep.subr.bf16.mxu1 %v5562_v44  ;;  %v8017_v44 = vpack.c.bf16 %v2882_v41, %v2881_v15 }
 0x188   :  { %5597 = vmatpush3.bf16.msra.mxu0 %v7754_v20 }
 0x189   :  { %5599 = vmatprep.subr.bf16.mxu0 %v7396_v54 }
 0x18a   :  { %5565 = vmatpush3.bf16.msra.mxu1 %v5564_v22  ;;  %v2899_v22 = vld [vmem:[%s8490_s4 + $0xb0] sm:$0xff] }
 0x18b   :  { %5567 = vmatprep.subr.bf16.mxu1 %v7516_v35  ;;  %v2460_v35 = vld [vmem:[%s8488_s2 + $0x60] sm:$0xff]  ;;  %v8041_v49 = vpack.c.bf16 %v2900_v7, %v2899_v22 }
 0x18c   :  { %5601 = vmatpush3.bf16.msra.mxu0 %v7413_v5 }
 0x18d   :  { %5603 = vmatprep.subr.bf16.mxu0 %v7416_v8  ;;  %v898_v8 = vadd.f32 %v7784_v34, %v7318_v16  ;;  %v5580_v34 = vpack.c.bf16 %v2463_v63, %v2462_v33  ;;  %v2903_v33 = vld [vmem:[%s8490_s4 + $0xd0] sm:$0xff]  ;;  %v2904_v63 = vld [vmem:[%s8490_s4 + $0xd8] sm:$0xff] }
 0x18e   :  { %5569 = vmatpush3.bf16.msra.mxu1 %v5568_v17  ;;  %v4079_v20 = vpop.f32.mrb[8].mxu0  ;;  %v2883_v17 = vld [vmem:[%s8490_s4 + $0x30] sm:$0xff] }
 0x18f   :  { %v4080_v54 = vpop.f32.mrb[9].mxu0  ;;  %5571 = vmatprep.subr.bf16.mxu1 %v7534_v29  ;;  %v5576_v29 = vpack.c.bf16 %v2461_v3, %v2460_v35  ;;  %v2902_v35 = vld [vmem:[%s8490_s4 + $0xc8] sm:$0xff]  ;;  %v8058_v3 = vpack.c.bf16 %v2884_v57, %v2883_v17 }
 0x190   :  { %v4044_v1 = vpop.f32.mrb[6].mxu1  ;;  %v4081_v62 = vadd.f32 %v4080_v54, %v4079_v20  ;;  %5605 = vmatpush3.bf16.msra.mxu0 %v7433_v14  ;;  %v2788_v20 = vld [vmem:[%s8490_s4 + $0x140] sm:$0xff] }
 0x191   :  { %v4045_v5 = vpop.f32.mrb[7].mxu1  ;;  %5607 = vmatprep.subr.bf16.mxu0 %v7436_v13  ;;  %v2901_v54 = vld [vmem:[%s8490_s4 + $0xc0] sm:$0xff] }
 0x192   :  { %v4046_v28 = vadd.f32 %v4045_v5, %v4044_v1  ;;  %5573 = vmatpush3.bf16.msra.mxu1 %v5572_v37  ;;  %v2789_v37 = vld [vmem:[%s8490_s4 + $0x148] sm:$0xff]  ;;  %v8066_v5 = vpack.c.bf16 %v2902_v35, %v2901_v54 }
 0x193   :  { %5575 = vmatprep.subr.bf16.mxu1 %v7554_v42  ;;  %v2537_v42 = vsel %vm126_vm1, %v5985_v50, %v7801_v32  ;;  %v2878_v50 = vld [vmem:[%s8490_s4 + $0x8] sm:$0xff]  ;;  %v8060_v1 = vpack.c.bf16 %v2789_v37, %v2788_v20  ;;  %v8171_v37 = vld [vmem:[%s8489_s3] ss:$0 sm:$0xff] }
 0x194   :  { %v968_v14 = vadd.f32 %v4046_v28, %v898_v8  ;;  %5609 = vmatpush3.bf16.msra.mxu0 %v7453_v36  ;;  %v2535_v36 = vsel %vm126_vm1, %v7781_v27, %v5984_v39  ;;  %v7958_v56 = vpack.c.bf16 %v2878_v50, %v2877_v0  ;;  %v2886_v8 = vld [vmem:[%s8490_s4 + $0x48] sm:$0xff]  ;;  %v2790_v28 = vld [vmem:[%s8490_s4 + $0x150] sm:$0xff]  ;;  %v2795_v0 = vld [vmem:[%s8490_s4 + $0x178] sm:$0xff] }
 0x195   :  { %5611 = vmatprep.subr.bf16.mxu0 %v7456_v21  ;;  %v8510_v21 = vmov 0.0|0.0   ;;  %v2907_v50 = vld [vmem:[%s8490_s4 + $0xf0] sm:$0xff] }
 0x196   :  { %v1038_v13 = vadd.f32 %v4081_v62, %v968_v14  ;;  %5577 = vmatpush3.bf16.msra.mxu1 %v5576_v29  ;;  %v2885_v62 = vld [vmem:[%s8490_s4 + $0x40] sm:$0xff]  ;;  %v2791_v29 = vld [vmem:[%s8490_s4 + $0x158] sm:$0xff] }
 0x197   :  { %5579 = vmatprep.subr.bf16.mxu1 %v7574_v52  ;;  %v8511_v52 = vmov 0.0   ;;  %v8086_v14 = vpack.c.bf16 %v2886_v8, %v2885_v62 }
 0x198   :  { %v1041_v40 = vmax.f32 %v1038_v13, 0.0  ;;  %5613 = vmatpush3.bf16.msra.mxu0 %v7469_v11  ;;  %v8088_v13 = vpack.c.bf16 %v2791_v29, %v2790_v28 }
 0x19a   :  { %1042 = vst.msk [vmem:[#allocation2 + $0x8] sm:$0xff] %vm126_vm1, %v1041_v40  ;;  %5581 = vmatpush3.bf16.msra.mxu1 %v5580_v34  ;;  %v8091_v34 = vpack.c.bf16 %v2904_v63, %v2903_v33  ;;  %v2887_v40 = vld [vmem:[%s8490_s4 + $0x50] sm:$0xff] }
 0x19b   :  { %2680 = vmatmul.mubr.f32.vlgmr.msra.gmra.mrb[22].mxu0 %v2537_v42  ;;  %5614 = vmatprep.subr.bf16.mxu1 %v8510_v21  ;;  %v2888_v42 = vld [vmem:[%s8490_s4 + $0x58] sm:$0xff] }
 0x19d   :  { %2610 = vmatmul.mubr.f32.vlgmr.msra.gmra.mrb[20].mxu1 %v2535_v36  ;;  %v8102_v36 = vpack.c.bf16 %v2888_v42, %v2887_v40 }
 0x19e   :  { %5616 = vmatpush3.bf16.msra.mxu1 %v7638_v48  ;;  %4801 = vmatprep.mubr.msk.f32.mxu1 %vm6013_vm0, %v8511_v52 }
 0x19f   :  { %5617 = vmatprep.subr.bf16.mxu1 %v8510_v21 }
 0x1a2   :  { %5619 = vmatpush3.bf16.msra.mxu1 %v7685_v55  ;;  %v2780_v55 = vld [vmem:[%s8490_s4 + $0x100] sm:$0xff] }
 0x1a3   :  { %5620 = vmatprep.subr.bf16.mxu1 %v8510_v21 }
 0x1a6   :  { %5622 = vmatpush3.bf16.msra.mxu1 %v7718_v9  ;;  %v2781_v9 = vld [vmem:[%s8490_s4 + $0x108] sm:$0xff] }
 0x1a7   :  { %5623 = vmatprep.subr.bf16.mxu1 %v8510_v21  ;;  %v7945_v12 = vpack.c.bf16 %v2781_v9, %v2780_v55  ;;  %v2889_v55 = vld [vmem:[%s8490_s4 + $0x60] sm:$0xff]  ;;  %v2890_v9 = vld [vmem:[%s8490_s4 + $0x68] sm:$0xff] }
 0x1a9   :  { %5627 = vmatprep.subr.bf16.mxu0 %v7945_v12 }
 0x1aa   :  { %5625 = vmatpush3.bf16.msra.mxu1 %v7751_v10  ;;  %v2893_v10 = vld [vmem:[%s8490_s4 + $0x80] sm:$0xff] }
 0x1ad   :  { %4802 = vmatmul.mubr.msk.f32.vlgmr.msra.gmra.mrb[22].mxu1 %vm126_vm1, %v7799_v2  ;;  %v2894_v2 = vld [vmem:[%s8490_s4 + $0x88] sm:$0xff] }
 0x1ae   :  { %v4149_v11 = vpop.f32.mrb[10].mxu0  ;;  %v7956_v39 = vpack.c.bf16 %v2894_v2, %v2893_v10  ;;  %v2794_v2 = vld [vmem:[%s8490_s4 + $0x170] sm:$0xff] }
 0x1af   :  { %v4150_v48 = vpop.f32.mrb[11].mxu0 }
 0x1b0   :  { %v4114_v27 = vpop.f32.mrb[8].mxu1  ;;  %v4151_v38 = vadd.f32 %v4150_v48, %v4149_v11  ;;  %5659 = vmatprep.subr.bf16.mxu1 %v7956_v39  ;;  %5629 = vmatpush3.bf16.msra.mxu0 %v7956_v39  ;;  %v2792_v11 = vld [vmem:[%s8490_s4 + $0x160] sm:$0xff]  ;;  %v2793_v48 = vld [vmem:[%s8490_s4 + $0x168] sm:$0xff] }
 0x1b1   :  { %v4115_v32 = vpop.f32.mrb[9].mxu1  ;;  %5661 = vmatpush3.bf16.msra.mxu1 %v7958_v56 }
 0x1b2   :  { %v4116_v30 = vadd.f32 %v4115_v32, %v4114_v27  ;;  %5663 = vmatprep.subr.bf16.mxu1 %v7987_v31  ;;  %v2905_v27 = vld [vmem:[%s8490_s4 + $0xe0] sm:$0xff]  ;;  %v2906_v32 = vld [vmem:[%s8490_s4 + $0xe8] sm:$0xff] }
 0x1b3   :  { %v8127_v10 = vpack.c.bf16 %v2906_v32, %v2905_v27 }
 0x1b4   :  { %v1246_v46 = vadd.f32 %v4116_v30, %v7318_v16  ;;  %v7976_v16 = vpack.c.bf16 %v2783_v59, %v2782_v58  ;;  %v8129_v30 = vpack.c.bf16 %v2890_v9, %v2889_v55  ;;  %v8144_v58 = vpack.c.bf16 %v2795_v0, %v2794_v2  ;;  %v2908_v59 = vld [vmem:[%s8490_s4 + $0xf8] sm:$0xff] }
 0x1b5   :  { %5665 = vmatpush3.bf16.msra.mxu1 %v7989_v6  ;;  %v8155_v18 = vpack.c.bf16 %v2908_v59, %v2907_v50 }
 0x1b6   :  { %v7973_v61 = vadd.f32 %v4151_v38, %v1246_v46  ;;  %5631 = vmatprep.subr.bf16.mxu0 %v7976_v16  ;;  %5667 = vmatprep.subr.bf16.mxu1 %v8015_v23  ;;  %v8116_v38 = vpack.c.bf16 %v2793_v48, %v2792_v11 }
 0x1b7   :  { %5633 = vmatpush3.bf16.msra.mxu0 %v7987_v31 }
 0x1b8   :  { %5635 = vmatprep.subr.bf16.mxu0 %v8003_v51 }
 0x1b9   :  { %5669 = vmatpush3.bf16.msra.mxu1 %v8017_v44 }
 0x1ba   :  { %5671 = vmatprep.subr.bf16.mxu1 %v8041_v49 }
 0x1bb   :  { %5637 = vmatpush3.bf16.msra.mxu0 %v8015_v23 }
 0x1bc   :  { %5639 = vmatprep.subr.bf16.mxu0 %v8029_v45 }
 0x1bd   :  { %5673 = vmatpush3.bf16.msra.mxu1 %v8058_v3 }
 0x1be   :  { %5675 = vmatprep.subr.bf16.mxu1 %v8066_v5 }
 0x1bf   :  { %5641 = vmatpush3.bf16.msra.mxu0 %v8041_v49 }
 0x1c0   :  { %5643 = vmatprep.subr.bf16.mxu0 %v8060_v1 }
 0x1c1   :  { %5677 = vmatpush3.bf16.msra.mxu1 %v8086_v14 }
 0x1c2   :  { %5679 = vmatprep.subr.bf16.mxu1 %v8091_v34 }
 0x1c3   :  { %5645 = vmatpush3.bf16.msra.mxu0 %v8066_v5 }
 0x1c4   :  { %5647 = vmatprep.subr.bf16.mxu0 %v8088_v13 }
 0x1c5   :  { %5681 = vmatpush3.bf16.msra.mxu1 %v8102_v36 }
 0x1c6   :  { %5683 = vmatprep.subr.bf16.mxu1 %v8127_v10 }
 0x1c7   :  { %5649 = vmatpush3.bf16.msra.mxu0 %v8091_v34 }
 0x1c8   :  { %5651 = vmatprep.subr.bf16.mxu0 %v8116_v38 }
 0x1c9   :  { %5685 = vmatpush3.bf16.msra.mxu1 %v8129_v30 }
 0x1ca   :  { %5687 = vmatprep.subr.bf16.mxu1 %v8155_v18 }
 0x1cb   :  { %5653 = vmatpush3.bf16.msra.mxu0 %v8127_v10 }
 0x1cc   :  { %5655 = vmatprep.subr.bf16.mxu0 %v8144_v58 }
 0x1cd   :  { %5689 = vmatpush3.bf16.msra.mxu1 %v8157_v25 }
 0x1ce   :  { %v4219_v46 = vpop.f32.mrb[12].mxu0  ;;  %5715 = vmatprep.subr.bf16.mxu1 %v7956_v39 }
 0x1cf   :  { %v4220_v24 = vpop.f32.mrb[13].mxu0  ;;  %5657 = vmatpush3.bf16.msra.mxu0 %v8155_v18 }
 0x1d0   :  { %v4184_v19 = vpop.f32.mrb[10].mxu1  ;;  %v4221_v43 = vadd.f32 %v4220_v24, %v4219_v46  ;;  %5690 = vmatprep.subr.bf16.mxu0 %v8510_v21 }
 0x1d1   :  { %v4185_v60 = vpop.f32.mrb[11].mxu1 }
 0x1d2   :  { %v4186_v15 = vadd.f32 %v4185_v60, %v4184_v19  ;;  %v1598_v54 = vadd.f32 %v8171_v37, %v4221_v43 }
 0x1d4   :  { %v1386_v41 = vadd.f32 %v4186_v15, %v7973_v61 }
 0x1d6   :  { %v1389_v26 = vmax.f32 %v1386_v41, 0.0 }
 0x1d8   :  { %1391 = vrot.lane.b32.xlu0 %v1389_v26, %s6011_s21 }
 0x1ea   :  { %v691_v47 = vpop.permute.xlu1 %690 }
 0x1eb   :  { %694 = vst.msk [vmem:[#allocation2] sm:$0xff] %vm693_vm2, %v691_v47 }
 0x1ee   :  { %v4289_v22 = vpop.f32.mrb[14].mxu0 }
 0x1ef   :  { %v4290_v7 = vpop.f32.mrb[15].mxu0 }
 0x1f0   :  { %v4254_v17 = vpop.f32.mrb[12].mxu1  ;;  %v4291_v57 = vadd.f32 %v4290_v7, %v4289_v22 }
 0x1f1   :  { %v4255_v20 = vpop.f32.mrb[13].mxu1 }
 0x1f2   :  { %v4256_v61 = vadd.f32 %v4255_v20, %v4254_v17  ;;  %v2762_v26 = vld [vmem:[#allocation2] sm:$0xff] }
 0x1f4   :  { %v1668_v35 = vadd.f32 %v4256_v61, %v1598_v54 }
 0x1f6   :  { %v1738_v62 = vadd.f32 %v4291_v57, %v1668_v35 }
 0x1f8   :  { %v1741_v8 = vmax.f32 %v1738_v62, 0.0 }
 0x1fa   :  { %1742 = vst.msk [vmem:[#allocation2 + $0x10] sm:$0xff] %vm126_vm1, %v1741_v8 }
 0x20e   :  { %v4359_v28 = vpop.f32.mrb[16].mxu0 }
 0x20f   :  { %v4360_v29 = vpop.f32.mrb[17].mxu0 }
 0x210   :  { %v4324_v33 = vpop.f32.mrb[14].mxu1  ;;  %v4361_v63 = vadd.f32 %v4360_v29, %v4359_v28 }
 0x211   :  { %v4325_v40 = vpop.f32.mrb[15].mxu1 }
 0x212   :  { %v4326_v42 = vadd.f32 %v4325_v40, %v4324_v33 }
 0x214   :  { %v1946_v11 = vadd.f32 %v8171_v37, %v4326_v42 }
 0x216   :  { %v2016_v48 = vadd.f32 %v4361_v63, %v1946_v11  ;;  %v3381_v11 = vld [vmem:[%s8492_s6 + $0x60] sm:$0xff] }
 0x22e   :  { %v4429_v27 = vpop.f32.mrb[18].mxu0 }
 0x22f   :  { %v4430_v32 = vpop.f32.mrb[19].mxu0 }
 0x230   :  { %v4394_v55 = vpop.f32.mrb[16].mxu1  ;;  %v4431_v9 = vadd.f32 %v4430_v32, %v4429_v27  ;;  %v3383_v32 = vld [vmem:[%s8492_s6 + $0x70] sm:$0xff] }
 0x231   :  { %v4395_v2 = vpop.f32.mrb[17].mxu1 }
 0x232   :  { %v4396_v0 = vadd.f32 %v4395_v2, %v4394_v55  ;;  %v2298_v60 = vadd.f32 %v8171_v37, %v4431_v9  ;;  %v3384_v55 = vld [vmem:[%s8492_s6 + $0x78] sm:$0xff]  ;;  %v3385_v2 = vld [vmem:[%s8492_s6 + $0x80] sm:$0xff] }
 0x233   :  { %v8296_v9 = vpack.c.bf16 %v3384_v55, %v3383_v32 }
 0x234   :  { %v2086_v50 = vadd.f32 %v4396_v0, %v2016_v48  ;;  %v3382_v48 = vld [vmem:[%s8492_s6 + $0x68] sm:$0xff] }
 0x235   :  { %v8286_v27 = vpack.c.bf16 %v3382_v48, %v3381_v11  ;;  %v3386_v0 = vld [vmem:[%s8492_s6 + $0x88] sm:$0xff]  ;;  %v3680_v48 = vld [vmem:[%s8496_s10 + $0x10] sm:$0xff] }
 0x236   :  { %v2089_v46 = vmax.f32 %v2086_v50, 0.0  ;;  %v8306_v50 = vpack.c.bf16 %v3386_v0, %v3385_v2  ;;  %v3683_v2 = vld [vmem:[%s8496_s10 + $0x28] sm:$0xff] }
 0x238   :  { %2091 = vrot.lane.b32.xlu0 %v2089_v46, %s6011_s21  ;;  %v3387_v46 = vld [vmem:[%s8492_s6 + $0x90] sm:$0xff] }
 0x24a   :  { %v1392_v59 = vpop.permute.xlu0 %1391 }
 0x24b   :  { %1394 = vst.msk [vmem:[#allocation2 + $0x8] sm:$0xff] %vm693_vm2, %v1392_v59  ;;  %v3388_v59 = vld [vmem:[%s8492_s6 + $0x98] sm:$0xff] }
 0x24e   :  { %v4499_v53 = vpop.f32.mrb[20].mxu0 }
 0x24f   :  { %v4500_v4 = vpop.f32.mrb[21].mxu0 }
 0x250   :  { %v4464_v24 = vpop.f32.mrb[18].mxu1  ;;  %v4501_v19 = vadd.f32 %v4500_v4, %v4499_v53  ;;  %v8316_v53 = vpack.c.bf16 %v3388_v59, %v3387_v46  ;;  %v3389_v4 = vld [vmem:[%s8492_s6 + $0xa0] sm:$0xff] }
 0x251   :  { %v4465_v43 = vpop.f32.mrb[19].mxu1  ;;  %v3786_v59 = vld [vmem:[%s8493_s7] ss:$0 sm:$0xff] }
 0x252   :  { %v4466_v15 = vadd.f32 %v4465_v43, %v4464_v24  ;;  %v2763_v41 = vld [vmem:[#allocation2 + $0x8] sm:$0xff]  ;;  %v3391_v43 = vld [vmem:[%s8492_s6 + $0xb0] sm:$0xff] }
 0x253   :  { %2866 = vmatprep.mubr.f32.mxu0 %v2763_v41  ;;  %2989 = vmatprep.mubr.f32.mxu1 %v2763_v41  ;;  %v3390_v24 = vld [vmem:[%s8492_s6 + $0xa8] sm:$0xff] }
 0x254   :  { %v2368_v47 = vadd.f32 %v4466_v15, %v2298_v60  ;;  %2867 = vmatmul.mubr.f32.vlgmr.msra.gmra.mrb[24].mxu0 %v2762_v26  ;;  %2990 = vmatmul.mubr.f32.vlgmr.msra.gmra.mrb[24].mxu1 %v2762_v26  ;;  %v3392_v60 = vld [vmem:[%s8492_s6 + $0xb8] sm:$0xff]  ;;  %v3394_v26 = vld [vmem:[%s8492_s6 + $0xc8] sm:$0xff] }
 0x255   :  { %5692 = vmatpush3.bf16.msra.mxu0 %v7945_v12  ;;  %5717 = vmatpush3.bf16.msra.mxu1 %v7958_v56  ;;  %v8336_v15 = vpack.c.bf16 %v3392_v60, %v3391_v43 }
 0x256   :  { %v2438_v22 = vadd.f32 %v4501_v19, %v2368_v47  ;;  %5693 = vmatprep.subr.bf16.mxu0 %v8510_v21  ;;  %5719 = vmatprep.subr.bf16.mxu1 %v7987_v31  ;;  %v8326_v19 = vpack.c.bf16 %v3390_v24, %v3389_v4 }
 0x257   :  { %4836 = vmatprep.mubr.msk.f32.mxu0 %vm6013_vm0, %v8511_v52 }
 0x258   :  { %v2441_v7 = vmax.f32 %v2438_v22, 0.0  ;;  %v3395_v22 = vld [vmem:[%s8492_s6 + $0xd0] sm:$0xff] }
 0x259   :  { %5695 = vmatpush3.bf16.msra.mxu0 %v7976_v16  ;;  %5721 = vmatpush3.bf16.msra.mxu1 %v7989_v6 }
 0x25a   :  { %2442 = vst.msk [vmem:[#allocation2 + $0x18] sm:$0xff] %vm126_vm1, %v2441_v7  ;;  %5696 = vmatprep.subr.bf16.mxu0 %v8510_v21  ;;  %5723 = vmatprep.subr.bf16.mxu1 %v8015_v23  ;;  %v3396_v7 = vld [vmem:[%s8492_s6 + $0xd8] sm:$0xff] }
 0x25d   :  { %5698 = vmatpush3.bf16.msra.mxu0 %v8003_v51  ;;  %5725 = vmatpush3.bf16.msra.mxu1 %v8017_v44 }
 0x25e   :  { %5699 = vmatprep.subr.bf16.mxu0 %v8510_v21  ;;  %5727 = vmatprep.subr.bf16.mxu1 %v8041_v49 }
 0x261   :  { %5701 = vmatpush3.bf16.msra.mxu0 %v8029_v45  ;;  %5729 = vmatpush3.bf16.msra.mxu1 %v8058_v3 }
 0x262   :  { %5702 = vmatprep.subr.bf16.mxu0 %v8510_v21  ;;  %5731 = vmatprep.subr.bf16.mxu1 %v8066_v5 }
 0x265   :  { %5704 = vmatpush3.bf16.msra.mxu0 %v8060_v1  ;;  %5733 = vmatpush3.bf16.msra.mxu1 %v8086_v14 }
 0x266   :  { %5705 = vmatprep.subr.bf16.mxu0 %v8510_v21  ;;  %5735 = vmatprep.subr.bf16.mxu1 %v8091_v34 }
 0x269   :  { %5707 = vmatpush3.bf16.msra.mxu0 %v8088_v13  ;;  %5737 = vmatpush3.bf16.msra.mxu1 %v8102_v36 }
 0x26a   :  { %5708 = vmatprep.subr.bf16.mxu0 %v8510_v21  ;;  %5739 = vmatprep.subr.bf16.mxu1 %v8127_v10 }
 0x26d   :  { %5710 = vmatpush3.bf16.msra.mxu0 %v8116_v38  ;;  %5741 = vmatpush3.bf16.msra.mxu1 %v8129_v30 }
 0x26e   :  { %v4569_v17 = vpop.f32.mrb[22].mxu0  ;;  %5711 = vmatprep.subr.bf16.mxu0 %v8510_v21  ;;  %5743 = vmatprep.subr.bf16.mxu1 %v8155_v18 }
 0x26f   :  { %v4570_v57 = vpop.f32.mrb[23].mxu0 }
 0x270   :  { %v4534_v20 = vpop.f32.mrb[20].mxu1  ;;  %v4571_v54 = vadd.f32 %v4570_v57, %v4569_v17  ;;  %v5830_v17 = vpack.c.bf16 %v3396_v7, %v3395_v22  ;;  %v3397_v57 = vld [vmem:[%s8492_s6 + $0xe0] sm:$0xff] }
 0x271   :  { %v4535_v61 = vpop.f32.mrb[21].mxu1  ;;  %5713 = vmatpush3.bf16.msra.mxu0 %v8144_v58  ;;  %5745 = vmatpush3.bf16.msra.mxu1 %v8157_v25 }
 0x272   :  { %v4536_v35 = vadd.f32 %v4535_v61, %v4534_v20  ;;  %5746 = vmatprep.subr.bf16.mxu0 %v8510_v21  ;;  %5771 = vmatprep.subr.bf16.mxu1 %v7956_v39  ;;  %v3398_v20 = vld [vmem:[%s8492_s6 + $0xe8] sm:$0xff]  ;;  %v3399_v61 = vld [vmem:[%s8492_s6 + $0xf0] sm:$0xff] }
 0x274   :  { %v2612_v62 = vadd.f32 %v8171_v37, %v4536_v35  ;;  %v3400_v35 = vld [vmem:[%s8492_s6 + $0xf8] sm:$0xff] }
 0x276   :  { %v2682_v8 = vadd.f32 %v4571_v54, %v2612_v62  ;;  %v5833_v54 = vpack.c.bf16 %v3398_v20, %v3397_v57  ;;  %v5836_v62 = vpack.c.bf16 %v3400_v35, %v3399_v61 }
 0x280   :  { %v2751_v28 = vpop.f32.mrb[22].mxu1 }
 0x281   :  { %v2752_v29 = vadd.f32 %v2751_v28, %v2682_v8  ;;  %v4803_v33 = vpop.f32.mrb[23].mxu1 }
 0x283   :  { %v2755_v63 = vmax.f32 %v2752_v29, 0.0 }
 0x285   :  { %2757 = vrot.lane.b32.xlu1 %v2755_v63, %s6011_s21 }
 0x2aa   :  { %v2092_v40 = vpop.permute.xlu0 %2091 }
 0x2ab   :  { %2094 = vst.msk [vmem:[#allocation2 + $0x10] sm:$0xff] %vm693_vm2, %v2092_v40 }
 0x2b2   :  { %v2876_v42 = vld [vmem:[#allocation2 + $0x10] sm:$0xff] }
 0x2b3   :  { %4837 = vmatmul.mubr.f32.vlgmr.msra.gmra.mrb[26].mxu0 %v2876_v42  ;;  %3186 = vmatprep.mubr.f32.mxu1 %v2876_v42 }
 0x2b4   :  { %3187 = vmatmul.mubr.f32.vlgmr.msra.gmra.mrb[26].mxu1 %v2763_v41  ;;  %5748 = vmatpush3.bf16.msra.mxu0 %v7945_v12  ;;  %v3393_v41 = vld [vmem:[%s8492_s6 + $0xc0] sm:$0xff] }
 0x2b5   :  { %5773 = vmatpush3.bf16.msra.mxu1 %v7958_v56  ;;  %5749 = vmatprep.subr.bf16.mxu0 %v8510_v21  ;;  %v5827_v47 = vpack.c.bf16 %v3394_v26, %v3393_v41 }
 0x2b6   :  { %5775 = vmatprep.subr.bf16.mxu1 %v7987_v31  ;;  %4871 = vmatprep.mubr.msk.f32.mxu0 %vm6013_vm0, %v8511_v52  ;;  %v8255_v31 = vld [vmem:[%s8491_s5] ss:$0 sm:$0xff] }
 0x2b8   :  { %5751 = vmatpush3.bf16.msra.mxu0 %v7976_v16 }
 0x2b9   :  { %5777 = vmatpush3.bf16.msra.mxu1 %v7989_v6  ;;  %5752 = vmatprep.subr.bf16.mxu0 %v8510_v21 }
 0x2ba   :  { %5779 = vmatprep.subr.bf16.mxu1 %v8015_v23 }
 0x2bc   :  { %5754 = vmatpush3.bf16.msra.mxu0 %v8003_v51 }
 0x2bd   :  { %5781 = vmatpush3.bf16.msra.mxu1 %v8017_v44  ;;  %5755 = vmatprep.subr.bf16.mxu0 %v8510_v21 }
 0x2be   :  { %5783 = vmatprep.subr.bf16.mxu1 %v8041_v49 }
 0x2c0   :  { %5757 = vmatpush3.bf16.msra.mxu0 %v8029_v45 }
 0x2c1   :  { %5785 = vmatpush3.bf16.msra.mxu1 %v8058_v3  ;;  %5758 = vmatprep.subr.bf16.mxu0 %v8510_v21 }
 0x2c2   :  { %5787 = vmatprep.subr.bf16.mxu1 %v8066_v5  ;;  %v3377_v5 = vld [vmem:[%s8492_s6 + $0x40] sm:$0xff] }
 0x2c4   :  { %5760 = vmatpush3.bf16.msra.mxu0 %v8060_v1 }
 0x2c5   :  { %5789 = vmatpush3.bf16.msra.mxu1 %v8086_v14  ;;  %5761 = vmatprep.subr.bf16.mxu0 %v8510_v21  ;;  %v3378_v14 = vld [vmem:[%s8492_s6 + $0x48] sm:$0xff] }
 0x2c6   :  { %5791 = vmatprep.subr.bf16.mxu1 %v8091_v34 }
 0x2c8   :  { %5763 = vmatpush3.bf16.msra.mxu0 %v8088_v13  ;;  %v3379_v13 = vld [vmem:[%s8492_s6 + $0x50] sm:$0xff] }
 0x2c9   :  { %5793 = vmatpush3.bf16.msra.mxu1 %v8102_v36  ;;  %5764 = vmatprep.subr.bf16.mxu0 %v8510_v21 }
 0x2ca   :  { %5795 = vmatprep.subr.bf16.mxu1 %v8127_v10  ;;  %v8269_v10 = vpack.c.bf16 %v3378_v14, %v3377_v5  ;;  %v3490_v5 = vld [vmem:[%s8492_s6 + $0x30] sm:$0xff]  ;;  %v3491_v14 = vld [vmem:[%s8492_s6 + $0x38] sm:$0xff] }
 0x2cc   :  { %5766 = vmatpush3.bf16.msra.mxu0 %v8116_v38 }
 0x2cd   :  { %5797 = vmatpush3.bf16.msra.mxu1 %v8129_v30  ;;  %5767 = vmatprep.subr.bf16.mxu0 %v8510_v21  ;;  %v3380_v30 = vld [vmem:[%s8492_s6 + $0x58] sm:$0xff] }
 0x2ce   :  { %5799 = vmatprep.subr.bf16.mxu1 %v8155_v18  ;;  %v8275_v37 = vpack.c.bf16 %v3380_v30, %v3379_v13  ;;  %v5848_v13 = vpack.c.bf16 %v3491_v14, %v3490_v5  ;;  %v3594_v30 = vld [vmem:[%s8487_s1] sm:$0xff] }
 0x2d0   :  { %5769 = vmatpush3.bf16.msra.mxu0 %v8144_v58 }
 0x2d1   :  { %5801 = vmatpush3.bf16.msra.mxu1 %v8157_v25  ;;  %5802 = vmatprep.subr.bf16.mxu0 %v8510_v21 }
 0x2d2   :  { %5838 = vmatprep.subr.bf16.mxu1 %v8510_v21 }
 0x2f7   :  { %v2758_v12 = vpop.permute.xlu1 %2757 }
 0x2f8   :  { %2760 = vst.msk [vmem:[#allocation2 + $0x18] sm:$0xff] %vm693_vm2, %v2758_v12 }
 0x2ff   :  { %v3073_v39 = vld [vmem:[#allocation2 + $0x18] sm:$0xff] }
 0x300   :  { %4872 = vmatmul.mubr.f32.vlgmr.msra.gmra.mrb[28].mxu0 %v3073_v39  ;;  %3362 = vmatprep.mubr.f32.mxu1 %v3073_v39 }
 0x301   :  { %3363 = vmatmul.mubr.f32.vlgmr.msra.gmra.mrb[28].mxu1 %v2876_v42  ;;  %5804 = vmatpush1.bf16.msra.mxu0 %v8269_v10 }
 0x302   :  { %5805 = vmatprep.subr.bf16.mxu0 %v8510_v21 }
 0x305   :  { %5807 = vmatpush1.bf16.msra.mxu0 %v8275_v37 }
 0x306   :  { %5808 = vmatprep.subr.bf16.mxu0 %v8510_v21 }
 0x309   :  { %5810 = vmatpush1.bf16.msra.mxu0 %v8286_v27 }
 0x30a   :  { %5811 = vmatprep.subr.bf16.mxu0 %v8510_v21 }
 0x30d   :  { %5813 = vmatpush1.bf16.msra.mxu0 %v8296_v9 }
 0x30e   :  { %5814 = vmatprep.subr.bf16.mxu0 %v8510_v21 }
 0x311   :  { %5816 = vmatpush1.bf16.msra.mxu0 %v8306_v50 }
 0x312   :  { %5817 = vmatprep.subr.bf16.mxu0 %v8510_v21 }
 0x315   :  { %5819 = vmatpush1.bf16.msra.mxu0 %v8316_v53 }
 0x316   :  { %5820 = vmatprep.subr.bf16.mxu0 %v8510_v21 }
 0x319   :  { %5822 = vmatpush1.bf16.msra.mxu0 %v8326_v19 }
 0x31a   :  { %5823 = vmatprep.subr.bf16.mxu0 %v8510_v21 }
 0x31d   :  { %5825 = vmatpush1.bf16.msra.mxu0 %v8336_v15 }
 0x31e   :  { %5826 = vmatprep.subr.bf16.mxu0 %v8510_v21 }
 0x321   :  { %5828 = vmatpush1.bf16.msra.mxu0 %v5827_v47 }
 0x322   :  { %5829 = vmatprep.subr.bf16.mxu0 %v8510_v21 }
 0x325   :  { %5831 = vmatpush1.bf16.msra.mxu0 %v5830_v17  ;;  %v3791_v17 = vld [vmem:[%s8497_s11] ss:$0 sm:$0xff] }
 0x326   :  { %5832 = vmatprep.subr.bf16.mxu0 %v8510_v21 }
 0x327   :  { %v4613_v56 = vpop.f32.mrb[24].mxu0  ;;  %v4648_v16 = vpop.f32.mrb[24].mxu1 }
 0x328   :  { %v4614_v6 = vpop.f32.mrb[25].mxu0  ;;  %v4649_v51 = vpop.f32.mrb[25].mxu1 }
 0x329   :  { %v4615_v23 = vadd.f32 %v4614_v6, %v4613_v56  ;;  %v4650_v44 = vadd.f32 %v4649_v51, %v4648_v16  ;;  %5834 = vmatpush1.bf16.msra.mxu0 %v5833_v54  ;;  %v3484_v16 = vld [vmem:[%s8492_s6] sm:$0xff]  ;;  %v3485_v6 = vld [vmem:[%s8492_s6 + $0x8] sm:$0xff]  ;;  %v3486_v51 = vld [vmem:[%s8492_s6 + $0x10] sm:$0xff] }
 0x32a   :  { %5835 = vmatprep.subr.bf16.mxu0 %v8510_v21 }
 0x32b   :  { %v2869_v45 = vadd.f32 %v4615_v23, %v8255_v31  ;;  %v2992_v3 = vadd.f32 %v4650_v44, %v8255_v31  ;;  %v5839_v23 = vpack.c.bf16 %v3485_v6, %v3484_v16 }
 0x32d   :  { %v2872_v49 = vmax.f32 %v2869_v45, 0.0  ;;  %5837 = vmatpush1.bf16.msra.mxu0 %v5836_v62  ;;  %5840 = vmatpush1.bf16.msra.mxu1 %v5839_v23  ;;  %v3488_v45 = vld [vmem:[%s8492_s6 + $0x20] sm:$0xff] }
 0x32e   :  { %4874 = vmatprep.subr.mxu0 %v8511_v52  ;;  %5841 = vmatprep.subr.bf16.mxu1 %v8510_v21 }
 0x32f   :  { %2873 = vst.msk [vmem:[#allocation3] sm:$0xff] %vm126_vm1, %v2872_v49  ;;  %v3489_v49 = vld [vmem:[%s8492_s6 + $0x28] sm:$0xff] }
 0x386   :  { %v3061_v1 = vpop.f32.mrb[26].mxu0 }
 0x387   :  { %v3062_v34 = vadd.f32 %v3061_v1, %v2992_v3  ;;  %v4838_v36 = vpop.f32.mrb[27].mxu0  ;;  %v4700_v38 = vpop.f32.mrb[26].mxu1  ;;  %v5845_v1 = vpack.c.bf16 %v3489_v49, %v3488_v45 }
 0x388   :  { %v4701_v58 = vpop.f32.mrb[27].mxu1 }
 0x389   :  { %v3065_v18 = vmax.f32 %v3062_v34, 0.0  ;;  %v4702_v25 = vadd.f32 %v4701_v58, %v4700_v38  ;;  %v3678_v58 = vld [vmem:[%s8496_s10] sm:$0xff] }
 0x38b   :  { %3067 = vrot.lane.b32.xlu1 %v3065_v18, %s6011_s21  ;;  %v3189_v8 = vadd.f32 %v4702_v25, %v8255_v31  ;;  %v3679_v18 = vld [vmem:[%s8496_s10 + $0x8] sm:$0xff] }
 0x38c   :  { %v5875_v25 = vpack.c.bf16 %v3679_v18, %v3678_v58 }
 0x3d3   :  { %v3258_v28 = vpop.f32.mrb[28].mxu0 }
 0x3d4   :  { %v3259_v29 = vadd.f32 %v3258_v28, %v3189_v8  ;;  %v4873_v33 = vpop.f32.mrb[29].mxu0  ;;  %v4752_v63 = vpop.f32.mrb[28].mxu1 }
 0x3d5   :  { %v4753_v40 = vpop.f32.mrb[29].mxu1 }
 0x3d6   :  { %v3262_v42 = vmax.f32 %v3259_v29, 0.0  ;;  %v4754_v12 = vadd.f32 %v4753_v40, %v4752_v63 }
 0x3d8   :  { %3263 = vst.msk [vmem:[#allocation3 + $0x8] sm:$0xff] %vm126_vm1, %v3262_v42  ;;  %v3365_v39 = vadd.f32 %v4754_v12, %v8255_v31  ;;  %v3487_v31 = vld [vmem:[%s8492_s6 + $0x18] sm:$0xff] }
 0x3d9   :  { %v5842_v44 = vpack.c.bf16 %v3487_v31, %v3486_v51 }
 0x3da   :  { %v3368_v56 = vmax.f32 %v3365_v39, 0.0 }
 0x3db   :  { %5843 = vmatpush1.bf16.msra.mxu1 %v5842_v44 }
 0x3dc   :  { %3370 = vrot.lane.b32.xlu0 %v3368_v56, %s6011_s21  ;;  %5844 = vmatprep.subr.bf16.mxu1 %v8510_v21 }
 0x3df   :  { %5846 = vmatpush1.bf16.msra.mxu1 %v5845_v1 }
 0x3e0   :  { %5847 = vmatprep.subr.bf16.mxu1 %v8510_v21 }
 0x3e3   :  { %5849 = vmatpush1.bf16.msra.mxu1 %v5848_v13 }
 0x3e4   :  { %5850 = vmatprep.subr.bf16.mxu1 %v8510_v21 }
 0x3e7   :  { %5852 = vmatpush1.bf16.msra.mxu1 %v8269_v10  ;;  %v3595_v10 = vld [vmem:[%s8494_s8] sm:$0xff] }
 0x3e8   :  { %5853 = vmatprep.subr.bf16.mxu1 %v8510_v21 }
 0x3eb   :  { %5855 = vmatpush1.bf16.msra.mxu1 %v8275_v37 }
 0x3ec   :  { %5856 = vmatprep.subr.bf16.mxu1 %v8510_v21 }
 0x3ef   :  { %5858 = vmatpush1.bf16.msra.mxu1 %v8286_v27  ;;  %v3681_v27 = vld [vmem:[%s8496_s10 + $0x18] sm:$0xff] }
 0x3f0   :  { %5859 = vmatprep.subr.bf16.mxu1 %v8510_v21  ;;  %v5878_v55 = vpack.c.bf16 %v3681_v27, %v3680_v48 }
 0x3f3   :  { %5861 = vmatpush1.bf16.msra.mxu1 %v8296_v9  ;;  %v3682_v9 = vld [vmem:[%s8496_s10 + $0x20] sm:$0xff] }
 0x3f4   :  { %5862 = vmatprep.subr.bf16.mxu1 %v8510_v21  ;;  %v5881_v0 = vpack.c.bf16 %v3683_v2, %v3682_v9 }
 0x3f7   :  { %5864 = vmatpush1.bf16.msra.mxu1 %v8306_v50  ;;  %v3684_v50 = vld [vmem:[%s8496_s10 + $0x30] sm:$0xff] }
 0x3f8   :  { %5865 = vmatprep.subr.bf16.mxu1 %v8510_v21 }
 0x3fb   :  { %5867 = vmatpush1.bf16.msra.mxu1 %v8316_v53 }
 0x3fc   :  { %5868 = vmatprep.subr.bf16.mxu1 %v8510_v21 }
 0x3fd   :  { %v3068_v3 = vpop.permute.xlu1 %3067 }
 0x3fe   :  { %3070 = vst.msk [vmem:[#allocation3] sm:$0xff] %vm693_vm2, %v3068_v3 }
 0x3ff   :  { %5870 = vmatpush1.bf16.msra.mxu1 %v8326_v19  ;;  %v3789_v19 = vld [vmem:[%s8495_s9] ss:$0 sm:$0xff]  ;;  %s6015_s9 = smov [#allocation4]  }
 0x400   :  { %5871 = vmatprep.subr.bf16.mxu1 %v8510_v21  ;;  %s3774_s13 = sshll.u32 %s6015_s9, 4  ;;  %s3775_s13 = int_to_ptr.vmem [resolvable:$true] %s3774_s13 }
 0x401   :  { %s5987_s6 = scalar_lea.vmem %s3775_s13, 256  ;;  %p5992_p1 = scmp.lt.s32.totalorder %s3775_s13, %s3775_s13 }
 0x402   :  { %p5988_p0 = scmp.ne.s32.totalorder %s3775_s13, %s5987_s6  ;;  %p5993_p2 = scmp.lt.s32.totalorder %s5987_s6, %s5987_s6 }
 0x403   :  { %5873 = vmatpush1.bf16.msra.mxu1 %v8336_v15 }
 0x404   :  { %5874 = vmatprep.subr.bf16.mxu1 %v8510_v21  ;;  %p5994_p3 = por %p5993_p2, %p5992_p1 }
 0x405   :  { %v3482_v34 = vld [vmem:[#allocation3] sm:$0xff] }
 0x406   :  { %3510 = vrot.lane.b32.xlu0 %v3482_v34, %s6011_s21  ;;  %p5995_p4 = pnand %p5994_p3, %p5988_p0 }
 0x44e   :  { %v3371_v36 = vpop.permute.xlu0 %3370 }
 0x44f   :  { %3373 = vst.msk [vmem:[#allocation3 + $0x8] sm:$0xff] %vm693_vm2, %v3371_v36 }
 0x456   :  { %v3483_v38 = vld [vmem:[#allocation3 + $0x8] sm:$0xff] }
 0x457   :  { %3512 = vrot.lane.b32.xlu1 %v3483_v38, %s6011_s21  ;;  %3787 = vmatprep.mubr.msk.f32.mxu0 %vm126_vm1, %v3483_v38 }
 0x458   :  { %3475 = vmatmul.mubr.f32.vlgmr.msra.gmra.mrb[30].mxu0 %v3482_v34 }
 0x459   :  { %4875 = vmatpush3.msra.mxu0 %v3595_v10  ;;  %4876 = vmatprep.mubr.msk.f32.mxu0 %vm6013_vm0, %v8511_v52 }
 0x45c   :  { %4877 = vmatmul.mubr.msk.f32.vlgmr.msra.gmra.mrb[32].mxu0 %vm3603_vm3, %v3594_v30 }
 0x478   :  { %v3511_v37 = vpop.permute.xlu0 %3510 }
 0x4c9   :  { %v3513_v11 = vpop.permute.xlu1 %3512 }
 0x4ca   :  { %v3514_v32 = vsel %vm126_vm1, %v3511_v37, %v3513_v11  ;;  %3788 = vmatprep.mubr.msk.f32.mxu1 %vm126_vm1, %v3513_v11 }
 0x4cb   :  { %3583 = vmatmul.mubr.f32.vlgmr.msra.gmra.mrb[30].mxu1 %v3514_v32 }
 0x4cc   :  { %5876 = vmatpush3.bf16.msra.mxu1 %v5875_v25  ;;  %4895 = vmatprep.mubr.msk.f32.mxu1 %vm6013_vm0, %v8511_v52  ;;  %v3685_v52 = vld [vmem:[%s8496_s10 + $0x38] sm:$0xff] }
 0x4cd   :  { %5877 = vmatprep.subr.bf16.mxu1 %v8510_v21  ;;  %v5884_v46 = vpack.c.bf16 %v3685_v52, %v3684_v50 }
 0x4d0   :  { %5879 = vmatpush3.bf16.msra.mxu1 %v5878_v55 }
 0x4d1   :  { %5880 = vmatprep.subr.bf16.mxu1 %v8510_v21 }
 0x4d4   :  { %5882 = vmatpush3.bf16.msra.mxu1 %v5881_v0 }
 0x4d5   :  { %5883 = vmatprep.subr.bf16.mxu1 %v8510_v21 }
 0x4d8   :  { %5885 = vmatpush3.bf16.msra.mxu1 %v5884_v46 }
 0x52b   :  { %v3476_v53 = vpop.f32.mrb[30].mxu0 }
 0x52c   :  { %v3477_v4 = vadd.f32 %v3786_v59, %v3476_v53  ;;  %v3478_v24 = vpop.f32.mrb[31].mxu0 }
 0x52e   :  { %v3480_v43 = vmax.f32 %v3477_v4, 0.0 }
 0x52f   :  { %v3673_v60 = vpop.f32.mrb[32].mxu0 }
 0x530   :  { %3481 = vst.msk [vmem:[#allocation4] sm:$0xff] %vm126_vm1, %v3480_v43  ;;  %v3674_v15 = vadd.f32 %v3789_v19, %v3673_v60  ;;  %v4878_v41 = vpop.f32.mrb[33].mxu0 }
 0x532   :  { %v3677_v26 = vmax.f32 %v3674_v15, 0.0 }
 0x534   :  { %4896 = vmatmul.mubr.msk.f32.vlgmr.msra.gmra.mrb[32].mxu1 %vm126_vm1, %v3677_v26 }
 0x59e   :  { %v3584_v21 = vpop.f32.mrb[30].mxu1 }
 0x59f   :  { %v3585_v47 = vadd.f32 %v3786_v59, %v3584_v21  ;;  %v3586_v22 = vpop.f32.mrb[31].mxu1 }
 0x5a1   :  { %v3588_v7 = vmax.f32 %v3585_v47, 0.0 }
 0x5a3   :  { %3590 = vrot.lane.b32.xlu0 %v3588_v7, %s6011_s21 }
 0x607   :  { %v3762_v57 = vpop.f32.mrb[32].mxu1 }
 0x608   :  { %v3763_v20 = vadd.f32 %v3791_v17, %v3762_v57  ;;  %v4897_v54 = vpop.f32.mrb[33].mxu1 }
 0x60a   :  { %v3766_v61 = vmax.f32 %v3763_v20, 0.0 }
 0x60c   :  { %3767 = vst [vmem:[#allocation4 + $0x8] sm:$0xff] %v3766_v61 }
 0x615   :  { %v3591_v35 = vpop.permute.xlu0 %3590 }
 0x616   :  { %3593 = vst.msk [vmem:[#allocation4] sm:$0xff] %vm693_vm2, %v3591_v35 }
 0x617   :  { %5998 = shalt.err (!%p5995_p4)
}
 0x618   :  { %s5999_s3 = scalar_lea.hbm %s8498_s12, 256 }
 0x619   :  { %p6000_p5 = scmp.ne.s32.totalorder %s8498_s12, %s5999_s3  ;;  %p6003_p6 = scmp.lt.u32.totalorder %s5999_s3, %s8498_s12 }
 0x61b   :  { %p6005_p7 = pnand %p6003_p6, %p6000_p5 }
 0x61d   :  { %6008 = shalt.err (!%p6005_p7)
}
 0x61e   :  { %3777 = dma.vmem_to_hbm [thread:$0]  %s3775_s13, 256, %s8498_s12, [#allocation5]  }
 0x61f   :  { %6009 = dma.done.wait [#allocation5], 256  }
 0x620   :  { %6010 = vsyncadd [#allocation5], 4294967040 }
 0x621   :  { %3781 = vsyncpa [#allocation5], 1 }

// kernel: tpu_custom_call.1
= control target key start
LH: loop header
LB: loop body
LE: loop exit
PB: predicated region body
PF: predicated region fallthrough
CT: control target
= control target key end

     0   :  { %s6011_s21 = smov 64   ;;  %s8486_s0 = inlined_call_operand.vmem [shape: f32[8,3072], index: 0, kind: input, shape index: {}]   ;;  %s8487_s1 = inlined_call_operand.vmem [shape: f32[8,8], index: 1, kind: input, shape index: {}]   ;;  %s8488_s2 = inlined_call_operand.vmem [shape: f32[768,64], index: 2, kind: input, shape index: {}]   ;;  %s8489_s3 = inlined_call_operand.vmem [shape: f32[1,64], index: 3, kind: input, shape index: {}]   ;;  %s8490_s4 = inlined_call_operand.vmem [shape: f32[384,64], index: 4, kind: input, shape index: {}]   ;;  %s8491_s5 = inlined_call_operand.vmem [shape: f32[1,64], index: 5, kind: input, shape index: {}]   ;;  %s8492_s6 = inlined_call_operand.vmem [shape: f32[256,64], index: 6, kind: input, shape index: {}]   ;;  %s8493_s7 = inlined_call_operand.vmem [shape: f32[1,64], index: 7, kind: input, shape index: {}]   ;;  %s8494_s8 = inlined_call_operand.vmem [shape: f32[8,64], index: 8, kind: input, shape index: {}]   ;;  %s8495_s9 = inlined_call_operand.vmem [shape: f32[1,64], index: 9, kind: input, shape index: {}]   ;;  %s8496_s10 = inlined_call_operand.vmem [shape: f32[64,128], index: 10, kind: input, shape index: {}]   ;;  %s8497_s11 = inlined_call_operand.vmem [shape: f32[1,128], index: 11, kind: input, shape index: {}]   ;;  %s8498_s12 = inlined_call_operand.hbm [shape: f32[8,256], index: 12, kind: output, shape index: {}]  }
   0x1   :  { %v6084_v0 = vld [vmem:[%s8486_s0 + $0x20] sm:$0xff]  ;;  %v346_v1 = vld [vmem:[%s8486_s0 + $0x28] sm:$0xff]  ;;  %v6092_v2 = vld [vmem:[%s8486_s0 + $0x10] sm:$0xff] }
   0x2   :  { %v5896_v3 = vpack.i.bf16 %v346_v1, %v6084_v0  ;;  %v344_v4 = vld [vmem:[%s8486_s0 + $0x18] sm:$0xff]  ;;  %v342_v5 = vld [vmem:[%s8486_s0 + $0x8] sm:$0xff]  ;;  %v347_v6 = vld [vmem:[%s8486_s0 + $0x30] sm:$0xff] }
   0x3   :  { %v5891_v7 = vpack.i.bf16 %v344_v4, %v6092_v2  ;;  %v6108_v8 = vld [vmem:[%s8486_s0 + $0x38] sm:$0xff]  ;;  %v64_v9 = vld [vmem:[%s8488_s2 + $0x140] sm:$0xff]  ;;  %v65_v10 = vld [vmem:[%s8488_s2 + $0x148] sm:$0xff]  ;;  %194 = vmatprep.mubr.f32.mxu0 %v342_v5  ;;  %264 = vmatprep.mubr.f32.mxu1 %v344_v4  ;;  %v5906_v29 = vpack.i.bf16 %v347_v6, %v346_v1 }
   0x4   :  { %5897 = vrot.lane.b32.xlu1 %v5896_v3, %s6011_s21  ;;  %v5901_v11 = vpack.i.bf16 %v6108_v8, %v347_v6  ;;  %v6118_v12 = vpack.c.bf16 %v65_v10, %v64_v9  ;;  %v48_v13 = vld [vmem:[%s8488_s2 + $0xc0] sm:$0xff]  ;;  %v49_v14 = vld [vmem:[%s8488_s2 + $0xc8] sm:$0xff]  ;;  %v66_v15 = vld [vmem:[%s8488_s2 + $0x150] sm:$0xff] }
   0x5   :  { %5892 = vrot.lane.b32.xlu0 %v5891_v7, %s6011_s21  ;;  %v6130_v16 = vpack.c.bf16 %v49_v14, %v48_v13  ;;  %v67_v17 = vld [vmem:[%s8488_s2 + $0x158] sm:$0xff]  ;;  %v50_v18 = vld [vmem:[%s8488_s2 + $0xd0] sm:$0xff]  ;;  %v68_v21 = vld [vmem:[%s8488_s2 + $0x160] sm:$0xff] }
   0x6   :  { %v51_v19 = vld [vmem:[%s8488_s2 + $0xd8] sm:$0xff]  ;;  %4899 = vmatprep.subr.bf16.mxu0 %v6118_v12  ;;  %v6142_v20 = vpack.c.bf16 %v67_v17, %v66_v15  ;;  %v69_v22 = vld [vmem:[%s8488_s2 + $0x168] sm:$0xff]  ;;  %v52_v24 = vld [vmem:[%s8488_s2 + $0xe0] sm:$0xff] }
   0x7   :  { %4901 = vmatpush3.bf16.msra.mxu0 %v6130_v16  ;;  %v6151_v23 = vpack.c.bf16 %v51_v19, %v50_v18  ;;  %v6158_v25 = vpack.c.bf16 %v69_v22, %v68_v21  ;;  %v53_v26 = vld [vmem:[%s8488_s2 + $0xe8] sm:$0xff]  ;;  %v70_v27 = vld [vmem:[%s8488_s2 + $0x170] sm:$0xff]  ;;  %v71_v28 = vld [vmem:[%s8488_s2 + $0x178] sm:$0xff] }
   0x8   :  { %5902 = vrot.lane.b32.xlu1 %v5901_v11, %s6011_s21  ;;  %4903 = vmatprep.subr.bf16.mxu0 %v6142_v20  ;;  %v96_v30 = vld [vmem:[%s8488_s2 + $0x240] sm:$0xff]  ;;  %v97_v31 = vld [vmem:[%s8488_s2 + $0x248] sm:$0xff]  ;;  %v6188_v36 = vpack.c.bf16 %v53_v26, %v52_v24  ;;  %v54_v37 = vld [vmem:[%s8488_s2 + $0xf0] sm:$0xff]  ;;  %v6204_v41 = vpack.c.bf16 %v71_v28, %v70_v27 }
   0x9   :  { %452 = vrot.lane.b32.xlu0 %v342_v5, %s6011_s21  ;;  %v80_v32 = vld [vmem:[%s8488_s2 + $0x1c0] sm:$0xff]  ;;  %v6182_v34 = vpack.c.bf16 %v97_v31, %v96_v30  ;;  %v81_v35 = vld [vmem:[%s8488_s2 + $0x1c8] sm:$0xff]  ;;  %v55_v38 = vld [vmem:[%s8488_s2 + $0xf8] sm:$0xff] }
   0xa   :  { %v699_v33 = vld [vmem:[%s8486_s0 + $0x40] sm:$0xff]  ;;  %v6196_v39 = vpack.c.bf16 %v81_v35, %v80_v32  ;;  %v98_v40 = vld [vmem:[%s8488_s2 + $0x250] sm:$0xff]  ;;  %v99_v42 = vld [vmem:[%s8488_s2 + $0x258] sm:$0xff]  ;;  %v6236_v52 = vpack.c.bf16 %v55_v38, %v54_v37 }
   0xb   :  { %4905 = vmatpush3.bf16.msra.mxu0 %v6151_v23  ;;  %v82_v43 = vld [vmem:[%s8488_s2 + $0x1d0] sm:$0xff]  ;;  %v83_v44 = vld [vmem:[%s8488_s2 + $0x1d8] sm:$0xff]  ;;  %v5911_v45 = vpack.i.bf16 %v699_v33, %v6108_v8  ;;  %4931 = vmatprep.subr.bf16.mxu1 %v6182_v34  ;;  %v72_v46 = vld [vmem:[%s8488_s2 + $0x180] sm:$0xff]  ;;  %v6224_v48 = vpack.c.bf16 %v99_v42, %v98_v40 }
   0xc   :  { %805 = vrot.lane.b32.xlu1 %v6084_v0, %s6011_s21  ;;  %4907 = vmatprep.subr.bf16.mxu0 %v6158_v25  ;;  %v73_v47 = vld [vmem:[%s8488_s2 + $0x188] sm:$0xff]  ;;  %v6227_v49 = vpack.c.bf16 %v83_v44, %v82_v43  ;;  %v100_v50 = vld [vmem:[%s8488_s2 + $0x260] sm:$0xff]  ;;  %v6262_v60 = vld [vmem:[%s8486_s0 + $0x50] sm:$0xff] }
   0xd   :  { %5907 = vrot.lane.b32.xlu0 %v5906_v29, %s6011_s21  ;;  %4933 = vmatpush3.bf16.msra.mxu1 %v6196_v39  ;;  %v101_v51 = vld [vmem:[%s8488_s2 + $0x268] sm:$0xff]  ;;  %v56_v53 = vld [vmem:[%s8488_s2 + $0x100] sm:$0xff]  ;;  %v6251_v57 = vpack.c.bf16 %v73_v47, %v72_v46  ;;  %v74_v61 = vld [vmem:[%s8488_s2 + $0x190] sm:$0xff] }
   0xe   :  { %4935 = vmatprep.subr.bf16.mxu1 %v6224_v48  ;;  %v6242_v54 = vpack.c.bf16 %v101_v51, %v100_v50  ;;  %v84_v55 = vld [vmem:[%s8488_s2 + $0x1e0] sm:$0xff]  ;;  %v85_v56 = vld [vmem:[%s8488_s2 + $0x1e8] sm:$0xff]  ;;  %v75_v62 = vld [vmem:[%s8488_s2 + $0x198] sm:$0xff] }
   0xf   :  { %4909 = vmatpush3.bf16.msra.mxu0 %v6188_v36  ;;  %v57_v58 = vld [vmem:[%s8488_s2 + $0x108] sm:$0xff]  ;;  %v102_v1 = vld [vmem:[%s8488_s2 + $0x270] sm:$0xff]  ;;  %v6276_v4 = vpack.c.bf16 %v85_v56, %v84_v55  ;;  %v103_v5 = vld [vmem:[%s8488_s2 + $0x278] sm:$0xff]  ;;  %v6297_v13 = vpack.c.bf16 %v75_v62, %v74_v61 }
  0x10   :  { %4911 = vmatprep.subr.bf16.mxu0 %v6204_v41  ;;  %v700_v59 = vld [vmem:[%s8486_s0 + $0x48] sm:$0xff]  ;;  %v6282_v6 = vpack.c.bf16 %v57_v58, %v56_v53  ;;  %v58_v7 = vld [vmem:[%s8488_s2 + $0x110] sm:$0xff]  ;;  %v6288_v9 = vpack.c.bf16 %v103_v5, %v102_v1  ;;  %v87_v11 = vld [vmem:[%s8488_s2 + $0x1f8] sm:$0xff] }
  0x11   :  { %5912 = vrot.lane.b32.xlu0 %v5911_v45, %s6011_s21  ;;  %v5916_v63 = vpack.i.bf16 %v6262_v60, %v700_v59  ;;  %v5921_v3 = vpack.i.bf16 %v700_v59, %v699_v33  ;;  %4937 = vmatpush3.bf16.msra.mxu1 %v6227_v49  ;;  %v86_v10 = vld [vmem:[%s8488_s2 + $0x1f0] sm:$0xff]  ;;  %v59_v14 = vld [vmem:[%s8488_s2 + $0x118] sm:$0xff]  ;;  %v104_v15 = vld [vmem:[%s8488_s2 + $0x280] sm:$0xff] }
  0x12   :  { %4939 = vmatprep.subr.bf16.mxu1 %v6242_v54  ;;  %v105_v17 = vld [vmem:[%s8488_s2 + $0x288] sm:$0xff]  ;;  %v76_v18 = vld [vmem:[%s8488_s2 + $0x1a0] sm:$0xff]  ;;  %v6317_v21 = vpack.c.bf16 %v87_v11, %v86_v10  ;;  %v6320_v22 = vpack.c.bf16 %v59_v14, %v58_v7  ;;  %v106_v31 = vld [vmem:[%s8488_s2 + $0x290] sm:$0xff] }
  0x13   :  { %4913 = vmatpush3.bf16.msra.mxu0 %v6236_v52  ;;  %5917 = vrot.lane.b32.xlu1 %v5916_v63, %s6011_s21  ;;  %v77_v19 = vld [vmem:[%s8488_s2 + $0x1a8] sm:$0xff]  ;;  %v60_v24 = vld [vmem:[%s8488_s2 + $0x120] sm:$0xff]  ;;  %v6326_v26 = vpack.c.bf16 %v105_v17, %v104_v15  ;;  %v107_v32 = vld [vmem:[%s8488_s2 + $0x298] sm:$0xff] }
  0x14   :  { %4915 = vmatprep.subr.bf16.mxu0 %v6251_v57  ;;  %v88_v27 = vld [vmem:[%s8488_s2 + $0x200] sm:$0xff]  ;;  %v89_v28 = vld [vmem:[%s8488_s2 + $0x208] sm:$0xff]  ;;  %v6335_v29 = vpack.c.bf16 %v77_v19, %v76_v18  ;;  %v78_v33 = vld [vmem:[%s8488_s2 + $0x1b0] sm:$0xff]  ;;  %v6364_v40 = vpack.c.bf16 %v107_v32, %v106_v31  ;;  %v8501_v19 = vmov 0.0|0.0  }
  0x15   :  { %5922 = vrot.lane.b32.xlu0 %v5921_v3, %s6011_s21  ;;  %4941 = vmatpush3.bf16.msra.mxu1 %v6276_v4  ;;  %v61_v30 = vld [vmem:[%s8488_s2 + $0x128] sm:$0xff]  ;;  %v79_v35 = vld [vmem:[%s8488_s2 + $0x1b8] sm:$0xff]  ;;  %v6355_v37 = vpack.c.bf16 %v89_v28, %v88_v27  ;;  %v90_v42 = vld [vmem:[%s8488_s2 + $0x210] sm:$0xff] }
  0x16   :  { %4943 = vmatprep.subr.bf16.mxu1 %v6288_v9  ;;  %v6358_v38 = vpack.c.bf16 %v61_v30, %v60_v24  ;;  %v91_v43 = vld [vmem:[%s8488_s2 + $0x218] sm:$0xff]  ;;  %v6373_v44 = vpack.c.bf16 %v79_v35, %v78_v33  ;;  %v108_v46 = vld [vmem:[%s8488_s2 + $0x2a0] sm:$0xff]  ;;  %v109_v47 = vld [vmem:[%s8488_s2 + $0x2a8] sm:$0xff] }
  0x17   :  { %4917 = vmatpush3.bf16.msra.mxu0 %v6282_v6  ;;  %1153 = vrot.lane.b32.xlu1 %v6108_v8, %s6011_s21  ;;  %v62_v8 = vld [vmem:[%s8488_s2 + $0x130] sm:$0xff]  ;;  %v63_v45 = vld [vmem:[%s8488_s2 + $0x138] sm:$0xff]  ;;  %v112_v50 = vld [vmem:[%s8488_s2 + $0x2c0] sm:$0xff]  ;;  %v6388_v51 = vpack.c.bf16 %v91_v43, %v90_v42  ;;  %v6394_v55 = vpack.c.bf16 %v109_v47, %v108_v46 }
  0x18   :  { %4919 = vmatprep.subr.bf16.mxu0 %v6297_v13  ;;  %v6391_v53 = vpack.c.bf16 %v63_v45, %v62_v8  ;;  %v92_v56 = vld [vmem:[%s8488_s2 + $0x220] sm:$0xff]  ;;  %v93_v58 = vld [vmem:[%s8488_s2 + $0x228] sm:$0xff]  ;;  %v1047_v59 = vld [vmem:[%s8486_s0 + $0x58] sm:$0xff] }
  0x19   :  { %4945 = vmatpush3.bf16.msra.mxu1 %v6317_v21  ;;  %v113_v61 = vld [vmem:[%s8488_s2 + $0x2c8] sm:$0xff]  ;;  %v110_v62 = vld [vmem:[%s8488_s2 + $0x2b0] sm:$0xff]  ;;  %v111_v63 = vld [vmem:[%s8488_s2 + $0x2b8] sm:$0xff]  ;;  %v5926_v1 = vpack.i.bf16 %v1047_v59, %v6262_v60  ;;  %v6423_v7 = vpack.c.bf16 %v93_v58, %v92_v56 }
  0x1a   :  { %4947 = vmatprep.subr.bf16.mxu1 %v6326_v26  ;;  %v43_v3 = vld [vmem:[%s8486_s0] sm:$0xff]  ;;  %v114_v5 = vld [vmem:[%s8488_s2 + $0x2d0] sm:$0xff]  ;;  %v6430_v11 = vpack.c.bf16 %v113_v61, %v112_v50  ;;  %v6433_v14 = vpack.c.bf16 %v111_v63, %v110_v62  ;;  %v95_v15 = vld [vmem:[%s8488_s2 + $0x238] sm:$0xff] }
  0x1b   :  { %4921 = vmatpush3.bf16.msra.mxu0 %v6320_v22  ;;  %v94_v10 = vld [vmem:[%s8488_s2 + $0x230] sm:$0xff]  ;;  %5927 = vrot.lane.b32.xlu0 %v5926_v1, %s6011_s21  ;;  %v1048_v17 = vld [vmem:[%s8486_s0 + $0x60] sm:$0xff]  ;;  %v6444_v18 = vld [vmem:[%s8486_s0 + $0x68] sm:$0xff] }
  0x1c   :  { %4923 = vmatprep.subr.bf16.mxu0 %v6335_v29  ;;  %v115_v24 = vld [vmem:[%s8488_s2 + $0x2d8] sm:$0xff]  ;;  %v365_v27 = vld [vmem:[%s8488_s2 + $0x80] sm:$0xff]  ;;  %v366_v28 = vld [vmem:[%s8488_s2 + $0x88] sm:$0xff]  ;;  %v5931_v30 = vpack.i.bf16 %v6444_v18, %v1048_v17  ;;  %v5936_v31 = vpack.i.bf16 %v1048_v17, %v1047_v59  ;;  %v6461_v33 = vpack.c.bf16 %v95_v15, %v94_v10 }
  0x1d   :  { %4949 = vmatpush3.bf16.msra.mxu1 %v6355_v37  ;;  %v116_v32 = vld [vmem:[%s8488_s2 + $0x2e0] sm:$0xff] }
  0x1e   :  { %4951 = vmatprep.subr.bf16.mxu1 %v6364_v40 }
  0x1f   :  { %4925 = vmatpush3.bf16.msra.mxu0 %v6358_v38 }
  0x20   :  { %4927 = vmatprep.subr.bf16.mxu0 %v6373_v44 }
  0x21   :  { %4953 = vmatpush3.bf16.msra.mxu1 %v6388_v51 }
  0x22   :  { %4955 = vmatprep.subr.bf16.mxu1 %v6394_v55 }
  0x23   :  { %4929 = vmatpush3.bf16.msra.mxu0 %v6391_v53 }
  0x24   :  { %4962 = vmatprep.subr.bf16.mxu0 %v8501_v19 }
  0x25   :  { %4957 = vmatpush3.bf16.msra.mxu1 %v6423_v7 }
  0x26   :  { %195 = vmatmul.mubr.f32.vlgmr.msra.gmra.mrb[0].mxu0 %v43_v3 }
  0x27   :  { %17 = vsyncpa [#allocation5], 0  ;;  %4964 = vmatpush3.bf16.msra.mxu0 %v6430_v11  ;;  %v6464_v35 = vpack.c.bf16 %v115_v24, %v114_v5  ;;  %4959 = vmatprep.subr.bf16.mxu1 %v6433_v14  ;;  %v6467_v8 = vpack.c.bf16 %v366_v28, %v365_v27  ;;  %v349_v42 = vld [vmem:[%s8488_s2] sm:$0xff]  ;;  %v350_v43 = vld [vmem:[%s8488_s2 + $0x8] sm:$0xff]  ;;  %vm6013_vm0 = vmmov 0   ;;  %v8499_v47 = vmov 0.0  }
  0x28   :  { %v6478_v45 = vld [vmem:[%s8486_s0 + $0x70] sm:$0xff]  ;;  %4965 = vmatprep.subr.bf16.mxu0 %v8501_v19  ;;  %v117_v46 = vld [vmem:[%s8488_s2 + $0x2e8] sm:$0xff]  ;;  %4782 = vmatprep.mubr.msk.f32.mxu0 %vm6013_vm0, %v8499_v47  ;;  %v368_v56 = vld [vmem:[%s8488_s2 + $0x98] sm:$0xff]  ;;  %v6495_v58 = vpack.c.bf16 %v350_v43, %v349_v42  ;;  %vm126_vm1 = vcmask 523264   ;;  %vm693_vm2 = vcmask 1048064   ;;  %vm3603_vm3 = vcmask 64512  }
  0x29   :  { %v367_v50 = vld [vmem:[%s8488_s2 + $0x90] sm:$0xff]  ;;  %5932 = vrot.lane.b32.xlu1 %v5931_v30, %s6011_s21  ;;  %5937 = vrot.lane.b32.xlu0 %v5936_v31, %s6011_s21  ;;  %v5941_v59 = vpack.i.bf16 %v6478_v45, %v6444_v18  ;;  %v1400_v61 = vld [vmem:[%s8486_s0 + $0x78] sm:$0xff]  ;;  %v6508_v63 = vpack.c.bf16 %v117_v46, %v116_v32 }
  0x2a   :  { %4961 = vmatpush3.bf16.msra.mxu1 %v6461_v33  ;;  %v6505_v62 = vld [vmem:[%s8486_s0 + $0x80] sm:$0xff]  ;;  %v118_v1 = vld [vmem:[%s8488_s2 + $0x2f0] sm:$0xff]  ;;  %v6514_v3 = vpack.c.bf16 %v368_v56, %v367_v50  ;;  %v352_v10 = vld [vmem:[%s8488_s2 + $0x18] sm:$0xff] }
  0x2b   :  { %4967 = vmatpush3.bf16.msra.mxu0 %v6464_v35  ;;  %4975 = vmatprep.subr.bf16.mxu1 %v6467_v8  ;;  %v351_v5 = vld [vmem:[%s8488_s2 + $0x10] sm:$0xff]  ;;  %v119_v15 = vld [vmem:[%s8488_s2 + $0x2f8] sm:$0xff]  ;;  %v369_v17 = vld [vmem:[%s8488_s2 + $0xa0] sm:$0xff]  ;;  %v5946_v27 = vpack.i.bf16 %v6505_v62, %v1400_v61 }
  0x2c   :  { %4968 = vmatprep.subr.bf16.mxu0 %v8501_v19  ;;  %v370_v24 = vld [vmem:[%s8488_s2 + $0xa8] sm:$0xff]  ;;  %v6537_v28 = vpack.c.bf16 %v352_v10, %v351_v5  ;;  %v6541_v30 = vpack.c.bf16 %v119_v15, %v118_v1  ;;  %v371_v32 = vld [vmem:[%s8488_s2 + $0xb0] sm:$0xff]  ;;  %v372_v42 = vld [vmem:[%s8488_s2 + $0xb8] sm:$0xff] }
  0x2d   :  { %265 = vmatmul.mubr.f32.vlgmr.msra.gmra.mrb[0].mxu1 %v6092_v2  ;;  %1505 = vrot.lane.b32.xlu1 %v6262_v60, %s6011_s21  ;;  %v6544_v31 = vpack.c.bf16 %v370_v24, %v369_v17  ;;  %v353_v2 = vld [vmem:[%s8488_s2 + $0x20] sm:$0xff]  ;;  %v354_v60 = vld [vmem:[%s8488_s2 + $0x28] sm:$0xff]  ;;  %v6565_v46 = vpack.c.bf16 %v372_v42, %v371_v32  ;;  %v355_v50 = vld [vmem:[%s8488_s2 + $0x30] sm:$0xff]  ;;  %v5951_v17 = vpack.i.bf16 %v1400_v61, %v6478_v45 }
  0x2e   :  { %4977 = vmatpush3.bf16.msra.mxu1 %v6495_v58  ;;  %5942 = vrot.lane.b32.xlu0 %v5941_v59, %s6011_s21  ;;  %v6561_v43 = vpack.c.bf16 %v354_v60, %v353_v2  ;;  %v356_v56 = vld [vmem:[%s8488_s2 + $0x38] sm:$0xff]  ;;  %v357_v1 = vld [vmem:[%s8488_s2 + $0x40] sm:$0xff]  ;;  %v358_v5 = vld [vmem:[%s8488_s2 + $0x48] sm:$0xff] }
  0x2f   :  { %4970 = vmatpush3.bf16.msra.mxu0 %v6508_v63  ;;  %4979 = vmatprep.subr.bf16.mxu1 %v6514_v3  ;;  %v6579_v59 = vpack.c.bf16 %v356_v56, %v355_v50  ;;  %v360_v10 = vld [vmem:[%s8488_s2 + $0x58] sm:$0xff]  ;;  %v361_v24 = vld [vmem:[%s8488_s2 + $0x60] sm:$0xff]  ;;  %v1747_v45 = vld [vmem:[%s8486_s0 + $0x88] sm:$0xff] }
  0x30   :  { %4971 = vmatprep.subr.bf16.mxu0 %v8501_v19  ;;  %v363_v61 = vld [vmem:[%s8488_s2 + $0x70] sm:$0xff]  ;;  %v364_v60 = vld [vmem:[%s8488_s2 + $0x78] sm:$0xff]  ;;  %v5956_v32 = vpack.i.bf16 %v1747_v45, %v6505_v62 }
  0x31   :  { %5947 = vrot.lane.b32.xlu1 %v5946_v27, %s6011_s21  ;;  %v362_v27 = vld [vmem:[%s8488_s2 + $0x68] sm:$0xff]  ;;  %v6634_v42 = vpack.c.bf16 %v364_v60, %v363_v61 }
  0x32   :  { %4981 = vmatpush3.bf16.msra.mxu1 %v6537_v28  ;;  %5952 = vrot.lane.b32.xlu0 %v5951_v17, %s6011_s21  ;;  %v6617_v2 = vpack.c.bf16 %v362_v27, %v361_v24 }
  0x33   :  { %4973 = vmatpush3.bf16.msra.mxu0 %v6541_v30  ;;  %4983 = vmatprep.subr.bf16.mxu1 %v6544_v31 }
  0x34   :  { %5007 = vmatprep.subr.bf16.mxu0 %v6251_v57 }
  0x35   :  { %1853 = vrot.lane.b32.xlu1 %v6444_v18, %s6011_s21  ;;  %v359_v18 = vld [vmem:[%s8488_s2 + $0x50] sm:$0xff] }
  0x36   :  { %4783 = vmatmul.mubr.msk.f32.vlgmr.msra.gmra.mrb[2].mxu0 %vm126_vm1, %v6084_v0  ;;  %4985 = vmatpush3.bf16.msra.mxu1 %v6561_v43  ;;  %v6591_v0 = vpack.c.bf16 %v358_v5, %v357_v1  ;;  %v6603_v15 = vpack.c.bf16 %v360_v10, %v359_v18 }
  0x37   :  { %5009 = vmatpush3.bf16.msra.mxu0 %v6282_v6  ;;  %4987 = vmatprep.subr.bf16.mxu1 %v6565_v46 }
  0x38   :  { %5011 = vmatprep.subr.bf16.mxu0 %v6297_v13  ;;  %5957 = vrot.lane.b32.xlu0 %v5956_v32, %s6011_s21 }
  0x3a   :  { %4989 = vmatpush3.bf16.msra.mxu1 %v6579_v59 }
  0x3b   :  { %5013 = vmatpush3.bf16.msra.mxu0 %v6320_v22  ;;  %4991 = vmatprep.subr.bf16.mxu1 %v6130_v16 }
  0x3c   :  { %5015 = vmatprep.subr.bf16.mxu0 %v6335_v29 }
  0x3e   :  { %4993 = vmatpush3.bf16.msra.mxu1 %v6591_v0 }
  0x3f   :  { %5017 = vmatpush3.bf16.msra.mxu0 %v6358_v38  ;;  %4995 = vmatprep.subr.bf16.mxu1 %v6151_v23 }
  0x40   :  { %5019 = vmatprep.subr.bf16.mxu0 %v6373_v44 }
  0x42   :  { %4997 = vmatpush3.bf16.msra.mxu1 %v6603_v15 }
  0x43   :  { %5021 = vmatpush3.bf16.msra.mxu0 %v6391_v53  ;;  %4999 = vmatprep.subr.bf16.mxu1 %v6188_v36 }
  0x44   :  { %5023 = vmatprep.subr.bf16.mxu0 %v6196_v39  ;;  %v1748_v39 = vld [vmem:[%s8486_s0 + $0x90] sm:$0xff] }
  0x46   :  { %5001 = vmatpush3.bf16.msra.mxu1 %v6617_v2 }
  0x47   :  { %5025 = vmatpush3.bf16.msra.mxu0 %v6118_v12  ;;  %5003 = vmatprep.subr.bf16.mxu1 %v6236_v52  ;;  %v1749_v12 = vld [vmem:[%s8486_s0 + $0x98] sm:$0xff] }
  0x48   :  { %5027 = vmatprep.subr.bf16.mxu0 %v6227_v49  ;;  %v5961_v49 = vpack.i.bf16 %v1749_v12, %v1748_v39 }
  0x4a   :  { %5005 = vmatpush3.bf16.msra.mxu1 %v6634_v42  ;;  %5962 = vrot.lane.b32.xlu1 %v5961_v49, %s6011_s21 }
  0x4b   :  { %5029 = vmatpush3.bf16.msra.mxu0 %v6142_v20  ;;  %5039 = vmatprep.subr.bf16.mxu1 %v6326_v26  ;;  %v5966_v20 = vpack.i.bf16 %v1748_v39, %v1747_v45 }
  0x4c   :  { %5031 = vmatprep.subr.bf16.mxu0 %v6276_v4 }
  0x4d   :  { %5967 = vrot.lane.b32.xlu0 %v5966_v20, %s6011_s21 }
  0x4e   :  { %2205 = vrot.lane.b32.xlu1 %v6505_v62, %s6011_s21 }
  0x4f   :  { %5033 = vmatpush3.bf16.msra.mxu0 %v6158_v25  ;;  %v6660_v25 = vld [vmem:[%s8486_s0 + $0xa0] sm:$0xff] }
  0x50   :  { %5035 = vmatprep.subr.bf16.mxu0 %v6317_v21  ;;  %v5971_v4 = vpack.i.bf16 %v6660_v25, %v1749_v12 }
  0x52   :  { %5972 = vrot.lane.b32.xlu0 %v5971_v4, %s6011_s21  ;;  %v2100_v4 = vld [vmem:[%s8486_s0 + $0xa8] sm:$0xff] }
  0x53   :  { %5037 = vmatpush3.bf16.msra.mxu0 %v6204_v41 }
  0x54   :  { %5071 = vmatprep.subr.bf16.mxu0 %v6467_v8 }
  0x76   :  { %v6664_v21 = vpop.permute.xlu1 %5897 }
  0x77   :  { %v5900_v41 = vunpack.i.h.bf16 %v6664_v21  ;;  %v5899_v50 = vunpack.i.l.bf16 %v6664_v21  ;;  %v5893_v56 = vpop.permute.xlu0 %5892  ;;  %v745_v21 = vld [vmem:[%s8488_s2 + $0x158] sm:$0xff] }
  0x78   :  { %v5895_v62 = vunpack.i.h.bf16 %v5893_v56  ;;  %v5894_v1 = vunpack.i.l.bf16 %v5893_v56 }
  0x79   :  { %v469_v5 = vsel %vm126_vm1, %v5899_v50, %v5900_v41 }
  0x7a   :  { %v467_v18 = vsel %vm126_vm1, %v5894_v1, %v5895_v62  ;;  %612 = vmatprep.mubr.f32.mxu0 %v469_v5  ;;  %v468_v10 = vsel %vm126_vm1, %v5895_v62, %v5899_v50  ;;  %v6673_v17 = vpop.permute.xlu1 %5902  ;;  %v6699_v50 = vld [vmem:[%s8486_s0 + $0xb0] sm:$0xff]  ;;  %v763_v5 = vld [vmem:[%s8488_s2 + $0x1e8] sm:$0xff] }
  0x7b   :  { %v453_v24 = vpop.permute.xlu0 %452  ;;  %542 = vmatprep.mubr.f32.mxu1 %v467_v18  ;;  %613 = vmatmul.mubr.f32.vlgmr.msra.gmra.mrb[4].mxu0 %v468_v10  ;;  %v5905_v27 = vunpack.i.h.bf16 %v6673_v17  ;;  %v5904_v45 = vunpack.i.l.bf16 %v6673_v17  ;;  %v5976_v56 = vpack.i.bf16 %v6699_v50, %v2100_v4  ;;  %v778_v10 = vld [vmem:[%s8488_s2 + $0x260] sm:$0xff]  ;;  %v779_v17 = vld [vmem:[%s8488_s2 + $0x268] sm:$0xff] }
  0x7c   :  { %v466_v61 = vsel %vm126_vm1, %v453_v24, %v5894_v1  ;;  %5073 = vmatpush3.bf16.msra.mxu0 %v6495_v58 }
  0x7d   :  { %543 = vmatmul.mubr.f32.vlgmr.msra.gmra.mrb[2].mxu1 %v466_v61  ;;  %5075 = vmatprep.subr.bf16.mxu0 %v6514_v3  ;;  %v471_v60 = vsel %vm126_vm1, %v5904_v45, %v5905_v27  ;;  %v6848_v61 = vpack.c.bf16 %v779_v17, %v778_v10  ;;  %v1086_v10 = vld [vmem:[%s8488_s2 + $0x120] sm:$0xff] }
  0x7e   :  { %5041 = vmatpush3.bf16.msra.mxu1 %v6355_v37  ;;  %682 = vmatprep.mubr.f32.mxu1 %v471_v60  ;;  %v806_v62 = vpop.permute.xlu1 %805  ;;  %v764_v60 = vld [vmem:[%s8488_s2 + $0x1f0] sm:$0xff] }
  0x7f   :  { %5043 = vmatprep.subr.bf16.mxu1 %v6364_v40  ;;  %v6683_v32 = vpop.permute.xlu0 %5907  ;;  %5977 = vrot.lane.b32.xlu1 %v5976_v56, %s6011_s21  ;;  %v1098_v56 = vld [vmem:[%s8488_s2 + $0x180] sm:$0xff] }
  0x80   :  { %5077 = vmatpush3.bf16.msra.mxu0 %v6537_v28  ;;  %v5910_v39 = vunpack.i.h.bf16 %v6683_v32  ;;  %v5909_v49 = vunpack.i.l.bf16 %v6683_v32  ;;  %v1087_v32 = vld [vmem:[%s8488_s2 + $0x128] sm:$0xff] }
  0x81   :  { %5079 = vmatprep.subr.bf16.mxu0 %v6544_v31 }
  0x82   :  { %5045 = vmatpush3.bf16.msra.mxu1 %v6388_v51  ;;  %v820_v20 = vsel %vm126_vm1, %v5909_v49, %v5910_v39 }
  0x83   :  { %5047 = vmatprep.subr.bf16.mxu1 %v6394_v55  ;;  %895 = vmatprep.mubr.f32.mxu0 %v820_v20  ;;  %v780_v20 = vld [vmem:[%s8488_s2 + $0x270] sm:$0xff] }
  0x84   :  { %5081 = vmatpush3.bf16.msra.mxu0 %v6561_v43  ;;  %2525 = vrot.lane.b32.xlu1 %v1749_v12, %s6011_s21  ;;  %v6728_v12 = vpop.permute.xlu0 %5912 }
  0x85   :  { %5083 = vmatprep.subr.bf16.mxu0 %v6565_v46 }
  0x86   :  { %5049 = vmatpush3.bf16.msra.mxu1 %v6423_v7 }
  0x87   :  { %5051 = vmatprep.subr.bf16.mxu1 %v6433_v14 }
  0x88   :  { %5085 = vmatpush3.bf16.msra.mxu0 %v6579_v59  ;;  %v6826_v18 = vpop.permute.xlu0 %5922 }
  0x89   :  { %5087 = vmatprep.subr.bf16.mxu0 %v6130_v16  ;;  %v6720_v16 = vpop.permute.xlu1 %5917 }
  0x8a   :  { %5053 = vmatpush3.bf16.msra.mxu1 %v6461_v33 }
  0x8b   :  { %5055 = vmatprep.subr.bf16.mxu1 %v6430_v11 }
  0x8c   :  { %5089 = vmatpush3.bf16.msra.mxu0 %v6591_v0 }
  0x8d   :  { %5091 = vmatprep.subr.bf16.mxu0 %v6151_v23  ;;  %v5920_v23 = vunpack.i.h.bf16 %v6720_v16 }
  0x8e   :  { %5057 = vmatpush3.bf16.msra.mxu1 %v6182_v34  ;;  %v5919_v34 = vunpack.i.l.bf16 %v6720_v16 }
  0x8f   :  { %5059 = vmatprep.subr.bf16.mxu1 %v6464_v35 }
  0x90   :  { %5093 = vmatpush3.bf16.msra.mxu0 %v6603_v15  ;;  %v824_v1 = vsel %vm126_vm1, %v5919_v34, %v5920_v23 }
  0x91   :  { %5095 = vmatprep.subr.bf16.mxu0 %v6188_v36  ;;  %v5915_v36 = vunpack.i.h.bf16 %v6728_v12 }
  0x92   :  { %5061 = vmatpush3.bf16.msra.mxu1 %v6224_v48  ;;  %v819_v48 = vsel %vm126_vm1, %v806_v62, %v5909_v49  ;;  %v765_v49 = vld [vmem:[%s8488_s2 + $0x1f8] sm:$0xff]  ;;  %v6872_v62 = vpop.permute.xlu0 %5927 }
  0x93   :  { %5063 = vmatprep.subr.bf16.mxu1 %v6508_v63  ;;  %v6875_v23 = vpack.c.bf16 %v765_v49, %v764_v60  ;;  %v1075_v60 = vld [vmem:[%s8488_s2 + $0xc8] sm:$0xff]  ;;  %v1077_v49 = vld [vmem:[%s8488_s2 + $0xd8] sm:$0xff] }
  0x94   :  { %5097 = vmatpush3.bf16.msra.mxu0 %v6617_v2 }
  0x95   :  { %5099 = vmatprep.subr.bf16.mxu0 %v6236_v52  ;;  %v5914_v52 = vunpack.i.l.bf16 %v6728_v12  ;;  %v1105_v12 = vld [vmem:[%s8488_s2 + $0x1b8] sm:$0xff] }
  0x96   :  { %5065 = vmatpush3.bf16.msra.mxu1 %v6242_v54 }
  0x97   :  { %5067 = vmatprep.subr.bf16.mxu1 %v6541_v30  ;;  %v822_v54 = vsel %vm126_vm1, %v5914_v52, %v5915_v36 }
  0x98   :  { %5101 = vmatpush3.bf16.msra.mxu0 %v6634_v42 }
  0x99   :  { %5135 = vmatprep.subr.bf16.mxu0 %v6326_v26  ;;  %v470_v26 = vsel %vm126_vm1, %v5900_v41, %v5904_v45  ;;  %v747_v45 = vld [vmem:[%s8488_s2 + $0x168] sm:$0xff] }
  0x9a   :  { %5069 = vmatpush3.bf16.msra.mxu1 %v6288_v9  ;;  %v759_v9 = vld [vmem:[%s8488_s2 + $0x1c8] sm:$0xff] }
  0x9b   :  { %896 = vmatmul.mubr.f32.vlgmr.msra.gmra.mrb[6].mxu0 %v819_v48  ;;  %5103 = vmatprep.subr.bf16.mxu1 %v6251_v57  ;;  %v5981_v57 = vpack.i.bf16 %v2100_v4, %v6660_v25  ;;  %v781_v4 = vld [vmem:[%s8488_s2 + $0x278] sm:$0xff]  ;;  %v748_v48 = vld [vmem:[%s8488_s2 + $0x170] sm:$0xff] }
  0x9c   :  { %5137 = vmatpush3.bf16.msra.mxu0 %v6355_v37  ;;  %1035 = vmatprep.mubr.f32.mxu0 %v824_v1  ;;  %v749_v1 = vld [vmem:[%s8488_s2 + $0x178] sm:$0xff] }
  0x9d   :  { %683 = vmatmul.mubr.f32.vlgmr.msra.gmra.mrb[4].mxu1 %v470_v26  ;;  %5139 = vmatprep.subr.bf16.mxu0 %v6364_v40  ;;  %v742_v40 = vld [vmem:[%s8488_s2 + $0x140] sm:$0xff] }
  0x9e   :  { %5105 = vmatpush3.bf16.msra.mxu1 %v6282_v6  ;;  %965 = vmatprep.mubr.f32.mxu1 %v822_v54  ;;  %v758_v6 = vld [vmem:[%s8488_s2 + $0x1c0] sm:$0xff]  ;;  %v6884_v54 = vpack.c.bf16 %v781_v4, %v780_v20  ;;  %v1079_v20 = vld [vmem:[%s8488_s2 + $0xe8] sm:$0xff]  ;;  %v1080_v4 = vld [vmem:[%s8488_s2 + $0xf0] sm:$0xff] }
  0x9f   :  { %5107 = vmatprep.subr.bf16.mxu1 %v6297_v13  ;;  %5982 = vrot.lane.b32.xlu0 %v5981_v57, %s6011_s21  ;;  %v774_v13 = vld [vmem:[%s8488_s2 + $0x240] sm:$0xff]  ;;  %v6778_v37 = vpack.c.bf16 %v759_v9, %v758_v6  ;;  %v1083_v6 = vld [vmem:[%s8488_s2 + $0x108] sm:$0xff]  ;;  %v8504_v9 = vunpack.i.h.bf16 %v6872_v62 }
  0xa0   :  { %5141 = vmatpush3.bf16.msra.mxu0 %v6388_v51  ;;  %v743_v51 = vld [vmem:[%s8488_s2 + $0x148] sm:$0xff]  ;;  %v1082_v57 = vld [vmem:[%s8488_s2 + $0x100] sm:$0xff] }
  0xa1   :  { %5143 = vmatprep.subr.bf16.mxu0 %v6394_v55  ;;  %v761_v55 = vld [vmem:[%s8488_s2 + $0x1d8] sm:$0xff] }
  0xa2   :  { %5109 = vmatpush3.bf16.msra.mxu1 %v6320_v22  ;;  %v775_v22 = vld [vmem:[%s8488_s2 + $0x248] sm:$0xff] }
  0xa3   :  { %5111 = vmatprep.subr.bf16.mxu1 %v6335_v29  ;;  %v2447_v29 = vld [vmem:[%s8486_s0 + $0xb8] sm:$0xff]  ;;  %2531 = vrot.lane.b32.xlu0 %v6699_v50, %s6011_s21 }
  0xa4   :  { %5145 = vmatpush3.bf16.msra.mxu0 %v6423_v7  ;;  %2533 = vrot.lane.b32.xlu1 %v2447_v29, %s6011_s21  ;;  %v776_v7 = vld [vmem:[%s8488_s2 + $0x250] sm:$0xff]  ;;  %v1101_v29 = vld [vmem:[%s8488_s2 + $0x198] sm:$0xff] }
  0xa5   :  { %5147 = vmatprep.subr.bf16.mxu0 %v6433_v14  ;;  %v777_v14 = vld [vmem:[%s8488_s2 + $0x258] sm:$0xff] }
  0xa6   :  { %5113 = vmatpush3.bf16.msra.mxu1 %v6358_v38  ;;  %v6788_v38 = vpack.c.bf16 %v775_v22, %v774_v13  ;;  %v6818_v41 = vpack.c.bf16 %v777_v14, %v776_v7  ;;  %v5929_v13 = vunpack.i.l.bf16 %v6872_v62  ;;  %v6898_v22 = vpack.c.bf16 %v749_v1, %v748_v48  ;;  %v1084_v14 = vld [vmem:[%s8488_s2 + $0x110] sm:$0xff]  ;;  %v1419_v48 = vld [vmem:[%s8488_s2 + $0x88] sm:$0xff]  ;;  %v7036_v1 = vpop.permute.xlu0 %5937 }
  0xa7   :  { %5115 = vmatprep.subr.bf16.mxu1 %v6373_v44  ;;  %v760_v44 = vld [vmem:[%s8488_s2 + $0x1d0] sm:$0xff] }
  0xa8   :  { %5149 = vmatpush3.bf16.msra.mxu0 %v6461_v33  ;;  %v6806_v33 = vpack.c.bf16 %v743_v51, %v742_v40  ;;  %v6809_v25 = vpack.c.bf16 %v761_v55, %v760_v44  ;;  %v5925_v40 = vunpack.i.h.bf16 %v6826_v18  ;;  %v5924_v51 = vunpack.i.l.bf16 %v6826_v18  ;;  %v1117_v18 = vld [vmem:[%s8488_s2 + $0x218] sm:$0xff] }
  0xa9   :  { %5151 = vmatprep.subr.bf16.mxu0 %v6430_v11  ;;  %v744_v11 = vld [vmem:[%s8488_s2 + $0x150] sm:$0xff]  ;;  %v823_v44 = vsel %vm126_vm1, %v5915_v36, %v5919_v34  ;;  %v6915_v55 = vpack.c.bf16 %v1083_v6, %v1082_v57  ;;  %v1170_v16 = vsel %vm126_vm1, %v5929_v13, %v8504_v9  ;;  %v1102_v34 = vld [vmem:[%s8488_s2 + $0x1a0] sm:$0xff]  ;;  %v1103_v36 = vld [vmem:[%s8488_s2 + $0x1a8] sm:$0xff] }
  0xaa   :  { %5117 = vmatpush3.bf16.msra.mxu1 %v6391_v53  ;;  %v762_v53 = vld [vmem:[%s8488_s2 + $0x1e0] sm:$0xff]  ;;  %v6836_v24 = vpack.c.bf16 %v745_v21, %v744_v11  ;;  %v1085_v11 = vld [vmem:[%s8488_s2 + $0x118] sm:$0xff]  ;;  %v1168_v21 = vsel %vm126_vm1, %v5924_v51, %v5925_v40  ;;  %v1131_v6 = vld [vmem:[%s8488_s2 + $0x288] sm:$0xff]  ;;  %v7288_v19 = vpop.permute.xlu0 %5942 }
  0xab   :  { %5119 = vmatprep.subr.bf16.mxu1 %v6778_v37  ;;  %v6839_v27 = vpack.c.bf16 %v763_v5, %v762_v53  ;;  %v821_v53 = vsel %vm126_vm1, %v5910_v39, %v5914_v52  ;;  %v6950_v5 = vpack.c.bf16 %v1085_v11, %v1084_v14  ;;  %v1104_v39 = vld [vmem:[%s8488_s2 + $0x1b0] sm:$0xff]  ;;  %v6970_v52 = vpack.c.bf16 %v1087_v32, %v1086_v10 }
  0xac   :  { %5153 = vmatpush3.bf16.msra.mxu0 %v6788_v38  ;;  %v6973_v17 = vpack.c.bf16 %v1105_v12, %v1104_v39  ;;  %v8503_v14 = vunpack.i.h.bf16 %v7036_v1  ;;  %v5939_v11 = vunpack.i.l.bf16 %v7036_v1  ;;  %v1169_v32 = vsel %vm126_vm1, %v5925_v40, %v5929_v13  ;;  %v1132_v12 = vld [vmem:[%s8488_s2 + $0x290] sm:$0xff]  ;;  %v1405_v13 = vld [vmem:[%s8488_s2 + $0x18] sm:$0xff] }
  0xad   :  { %5155 = vmatprep.subr.bf16.mxu0 %v6464_v35  ;;  %v746_v35 = vld [vmem:[%s8488_s2 + $0x160] sm:$0xff] }
  0xae   :  { %5121 = vmatpush3.bf16.msra.mxu1 %v6806_v33  ;;  %v6864_v50 = vpack.c.bf16 %v747_v45, %v746_v35  ;;  %v1089_v35 = vld [vmem:[%s8488_s2 + $0x138] sm:$0xff]  ;;  %v1074_v45 = vld [vmem:[%s8488_s2 + $0xc0] sm:$0xff] }
  0xaf   :  { %5123 = vmatprep.subr.bf16.mxu1 %v6809_v25 }
  0xb0   :  { %5157 = vmatpush3.bf16.msra.mxu0 %v6818_v41 }
  0xb1   :  { %5159 = vmatprep.subr.bf16.mxu0 %v6508_v63  ;;  %v1099_v63 = vld [vmem:[%s8488_s2 + $0x188] sm:$0xff] }
  0xb2   :  { %5125 = vmatpush3.bf16.msra.mxu1 %v6836_v24  ;;  %v6887_v26 = vpack.c.bf16 %v1099_v63, %v1098_v56  ;;  %v1081_v56 = vld [vmem:[%s8488_s2 + $0xf8] sm:$0xff]  ;;  %v1154_v63 = vpop.permute.xlu1 %1153 }
  0xb3   :  { %5127 = vmatprep.subr.bf16.mxu1 %v6839_v27  ;;  %v7039_v57 = vpack.c.bf16 %v1081_v56, %v1080_v4 }
  0xb4   :  { %5161 = vmatpush3.bf16.msra.mxu0 %v6848_v61 }
  0xb5   :  { %5163 = vmatprep.subr.bf16.mxu0 %v6541_v30  ;;  %v1100_v30 = vld [vmem:[%s8488_s2 + $0x190] sm:$0xff] }
  0xb6   :  { %5129 = vmatpush3.bf16.msra.mxu1 %v6864_v50  ;;  %v6918_v7 = vpack.c.bf16 %v1101_v29, %v1100_v30  ;;  %v1402_v29 = vld [vmem:[%s8488_s2] sm:$0xff] }
  0xb7   :  { %5131 = vmatprep.subr.bf16.mxu1 %v6875_v23 }
  0xb8   :  { %5165 = vmatpush3.bf16.msra.mxu0 %v6884_v54 }
  0xb9   :  { %5199 = vmatprep.subr.bf16.mxu0 %v6887_v26 }
  0xba   :  { %5133 = vmatpush3.bf16.msra.mxu1 %v6898_v22 }
  0xbb   :  { %1036 = vmatmul.mubr.f32.vlgmr.msra.gmra.mrb[8].mxu0 %v823_v44  ;;  %5167 = vmatprep.subr.bf16.mxu1 %v6467_v8  ;;  %v6953_v8 = vpack.c.bf16 %v1103_v36, %v1102_v34  ;;  %v1403_v44 = vld [vmem:[%s8488_s2 + $0x8] sm:$0xff]  ;;  %v1421_v34 = vld [vmem:[%s8488_s2 + $0x98] sm:$0xff]  ;;  %v7066_v36 = vpop.permute.xlu1 %5932 }
  0xbc   :  { %5201 = vmatpush3.bf16.msra.mxu0 %v6915_v55  ;;  %1313 = vmatprep.mubr.f32.mxu0 %v1170_v16  ;;  %v1420_v16 = vld [vmem:[%s8488_s2 + $0x90] sm:$0xff]  ;;  %v5935_v10 = vunpack.i.h.bf16 %v7066_v36  ;;  %v7084_v39 = vpack.c.bf16 %v1403_v44, %v1402_v29  ;;  %v5934_v40 = vunpack.i.l.bf16 %v7066_v36 }
  0xbd   :  { %966 = vmatmul.mubr.f32.vlgmr.msra.gmra.mrb[6].mxu1 %v821_v53  ;;  %5203 = vmatprep.subr.bf16.mxu0 %v6918_v7  ;;  %v1114_v53 = vld [vmem:[%s8488_s2 + $0x200] sm:$0xff]  ;;  %v1424_v44 = vld [vmem:[%s8488_s2 + $0xb0] sm:$0xff] }
  0xbe   :  { %5169 = vmatpush3.bf16.msra.mxu1 %v6495_v58  ;;  %1243 = vmatprep.mubr.f32.mxu1 %v1168_v21  ;;  %v1088_v58 = vld [vmem:[%s8488_s2 + $0x130] sm:$0xff] }
  0xbf   :  { %5171 = vmatprep.subr.bf16.mxu1 %v6514_v3  ;;  %v6984_v3 = vpack.c.bf16 %v1089_v35, %v1088_v58  ;;  %v1133_v58 = vld [vmem:[%s8488_s2 + $0x298] sm:$0xff]  ;;  %v7093_v35 = vpack.c.bf16 %v1421_v34, %v1420_v16 }
  0xc0   :  { %5205 = vmatpush3.bf16.msra.mxu0 %v6950_v5  ;;  %v7120_v4 = vpack.c.bf16 %v1133_v58, %v1132_v12  ;;  %v1425_v16 = vld [vmem:[%s8488_s2 + $0xb8] sm:$0xff] }
  0xc1   :  { %5207 = vmatprep.subr.bf16.mxu0 %v6953_v8  ;;  %v1137_v12 = vld [vmem:[%s8488_s2 + $0x2b8] sm:$0xff]  ;;  %v7177_v58 = vpack.c.bf16 %v1425_v16, %v1424_v44  ;;  %v1140_v16 = vld [vmem:[%s8488_s2 + $0x2d0] sm:$0xff] }
  0xc2   :  { %5173 = vmatpush3.bf16.msra.mxu1 %v6537_v28  ;;  %v6995_v28 = vpack.c.bf16 %v1075_v60, %v1074_v45  ;;  %v1404_v45 = vld [vmem:[%s8488_s2 + $0x10] sm:$0xff]  ;;  %v1520_v60 = vsel %vm126_vm1, %v5939_v11, %v8503_v14  ;;  %v5945_v14 = vunpack.i.h.bf16 %v7288_v19 }
  0xc3   :  { %5175 = vmatprep.subr.bf16.mxu1 %v6544_v31  ;;  %v1076_v31 = vld [vmem:[%s8488_s2 + $0xd0] sm:$0xff]  ;;  %v7132_v56 = vpack.c.bf16 %v1405_v13, %v1404_v45  ;;  %v1409_v13 = vld [vmem:[%s8488_s2 + $0x38] sm:$0xff] }
  0xc4   :  { %5209 = vmatpush3.bf16.msra.mxu0 %v6970_v52  ;;  %v1408_v45 = vld [vmem:[%s8488_s2 + $0x30] sm:$0xff] }
  0xc5   :  { %5211 = vmatprep.subr.bf16.mxu0 %v6973_v17 }
  0xc6   :  { %5177 = vmatpush3.bf16.msra.mxu1 %v6561_v43  ;;  %v7007_v43 = vpack.c.bf16 %v1077_v49, %v1076_v31  ;;  %v1167_v31 = vsel %vm126_vm1, %v1154_v63, %v5924_v51  ;;  %v1172_v51 = vsel %vm126_vm1, %v5934_v40, %v5935_v10  ;;  %v1134_v63 = vld [vmem:[%s8488_s2 + $0x2a0] sm:$0xff] }
  0xc7   :  { %5179 = vmatprep.subr.bf16.mxu1 %v6565_v46  ;;  %v1078_v46 = vld [vmem:[%s8488_s2 + $0xe0] sm:$0xff] }
  0xc8   :  { %5213 = vmatpush3.bf16.msra.mxu0 %v6984_v3 }
  0xc9   :  { %5215 = vmatprep.subr.bf16.mxu0 %v6778_v37 }
  0xca   :  { %5181 = vmatpush3.bf16.msra.mxu1 %v6579_v59  ;;  %v7019_v59 = vpack.c.bf16 %v1079_v20, %v1078_v46  ;;  %v1422_v46 = vld [vmem:[%s8488_s2 + $0xa0] sm:$0xff]  ;;  %v1423_v20 = vld [vmem:[%s8488_s2 + $0xa8] sm:$0xff] }
  0xcb   :  { %5183 = vmatprep.subr.bf16.mxu1 %v6995_v28 }
  0xcc   :  { %5217 = vmatpush3.bf16.msra.mxu0 %v6806_v33 }
  0xcd   :  { %5219 = vmatprep.subr.bf16.mxu0 %v6809_v25 }
  0xce   :  { %5185 = vmatpush3.bf16.msra.mxu1 %v6591_v0  ;;  %v1418_v0 = vld [vmem:[%s8488_s2 + $0x80] sm:$0xff] }
  0xcf   :  { %5187 = vmatprep.subr.bf16.mxu1 %v7007_v43  ;;  %v7049_v30 = vpack.c.bf16 %v1419_v48, %v1418_v0  ;;  %v1135_v0 = vld [vmem:[%s8488_s2 + $0x2a8] sm:$0xff]  ;;  %v7141_v48 = vpack.c.bf16 %v1423_v20, %v1422_v46  ;;  %v1120_v46 = vld [vmem:[%s8488_s2 + $0x230] sm:$0xff]  ;;  %v1121_v20 = vld [vmem:[%s8488_s2 + $0x238] sm:$0xff] }
  0xd0   :  { %5221 = vmatpush3.bf16.msra.mxu0 %v6836_v24  ;;  %v7159_v34 = vpack.c.bf16 %v1135_v0, %v1134_v63  ;;  %v1410_v63 = vld [vmem:[%s8488_s2 + $0x40] sm:$0xff]  ;;  %v1411_v0 = vld [vmem:[%s8488_s2 + $0x48] sm:$0xff] }
  0xd1   :  { %5223 = vmatprep.subr.bf16.mxu0 %v6839_v27  ;;  %v7220_v44 = vpack.c.bf16 %v1411_v0, %v1410_v63 }
  0xd2   :  { %5189 = vmatpush3.bf16.msra.mxu1 %v6603_v15  ;;  %v1130_v15 = vld [vmem:[%s8488_s2 + $0x280] sm:$0xff] }
  0xd3   :  { %5191 = vmatprep.subr.bf16.mxu1 %v7019_v59  ;;  %v7069_v21 = vpack.c.bf16 %v1131_v6, %v1130_v15  ;;  %v1406_v15 = vld [vmem:[%s8488_s2 + $0x20] sm:$0xff]  ;;  %v1407_v6 = vld [vmem:[%s8488_s2 + $0x28] sm:$0xff] }
  0xd4   :  { %5225 = vmatpush3.bf16.msra.mxu0 %v6864_v50  ;;  %v7168_v10 = vpack.c.bf16 %v1407_v6, %v1406_v15  ;;  %v7214_v15 = vpack.c.bf16 %v1121_v20, %v1120_v46  ;;  %v1143_v46 = vld [vmem:[%s8488_s2 + $0x2e8] sm:$0xff]  ;;  %v1414_v20 = vld [vmem:[%s8488_s2 + $0x60] sm:$0xff] }
  0xd5   :  { %5227 = vmatprep.subr.bf16.mxu0 %v6875_v23  ;;  %8506 = vst [vmem:[#allocation7_spill] sm:$0xff] %v7069_v21 }
  0xd6   :  { %5193 = vmatpush3.bf16.msra.mxu1 %v6617_v2  ;;  %v1115_v2 = vld [vmem:[%s8488_s2 + $0x208] sm:$0xff] }
  0xd7   :  { %5195 = vmatprep.subr.bf16.mxu1 %v7039_v57  ;;  %v7111_v49 = vpack.c.bf16 %v1115_v2, %v1114_v53  ;;  %v1118_v53 = vld [vmem:[%s8488_s2 + $0x220] sm:$0xff]  ;;  %v1119_v2 = vld [vmem:[%s8488_s2 + $0x228] sm:$0xff] }
  0xd8   :  { %5229 = vmatpush3.bf16.msra.mxu0 %v6898_v22 }
  0xd9   :  { %5263 = vmatprep.subr.bf16.mxu0 %v7049_v30 }
  0xda   :  { %5197 = vmatpush3.bf16.msra.mxu1 %v6634_v42  ;;  %v1116_v42 = vld [vmem:[%s8488_s2 + $0x210] sm:$0xff] }
  0xdb   :  { %1314 = vmatmul.mubr.f32.vlgmr.msra.gmra.mrb[10].mxu0 %v1169_v32  ;;  %5231 = vmatprep.subr.bf16.mxu1 %v7069_v21  ;;  %v7150_v29 = vpack.c.bf16 %v1117_v18, %v1116_v42  ;;  %v1136_v32 = vld [vmem:[%s8488_s2 + $0x2b0] sm:$0xff]  ;;  %v7198_v42 = vpack.c.bf16 %v1409_v13, %v1408_v45  ;;  %v1138_v18 = vld [vmem:[%s8488_s2 + $0x2c0] sm:$0xff] }
  0xdc   :  { %5265 = vmatpush3.bf16.msra.mxu0 %v7084_v39  ;;  %1595 = vmatprep.mubr.f32.mxu0 %v1520_v60  ;;  %v7186_v60 = vpack.c.bf16 %v1119_v2, %v1118_v53  ;;  %v1141_v53 = vld [vmem:[%s8488_s2 + $0x2d8] sm:$0xff]  ;;  %v1412_v2 = vld [vmem:[%s8488_s2 + $0x50] sm:$0xff]  ;;  %v1142_v13 = vld [vmem:[%s8488_s2 + $0x2e0] sm:$0xff] }
  0xdd   :  { %1244 = vmatmul.mubr.f32.vlgmr.msra.gmra.mrb[8].mxu1 %v1167_v31  ;;  %5267 = vmatprep.subr.bf16.mxu0 %v7093_v35  ;;  %v7189_v31 = vpack.c.bf16 %v1137_v12, %v1136_v32  ;;  %v1413_v32 = vld [vmem:[%s8488_s2 + $0x58] sm:$0xff]  ;;  %v7237_v12 = vpack.c.bf16 %v1141_v53, %v1140_v16  ;;  %v7257_v63 = vpack.c.bf16 %v1143_v46, %v1142_v13  ;;  %v1144_v16 = vld [vmem:[%s8488_s2 + $0x2f0] sm:$0xff] }
  0xde   :  { %5233 = vmatpush3.bf16.msra.mxu1 %v7111_v49  ;;  %1383 = vmatprep.mubr.f32.mxu1 %v1172_v51  ;;  %v1139_v51 = vld [vmem:[%s8488_s2 + $0x2c8] sm:$0xff]  ;;  %v7240_v45 = vpack.c.bf16 %v1413_v32, %v1412_v2  ;;  %v1145_v53 = vld [vmem:[%s8488_s2 + $0x2f8] sm:$0xff]  ;;  %v1416_v2 = vld [vmem:[%s8488_s2 + $0x70] sm:$0xff] }
  0xdf   :  { %5235 = vmatprep.subr.bf16.mxu1 %v7120_v4  ;;  %v7217_v6 = vpack.c.bf16 %v1139_v51, %v1138_v18  ;;  %v1415_v18 = vld [vmem:[%s8488_s2 + $0x68] sm:$0xff]  ;;  %v1506_v51 = vpop.permute.xlu1 %1505  ;;  %v1417_v32 = vld [vmem:[%s8488_s2 + $0x78] sm:$0xff]  ;;  %v7279_v46 = vpack.c.bf16 %v1145_v53, %v1144_v16  ;;  %v5944_v53 = vunpack.i.l.bf16 %v7288_v19  ;;  %v1806_v19 = vld [vmem:[%s8488_s2 + $0x1c0] sm:$0xff] }
  0xe0   :  { %5269 = vmatpush3.bf16.msra.mxu0 %v7132_v56  ;;  %v7260_v0 = vpack.c.bf16 %v1415_v18, %v1414_v20  ;;  %v7282_v20 = vpack.c.bf16 %v1417_v32, %v1416_v2  ;;  %v1519_v16 = vsel %vm126_vm1, %v1506_v51, %v5939_v11 }
  0xe1   :  { %5271 = vmatprep.subr.bf16.mxu0 %v7141_v48  ;;  %v1522_v11 = vsel %vm126_vm1, %v5944_v53, %v5945_v14 }
  0xe2   :  { %5237 = vmatpush3.bf16.msra.mxu1 %v7150_v29 }
  0xe3   :  { %5239 = vmatprep.subr.bf16.mxu1 %v7159_v34  ;;  %v7276_v13 = vpop.permute.xlu1 %5947 }
  0xe4   :  { %5273 = vmatpush3.bf16.msra.mxu0 %v7168_v10  ;;  %v5950_v18 = vunpack.i.h.bf16 %v7276_v13  ;;  %v5949_v47 = vunpack.i.l.bf16 %v7276_v13 }
  0xe5   :  { %5275 = vmatprep.subr.bf16.mxu0 %v7177_v58 }
  0xe6   :  { %5241 = vmatpush3.bf16.msra.mxu1 %v7186_v60  ;;  %v1524_v2 = vsel %vm126_vm1, %v5949_v47, %v5950_v18 }
  0xe7   :  { %5243 = vmatprep.subr.bf16.mxu1 %v7189_v31 }
  0xe8   :  { %5277 = vmatpush3.bf16.msra.mxu0 %v7198_v42 }
  0xe9   :  { %5279 = vmatprep.subr.bf16.mxu0 %v6995_v28 }
  0xea   :  { %5245 = vmatpush3.bf16.msra.mxu1 %v7214_v15 }
  0xeb   :  { %5247 = vmatprep.subr.bf16.mxu1 %v7217_v6 }
  0xec   :  { %5281 = vmatpush3.bf16.msra.mxu0 %v7220_v44 }
  0xed   :  { %5283 = vmatprep.subr.bf16.mxu0 %v7007_v43 }
  0xee   :  { %5249 = vmatpush3.bf16.msra.mxu1 %v6788_v38 }
  0xef   :  { %5251 = vmatprep.subr.bf16.mxu1 %v7237_v12 }
  0xf0   :  { %5285 = vmatpush3.bf16.msra.mxu0 %v7240_v45 }
  0xf1   :  { %5287 = vmatprep.subr.bf16.mxu0 %v7019_v59 }
  0xf2   :  { %5253 = vmatpush3.bf16.msra.mxu1 %v6818_v41 }
  0xf3   :  { %5255 = vmatprep.subr.bf16.mxu1 %v7257_v63 }
  0xf4   :  { %5289 = vmatpush3.bf16.msra.mxu0 %v7260_v0 }
  0xf5   :  { %5291 = vmatprep.subr.bf16.mxu0 %v7039_v57 }
  0xf6   :  { %5257 = vmatpush3.bf16.msra.mxu1 %v6848_v61 }
  0xf7   :  { %5259 = vmatprep.subr.bf16.mxu1 %v7279_v46 }
  0xf8   :  { %5293 = vmatpush3.bf16.msra.mxu0 %v7282_v20 }
  0xf9   :  { %5327 = vmatprep.subr.bf16.mxu0 %v7069_v21  ;;  %v3825_v32 = vpop.f32.mrb[0].mxu0  ;;  %v8507_v21 = vunpack.i.h.bf16 %v6872_v62 }
  0xfa   :  { %5261 = vmatpush3.bf16.msra.mxu1 %v6884_v54  ;;  %v3826_v9 = vpop.f32.mrb[1].mxu0 }
  0xfb   :  { %1596 = vmatmul.mubr.f32.vlgmr.msra.gmra.mrb[12].mxu0 %v1519_v16  ;;  %5295 = vmatprep.subr.bf16.mxu1 %v6887_v26  ;;  %v3827_v51 = vadd.f32 %v3826_v9, %v3825_v32  ;;  %v1171_v18 = vsel %vm126_vm1, %v8507_v21, %v5934_v40  ;;  %v7318_v16 = vld [vmem:[%s8489_s3] ss:$0 sm:$0xff] }
  0xfc   :  { %5329 = vmatpush3.bf16.msra.mxu0 %v7111_v49  ;;  %1735 = vmatprep.mubr.f32.mxu0 %v1524_v2 }
  0xfd   :  { %1384 = vmatmul.mubr.f32.vlgmr.msra.gmra.mrb[10].mxu1 %v1171_v18  ;;  %5331 = vmatprep.subr.bf16.mxu0 %v7120_v4  ;;  %v197_v62 = vadd.f32 %v3827_v51, %v7318_v16  ;;  %v7336_v18 = vpop.permute.xlu0 %5952 }
  0xfe   :  { %5297 = vmatpush3.bf16.msra.mxu1 %v6915_v55  ;;  %1665 = vmatprep.mubr.f32.mxu1 %v1522_v11 }
  0xff   :  { %5299 = vmatprep.subr.bf16.mxu1 %v6918_v7 }
 0x100   :  { %5333 = vmatpush3.bf16.msra.mxu0 %v7150_v29  ;;  %v3860_v9 = vpop.f32.mrb[0].mxu1 }
 0x101   :  { %5335 = vmatprep.subr.bf16.mxu0 %v7159_v34  ;;  %v3861_v36 = vpop.f32.mrb[1].mxu1 }
 0x102   :  { %5301 = vmatpush3.bf16.msra.mxu1 %v6950_v5  ;;  %v3862_v21 = vadd.f32 %v3861_v36, %v3860_v9  ;;  %v1813_v9 = vld [vmem:[%s8488_s2 + $0x1f8] sm:$0xff] }
 0x103   :  { %5303 = vmatprep.subr.bf16.mxu1 %v6953_v8 }
 0x104   :  { %5337 = vmatpush3.bf16.msra.mxu0 %v7186_v60  ;;  %v267_v40 = vadd.f32 %v3862_v21, %v197_v62  ;;  %v1795_v62 = vld [vmem:[%s8488_s2 + $0x168] sm:$0xff] }
 0x105   :  { %5339 = vmatprep.subr.bf16.mxu0 %v7189_v31 }
 0x106   :  { %5305 = vmatpush3.bf16.msra.mxu1 %v6970_v52 }
 0x107   :  { %5307 = vmatprep.subr.bf16.mxu1 %v6973_v17 }
 0x108   :  { %5341 = vmatpush3.bf16.msra.mxu0 %v7214_v15 }
 0x109   :  { %5343 = vmatprep.subr.bf16.mxu0 %v7217_v6  ;;  %v336_v2 = vpop.f32.mrb[2].mxu0 }
 0x10a   :  { %5309 = vmatpush3.bf16.msra.mxu1 %v6984_v3  ;;  %v337_v32 = vadd.f32 %v336_v2, %v267_v40  ;;  %v4784_v11 = vpop.f32.mrb[3].mxu0  ;;  %v1796_v40 = vld [vmem:[%s8488_s2 + $0x170] sm:$0xff]  ;;  %v1797_v2 = vld [vmem:[%s8488_s2 + $0x178] sm:$0xff] }
 0x10b   :  { %5311 = vmatprep.subr.bf16.mxu1 %v6778_v37  ;;  %v7345_v37 = vpop.permute.xlu0 %5957  ;;  %v7469_v11 = vpack.c.bf16 %v1797_v2, %v1796_v40  ;;  %v2166_v2 = vld [vmem:[%s8488_s2 + $0x200] sm:$0xff] }
 0x10c   :  { %5345 = vmatpush3.bf16.msra.mxu0 %v6788_v38  ;;  %v340_v51 = vmax.f32 %v337_v32, 0.0  ;;  %v5960_v38 = vunpack.i.h.bf16 %v7345_v37  ;;  %v1854_v32 = vpop.permute.xlu1 %1853 }
 0x10d   :  { %5347 = vmatprep.subr.bf16.mxu0 %v7237_v12 }
 0x10e   :  { %5313 = vmatpush3.bf16.msra.mxu1 %v6806_v33  ;;  %341 = vst.msk [vmem:[#allocation2] sm:$0xff] %vm126_vm1, %v340_v51  ;;  %v5959_v33 = vunpack.i.l.bf16 %v7345_v37  ;;  %v2170_v37 = vld [vmem:[%s8488_s2 + $0x220] sm:$0xff] }
 0x10f   :  { %5315 = vmatprep.subr.bf16.mxu1 %v6809_v25  ;;  %v5955_v25 = vunpack.i.h.bf16 %v7336_v18 }
 0x110   :  { %5349 = vmatpush3.bf16.msra.mxu0 %v6818_v41  ;;  %v5954_v41 = vunpack.i.l.bf16 %v7336_v18  ;;  %v2126_v18 = vld [vmem:[%s8488_s2 + $0xc0] sm:$0xff] }
 0x111   :  { %5351 = vmatprep.subr.bf16.mxu0 %v7257_v63 }
 0x112   :  { %5317 = vmatpush3.bf16.msra.mxu1 %v6836_v24  ;;  %v1523_v24 = vsel %vm126_vm1, %v5945_v14, %v5949_v47  ;;  %v8508_v47 = vunpack.i.h.bf16 %v7036_v1  ;;  %v1811_v1 = vld [vmem:[%s8488_s2 + $0x1e8] sm:$0xff] }
 0x113   :  { %5319 = vmatprep.subr.bf16.mxu1 %v6839_v27  ;;  %v1870_v27 = vsel %vm126_vm1, %v5959_v33, %v5960_v38 }
 0x114   :  { %5353 = vmatpush3.bf16.msra.mxu0 %v6848_v61  ;;  %v1868_v61 = vsel %vm126_vm1, %v5954_v41, %v5955_v25 }
 0x115   :  { %5355 = vmatprep.subr.bf16.mxu0 %v7279_v46 }
 0x116   :  { %5321 = vmatpush3.bf16.msra.mxu1 %v6864_v50  ;;  %v1521_v50 = vsel %vm126_vm1, %v8508_v47, %v5944_v53  ;;  %v1794_v53 = vld [vmem:[%s8488_s2 + $0x160] sm:$0xff] }
 0x117   :  { %5323 = vmatprep.subr.bf16.mxu1 %v6875_v23  ;;  %v1807_v23 = vld [vmem:[%s8488_s2 + $0x1c8] sm:$0xff]  ;;  %v7453_v36 = vpack.c.bf16 %v1795_v62, %v1794_v53  ;;  %v1829_v62 = vld [vmem:[%s8488_s2 + $0x278] sm:$0xff] }
 0x118   :  { %5357 = vmatpush3.bf16.msra.mxu0 %v6884_v54  ;;  %v7396_v54 = vpack.c.bf16 %v1807_v23, %v1806_v19  ;;  %v8509_v19 = vld [vmem:[#allocation7_spill] sm:$0xff] }
 0x119   :  { %5391 = vmatprep.subr.bf16.mxu0 %v6887_v26  ;;  %v1790_v26 = vld [vmem:[%s8488_s2 + $0x140] sm:$0xff] }
 0x11a   :  { %5325 = vmatpush3.bf16.msra.mxu1 %v6898_v22  ;;  %v1791_v22 = vld [vmem:[%s8488_s2 + $0x148] sm:$0xff] }
 0x11b   :  { %1736 = vmatmul.mubr.f32.vlgmr.msra.gmra.mrb[14].mxu0 %v1523_v24  ;;  %5359 = vmatprep.subr.bf16.mxu1 %v7049_v30 }
 0x11c   :  { %5393 = vmatpush3.bf16.msra.mxu0 %v6915_v55  ;;  %2013 = vmatprep.mubr.f32.mxu0 %v1870_v27  ;;  %v1808_v55 = vld [vmem:[%s8488_s2 + $0x1d0] sm:$0xff]  ;;  %v7475_v27 = vpop.permute.xlu1 %5962 }
 0x11d   :  { %1666 = vmatmul.mubr.f32.vlgmr.msra.gmra.mrb[12].mxu1 %v1521_v50  ;;  %5395 = vmatprep.subr.bf16.mxu0 %v6918_v7  ;;  %v1809_v7 = vld [vmem:[%s8488_s2 + $0x1d8] sm:$0xff]  ;;  %v5964_v47 = vunpack.i.l.bf16 %v7475_v27  ;;  %v1867_v50 = vsel %vm126_vm1, %v1854_v32, %v5954_v41  ;;  %v2167_v32 = vld [vmem:[%s8488_s2 + $0x208] sm:$0xff] }
 0x11e   :  { %5361 = vmatpush3.bf16.msra.mxu1 %v7084_v39  ;;  %1943 = vmatprep.mubr.f32.mxu1 %v1868_v61  ;;  %v5965_v61 = vunpack.i.h.bf16 %v7475_v27 }
 0x11f   :  { %5363 = vmatprep.subr.bf16.mxu1 %v7093_v35 }
 0x120   :  { %5397 = vmatpush3.bf16.msra.mxu0 %v6950_v5  ;;  %v7413_v5 = vpack.c.bf16 %v1791_v22, %v1790_v26  ;;  %v2206_v41 = vpop.permute.xlu1 %2205  ;;  %v1827_v26 = vld [vmem:[%s8488_s2 + $0x268] sm:$0xff] }
 0x121   :  { %5399 = vmatprep.subr.bf16.mxu0 %v6953_v8  ;;  %v7416_v8 = vpack.c.bf16 %v1809_v7, %v1808_v55 }
 0x122   :  { %5365 = vmatpush3.bf16.msra.mxu1 %v7132_v56 }
 0x123   :  { %5367 = vmatprep.subr.bf16.mxu1 %v7141_v48 }
 0x124   :  { %5401 = vmatpush3.bf16.msra.mxu0 %v6970_v52  ;;  %v1792_v52 = vld [vmem:[%s8488_s2 + $0x150] sm:$0xff]  ;;  %v7585_v53 = vpop.permute.xlu1 %5977 }
 0x125   :  { %5403 = vmatprep.subr.bf16.mxu0 %v6973_v17  ;;  %v1793_v17 = vld [vmem:[%s8488_s2 + $0x158] sm:$0xff] }
 0x126   :  { %5369 = vmatpush3.bf16.msra.mxu1 %v7168_v10  ;;  %v7433_v14 = vpack.c.bf16 %v1793_v17, %v1792_v52 }
 0x127   :  { %5371 = vmatprep.subr.bf16.mxu1 %v7177_v58 }
 0x128   :  { %5405 = vmatpush3.bf16.msra.mxu0 %v6984_v3  ;;  %v1810_v3 = vld [vmem:[%s8488_s2 + $0x1e0] sm:$0xff] }
 0x129   :  { %5407 = vmatprep.subr.bf16.mxu0 %v7396_v54  ;;  %v7436_v13 = vpack.c.bf16 %v1811_v1, %v1810_v3  ;;  %v2182_v3 = vld [vmem:[%s8488_s2 + $0x280] sm:$0xff]  ;;  %v2183_v1 = vld [vmem:[%s8488_s2 + $0x288] sm:$0xff] }
 0x12a   :  { %5373 = vmatpush3.bf16.msra.mxu1 %v7198_v42  ;;  %v5518_v40 = vpack.c.bf16 %v2183_v1, %v2182_v3  ;;  %v2188_v3 = vld [vmem:[%s8488_s2 + $0x2b0] sm:$0xff]  ;;  %v2189_v1 = vld [vmem:[%s8488_s2 + $0x2b8] sm:$0xff] }
 0x12b   :  { %5375 = vmatprep.subr.bf16.mxu1 %v6995_v28  ;;  %v1812_v28 = vld [vmem:[%s8488_s2 + $0x1f0] sm:$0xff] }
 0x12c   :  { %5409 = vmatpush3.bf16.msra.mxu0 %v7413_v5  ;;  %v7456_v21 = vpack.c.bf16 %v1813_v9, %v1812_v28  ;;  %v2150_v9 = vld [vmem:[%s8488_s2 + $0x180] sm:$0xff] }
 0x12d   :  { %5411 = vmatprep.subr.bf16.mxu0 %v7416_v8 }
 0x12e   :  { %5377 = vmatpush3.bf16.msra.mxu1 %v7220_v44 }
 0x12f   :  { %5379 = vmatprep.subr.bf16.mxu1 %v7007_v43  ;;  %v7465_v43 = vpop.permute.xlu0 %5967 }
 0x130   :  { %5413 = vmatpush3.bf16.msra.mxu0 %v7433_v14  ;;  %v5970_v51 = vunpack.i.h.bf16 %v7465_v43  ;;  %v5969_v24 = vunpack.i.l.bf16 %v7465_v43 }
 0x131   :  { %5415 = vmatprep.subr.bf16.mxu0 %v7436_v13 }
 0x132   :  { %5381 = vmatpush3.bf16.msra.mxu1 %v7240_v45 }
 0x133   :  { %5383 = vmatprep.subr.bf16.mxu1 %v7019_v59  ;;  %v1869_v59 = vsel %vm126_vm1, %v5955_v25, %v5959_v33  ;;  %v2133_v25 = vld [vmem:[%s8488_s2 + $0xf8] sm:$0xff] }
 0x134   :  { %5417 = vmatpush3.bf16.msra.mxu0 %v7453_v36 }
 0x135   :  { %5419 = vmatprep.subr.bf16.mxu0 %v7456_v21 }
 0x136   :  { %5385 = vmatpush3.bf16.msra.mxu1 %v7260_v0 }
 0x137   :  { %5387 = vmatprep.subr.bf16.mxu1 %v7039_v57  ;;  %v2220_v57 = vsel %vm126_vm1, %v5969_v24, %v5970_v51 }
 0x138   :  { %5421 = vmatpush3.bf16.msra.mxu0 %v7469_v11 }
 0x139   :  { %5455 = vmatprep.subr.bf16.mxu0 %v7049_v30  ;;  %v1872_v30 = vsel %vm126_vm1, %v5964_v47, %v5965_v61  ;;  %v5979_v61 = vunpack.i.l.bf16 %v7585_v53 }
 0x13a   :  { %5389 = vmatpush3.bf16.msra.mxu1 %v7282_v20 }
 0x13b   :  { %2014 = vmatmul.mubr.f32.vlgmr.msra.gmra.mrb[16].mxu0 %v1869_v59  ;;  %5423 = vmatprep.subr.bf16.mxu1 %v8509_v19  ;;  %v7620_v19 = vpop.permute.xlu0 %5972 }
 0x13c   :  { %5457 = vmatpush3.bf16.msra.mxu0 %v7084_v39  ;;  %2295 = vmatprep.mubr.f32.mxu0 %v2220_v57  ;;  %v2127_v39 = vld [vmem:[%s8488_s2 + $0xc8] sm:$0xff]  ;;  %v2184_v57 = vld [vmem:[%s8488_s2 + $0x290] sm:$0xff] }
 0x13d   :  { %1944 = vmatmul.mubr.f32.vlgmr.msra.gmra.mrb[14].mxu1 %v1867_v50  ;;  %5459 = vmatprep.subr.bf16.mxu0 %v7093_v35  ;;  %v7516_v35 = vpack.c.bf16 %v2127_v39, %v2126_v18  ;;  %v2185_v50 = vld [vmem:[%s8488_s2 + $0x298] sm:$0xff]  ;;  %v2134_v39 = vld [vmem:[%s8488_s2 + $0x100] sm:$0xff] }
 0x13e   :  { %5425 = vmatpush3.bf16.msra.mxu1 %v7111_v49  ;;  %2083 = vmatprep.mubr.f32.mxu1 %v1872_v30  ;;  %v2128_v49 = vld [vmem:[%s8488_s2 + $0xd0] sm:$0xff] }
 0x13f   :  { %5427 = vmatprep.subr.bf16.mxu1 %v7120_v4  ;;  %v2129_v4 = vld [vmem:[%s8488_s2 + $0xd8] sm:$0xff] }
 0x140   :  { %5461 = vmatpush3.bf16.msra.mxu0 %v7132_v56  ;;  %v1822_v56 = vld [vmem:[%s8488_s2 + $0x240] sm:$0xff] }
 0x141   :  { %5463 = vmatprep.subr.bf16.mxu0 %v7141_v48  ;;  %v1823_v48 = vld [vmem:[%s8488_s2 + $0x248] sm:$0xff] }
 0x142   :  { %5429 = vmatpush3.bf16.msra.mxu1 %v7150_v29  ;;  %v7534_v29 = vpack.c.bf16 %v2129_v4, %v2128_v49  ;;  %v2135_v49 = vld [vmem:[%s8488_s2 + $0x108] sm:$0xff]  ;;  %v5975_v4 = vunpack.i.h.bf16 %v7620_v19 }
 0x143   :  { %5431 = vmatprep.subr.bf16.mxu1 %v7159_v34  ;;  %v7537_v34 = vpack.c.bf16 %v1823_v48, %v1822_v56  ;;  %v2219_v56 = vsel %vm126_vm1, %v2206_v41, %v5969_v24  ;;  %v7638_v48 = vpack.c.bf16 %v2167_v32, %v2166_v2  ;;  %v2169_v24 = vld [vmem:[%s8488_s2 + $0x218] sm:$0xff]  ;;  %v5530_v2 = vpack.c.bf16 %v2189_v1, %v2188_v3  ;;  %v2172_v32 = vld [vmem:[%s8488_s2 + $0x230] sm:$0xff] }
 0x144   :  { %5465 = vmatpush3.bf16.msra.mxu0 %v7168_v10  ;;  %v2130_v10 = vld [vmem:[%s8488_s2 + $0xe0] sm:$0xff] }
 0x145   :  { %5467 = vmatprep.subr.bf16.mxu0 %v7177_v58  ;;  %v2131_v58 = vld [vmem:[%s8488_s2 + $0xe8] sm:$0xff] }
 0x146   :  { %5433 = vmatpush3.bf16.msra.mxu1 %v7186_v60  ;;  %v1824_v60 = vld [vmem:[%s8488_s2 + $0x250] sm:$0xff] }
 0x147   :  { %5435 = vmatprep.subr.bf16.mxu1 %v7189_v31  ;;  %v1825_v31 = vld [vmem:[%s8488_s2 + $0x258] sm:$0xff] }
 0x148   :  { %5469 = vmatpush3.bf16.msra.mxu0 %v7198_v42  ;;  %v7554_v42 = vpack.c.bf16 %v2131_v58, %v2130_v10  ;;  %v7557_v33 = vpack.c.bf16 %v1825_v31, %v1824_v60  ;;  %v2153_v10 = vld [vmem:[%s8488_s2 + $0x198] sm:$0xff]  ;;  %v5522_v58 = vpack.c.bf16 %v2185_v50, %v2184_v57  ;;  %v5974_v60 = vunpack.i.l.bf16 %v7620_v19  ;;  %v2190_v50 = vld [vmem:[%s8488_s2 + $0x2c0] sm:$0xff] }
 0x149   :  { %5471 = vmatprep.subr.bf16.mxu0 %v7516_v35 }
 0x14a   :  { %5437 = vmatpush3.bf16.msra.mxu1 %v7214_v15 }
 0x14b   :  { %5439 = vmatprep.subr.bf16.mxu1 %v7217_v6  ;;  %v2132_v6 = vld [vmem:[%s8488_s2 + $0xf0] sm:$0xff] }
 0x14c   :  { %5473 = vmatpush3.bf16.msra.mxu0 %v7220_v44  ;;  %v1826_v44 = vld [vmem:[%s8488_s2 + $0x260] sm:$0xff]  ;;  %v7574_v52 = vpack.c.bf16 %v2133_v25, %v2132_v6  ;;  %v2187_v25 = vld [vmem:[%s8488_s2 + $0x2a8] sm:$0xff] }
 0x14d   :  { %5475 = vmatprep.subr.bf16.mxu0 %v7534_v29  ;;  %v2186_v6 = vld [vmem:[%s8488_s2 + $0x2a0] sm:$0xff] }
 0x14e   :  { %5441 = vmatpush3.bf16.msra.mxu1 %v7537_v34  ;;  %v3939_v15 = vpop.f32.mrb[4].mxu0  ;;  %v5526_v27 = vpack.c.bf16 %v2187_v25, %v2186_v6  ;;  %v2194_v25 = vld [vmem:[%s8488_s2 + $0x2e0] sm:$0xff] }
 0x14f   :  { %v3940_v23 = vpop.f32.mrb[5].mxu0  ;;  %5443 = vmatprep.subr.bf16.mxu1 %v7237_v12  ;;  %v7577_v12 = vpack.c.bf16 %v1827_v26, %v1826_v44  ;;  %v2137_v44 = vld [vmem:[%s8488_s2 + $0x118] sm:$0xff]  ;;  %v2222_v26 = vsel %vm126_vm1, %v5974_v60, %v5975_v4 }
 0x150   :  { %v3904_v22 = vpop.f32.mrb[2].mxu1  ;;  %v3941_v55 = vadd.f32 %v3940_v23, %v3939_v15  ;;  %5477 = vmatpush3.bf16.msra.mxu0 %v7240_v45  ;;  %v1828_v45 = vld [vmem:[%s8488_s2 + $0x270] sm:$0xff]  ;;  %v7657_v15 = vpack.c.bf16 %v2135_v49, %v2134_v39  ;;  %v2191_v39 = vld [vmem:[%s8488_s2 + $0x2c8] sm:$0xff] }
 0x151   :  { %v3905_v7 = vpop.f32.mrb[3].mxu1  ;;  %5479 = vmatprep.subr.bf16.mxu0 %v7554_v42  ;;  %v7612_v59 = vpack.c.bf16 %v1829_v62, %v1828_v45  ;;  %v2136_v23 = vld [vmem:[%s8488_s2 + $0x110] sm:$0xff]  ;;  %v2138_v62 = vld [vmem:[%s8488_s2 + $0x120] sm:$0xff] }
 0x152   :  { %v3906_v17 = vadd.f32 %v3905_v7, %v3904_v22  ;;  %5445 = vmatpush3.bf16.msra.mxu1 %v7557_v33  ;;  %v1871_v22 = vsel %vm126_vm1, %v5960_v38, %v5964_v47  ;;  %v2154_v7 = vld [vmem:[%s8488_s2 + $0x1a0] sm:$0xff]  ;;  %v2171_v38 = vld [vmem:[%s8488_s2 + $0x228] sm:$0xff]  ;;  %v7700_v47 = vpack.c.bf16 %v2137_v44, %v2136_v23 }
 0x153   :  { %5447 = vmatprep.subr.bf16.mxu1 %v7257_v63  ;;  %v2151_v63 = vld [vmem:[%s8488_s2 + $0x188] sm:$0xff] }
 0x154   :  { %v545_v28 = vadd.f32 %v3906_v17, %v7318_v16  ;;  %5481 = vmatpush3.bf16.msra.mxu0 %v7260_v0  ;;  %v5980_v0 = vunpack.i.h.bf16 %v7585_v53  ;;  %v7625_v18 = vpack.c.bf16 %v2151_v63, %v2150_v9  ;;  %v2155_v17 = vld [vmem:[%s8488_s2 + $0x1a8] sm:$0xff]  ;;  %v7718_v9 = vpack.c.bf16 %v2171_v38, %v2170_v37  ;;  %v2156_v63 = vld [vmem:[%s8488_s2 + $0x1b0] sm:$0xff]  ;;  %v7786_v38 = vpop.permute.xlu0 %5982 }
 0x155   :  { %5483 = vmatprep.subr.bf16.mxu0 %v7574_v52  ;;  %v7709_v45 = vpack.c.bf16 %v2155_v17, %v2154_v7  ;;  %v2195_v23 = vld [vmem:[%s8488_s2 + $0x2e8] sm:$0xff] }
 0x156   :  { %5449 = vmatpush3.bf16.msra.mxu1 %v7577_v12  ;;  %v7622_v30 = vadd.f32 %v3941_v55, %v545_v28  ;;  %v2224_v31 = vsel %vm126_vm1, %v5979_v61, %v5980_v0  ;;  %v2139_v28 = vld [vmem:[%s8488_s2 + $0x128] sm:$0xff]  ;;  %v2173_v0 = vld [vmem:[%s8488_s2 + $0x238] sm:$0xff]  ;;  %v5542_v44 = vpack.c.bf16 %v2195_v23, %v2194_v25 }
 0x157   :  { %5451 = vmatprep.subr.bf16.mxu1 %v7279_v46  ;;  %v2152_v46 = vld [vmem:[%s8488_s2 + $0x190] sm:$0xff]  ;;  %v7733_v57 = vpack.c.bf16 %v2139_v28, %v2138_v62  ;;  %v2469_v25 = vld [vmem:[%s8488_s2 + $0xa8] sm:$0xff] }
 0x158   :  { %5485 = vmatpush3.bf16.msra.mxu0 %v7282_v20  ;;  %v2168_v20 = vld [vmem:[%s8488_s2 + $0x210] sm:$0xff]  ;;  %v7666_v41 = vpack.c.bf16 %v2153_v10, %v2152_v46  ;;  %v2141_v46 = vld [vmem:[%s8488_s2 + $0x138] sm:$0xff]  ;;  %v7751_v10 = vpack.c.bf16 %v2173_v0, %v2172_v32  ;;  %v7801_v32 = vpop.permute.xlu0 %2531  ;;  %v2449_v0 = vld [vmem:[%s8488_s2 + $0x8] sm:$0xff] }
 0x159   :  { %5519 = vmatprep.subr.bf16.mxu0 %v5518_v40  ;;  %v7685_v55 = vpack.c.bf16 %v2169_v24, %v2168_v20  ;;  %v2157_v40 = vld [vmem:[%s8488_s2 + $0x1b8] sm:$0xff]  ;;  %v2192_v24 = vld [vmem:[%s8488_s2 + $0x2d0] sm:$0xff] }
 0x15a   :  { %5453 = vmatpush3.bf16.msra.mxu1 %v7612_v59  ;;  %v7742_v49 = vpack.c.bf16 %v2157_v40, %v2156_v63  ;;  %v2465_v63 = vld [vmem:[%s8488_s2 + $0x88] sm:$0xff] }
 0x15b   :  { %2296 = vmatmul.mubr.f32.vlgmr.msra.gmra.mrb[18].mxu0 %v2219_v56  ;;  %5487 = vmatprep.subr.bf16.mxu1 %v7625_v18  ;;  %v2140_v56 = vld [vmem:[%s8488_s2 + $0x130] sm:$0xff] }
 0x15c   :  { %5521 = vmatpush3.bf16.msra.mxu0 %v7638_v48  ;;  %2435 = vmatprep.mubr.f32.mxu0 %v2224_v31  ;;  %v7754_v20 = vpack.c.bf16 %v2141_v46, %v2140_v56  ;;  %v2193_v31 = vld [vmem:[%s8488_s2 + $0x2d8] sm:$0xff]  ;;  %v2223_v56 = vsel %vm126_vm1, %v5975_v4, %v5979_v61  ;;  %v2466_v46 = vld [vmem:[%s8488_s2 + $0x90] sm:$0xff] }
 0x15d   :  { %2084 = vmatmul.mubr.f32.vlgmr.msra.gmra.mrb[16].mxu1 %v1871_v22  ;;  %5523 = vmatprep.subr.bf16.mxu0 %v5522_v58  ;;  %v5534_v58 = vpack.c.bf16 %v2191_v39, %v2190_v50  ;;  %v5538_v6 = vpack.c.bf16 %v2193_v31, %v2192_v24  ;;  %v2197_v22 = vld [vmem:[%s8488_s2 + $0x2f8] sm:$0xff]  ;;  %v5985_v50 = vunpack.i.h.bf16 %v7786_v38  ;;  %v5984_v39 = vunpack.i.l.bf16 %v7786_v38  ;;  %v2450_v4 = vld [vmem:[%s8488_s2 + $0x10] sm:$0xff] }
 0x15e   :  { %5489 = vmatpush3.bf16.msra.mxu1 %v7657_v15  ;;  %2365 = vmatprep.mubr.f32.mxu1 %v2222_v26  ;;  %v2196_v26 = vld [vmem:[%s8488_s2 + $0x2f0] sm:$0xff]  ;;  %v2451_v24 = vld [vmem:[%s8488_s2 + $0x18] sm:$0xff]  ;;  %v2221_v31 = vsel %vm126_vm1, %v5970_v51, %v5974_v60  ;;  %v2452_v51 = vld [vmem:[%s8488_s2 + $0x20] sm:$0xff] }
 0x15f   :  { %5491 = vmatprep.subr.bf16.mxu1 %v7666_v41  ;;  %v5546_v1 = vpack.c.bf16 %v2197_v22, %v2196_v26  ;;  %v5556_v19 = vpack.c.bf16 %v2451_v24, %v2450_v4  ;;  %v2453_v60 = vld [vmem:[%s8488_s2 + $0x28] sm:$0xff]  ;;  %v2454_v26 = vld [vmem:[%s8488_s2 + $0x30] sm:$0xff]  ;;  %v2896_v4 = vld [vmem:[%s8490_s4 + $0x98] sm:$0xff] }
 0x160   :  { %5525 = vmatpush3.bf16.msra.mxu0 %v7685_v55  ;;  %v5560_v23 = vpack.c.bf16 %v2453_v60, %v2452_v51  ;;  %v2879_v24 = vld [vmem:[%s8490_s4 + $0x10] sm:$0xff]  ;;  %v2898_v60 = vld [vmem:[%s8490_s4 + $0xa8] sm:$0xff] }
 0x161   :  { %5527 = vmatprep.subr.bf16.mxu0 %v5526_v27  ;;  %v7781_v27 = vpop.permute.xlu1 %2525 }
 0x162   :  { %5493 = vmatpush3.bf16.msra.mxu1 %v7700_v47 }
 0x163   :  { %5495 = vmatprep.subr.bf16.mxu1 %v7709_v45 }
 0x164   :  { %5529 = vmatpush3.bf16.msra.mxu0 %v7718_v9 }
 0x165   :  { %5531 = vmatprep.subr.bf16.mxu0 %v5530_v2  ;;  %v7799_v2 = vpop.permute.xlu1 %2533 }
 0x166   :  { %5497 = vmatpush3.bf16.msra.mxu1 %v7733_v57 }
 0x167   :  { %5499 = vmatprep.subr.bf16.mxu1 %v7742_v49 }
 0x168   :  { %5533 = vmatpush3.bf16.msra.mxu0 %v7751_v10 }
 0x169   :  { %5535 = vmatprep.subr.bf16.mxu0 %v5534_v58  ;;  %v2467_v58 = vld [vmem:[%s8488_s2 + $0x98] sm:$0xff] }
 0x16a   :  { %5501 = vmatpush3.bf16.msra.mxu1 %v7754_v20  ;;  %v5554_v61 = vpack.c.bf16 %v2467_v58, %v2466_v46  ;;  %v2782_v58 = vld [vmem:[%s8490_s4 + $0x110] sm:$0xff] }
 0x16b   :  { %5503 = vmatprep.subr.bf16.mxu1 %v7396_v54 }
 0x16c   :  { %5537 = vmatpush3.bf16.msra.mxu0 %v7537_v34 }
 0x16d   :  { %5539 = vmatprep.subr.bf16.mxu0 %v5538_v6  ;;  %v2468_v6 = vld [vmem:[%s8488_s2 + $0xa0] sm:$0xff] }
 0x16e   :  { %5505 = vmatpush3.bf16.msra.mxu1 %v7413_v5  ;;  %v4009_v7 = vpop.f32.mrb[6].mxu0  ;;  %v5558_v43 = vpack.c.bf16 %v2469_v25, %v2468_v6  ;;  %v2784_v25 = vld [vmem:[%s8490_s4 + $0x120] sm:$0xff] }
 0x16f   :  { %5507 = vmatprep.subr.bf16.mxu1 %v7416_v8  ;;  %v4010_v17 = vpop.f32.mrb[7].mxu0 }
 0x170   :  { %v3974_v37 = vpop.f32.mrb[4].mxu1  ;;  %5541 = vmatpush3.bf16.msra.mxu0 %v7557_v33  ;;  %v7784_v34 = vadd.f32 %v4010_v17, %v4009_v7  ;;  %v2464_v33 = vld [vmem:[%s8488_s2 + $0x80] sm:$0xff]  ;;  %v2457_v7 = vld [vmem:[%s8488_s2 + $0x48] sm:$0xff] }
 0x171   :  { %v3975_v3 = vpop.f32.mrb[5].mxu1  ;;  %5543 = vmatprep.subr.bf16.mxu0 %v5542_v44 }
 0x172   :  { %v3976_v62 = vadd.f32 %v3975_v3, %v3974_v37  ;;  %5509 = vmatpush3.bf16.msra.mxu1 %v7433_v14  ;;  %v2461_v3 = vld [vmem:[%s8488_s2 + $0x68] sm:$0xff] }
 0x173   :  { %5511 = vmatprep.subr.bf16.mxu1 %v7436_v13 }
 0x174   :  { %v685_v28 = vadd.f32 %v3976_v62, %v7622_v30  ;;  %5545 = vmatpush3.bf16.msra.mxu0 %v7577_v12  ;;  %v5550_v30 = vpack.c.bf16 %v2465_v63, %v2464_v33  ;;  %v2448_v12 = vld [vmem:[%s8488_s2] sm:$0xff]  ;;  %v2462_v33 = vld [vmem:[%s8488_s2 + $0x70] sm:$0xff]  ;;  %v2463_v63 = vld [vmem:[%s8488_s2 + $0x78] sm:$0xff] }
 0x175   :  { %5547 = vmatprep.subr.bf16.mxu0 %v5546_v1  ;;  %v5552_v53 = vpack.c.bf16 %v2449_v0, %v2448_v12  ;;  %v2877_v0 = vld [vmem:[%s8490_s4] sm:$0xff] }
 0x176   :  { %v688_v40 = vmax.f32 %v685_v28, 0.0  ;;  %5513 = vmatpush3.bf16.msra.mxu1 %v7453_v36 }
 0x177   :  { %5515 = vmatprep.subr.bf16.mxu1 %v7456_v21 }
 0x178   :  { %690 = vrot.lane.b32.xlu1 %v688_v40, %s6011_s21  ;;  %5549 = vmatpush3.bf16.msra.mxu0 %v7612_v59  ;;  %v2538_v59 = vsel %vm126_vm1, %v7801_v32, %v7799_v2 }
 0x179   :  { %5583 = vmatprep.subr.bf16.mxu0 %v7625_v18  ;;  %v2536_v18 = vsel %vm126_vm1, %v5984_v39, %v5985_v50 }
 0x17a   :  { %5517 = vmatpush3.bf16.msra.mxu1 %v7469_v11 }
 0x17b   :  { %2436 = vmatmul.mubr.f32.vlgmr.msra.gmra.mrb[20].mxu0 %v2223_v56  ;;  %5551 = vmatprep.subr.bf16.mxu1 %v5550_v30 }
 0x17c   :  { %5585 = vmatpush3.bf16.msra.mxu0 %v7657_v15  ;;  %2679 = vmatprep.mubr.f32.mxu0 %v2538_v59  ;;  %v2470_v15 = vld [vmem:[%s8488_s2 + $0xb0] sm:$0xff]  ;;  %v2783_v59 = vld [vmem:[%s8490_s4 + $0x118] sm:$0xff] }
 0x17d   :  { %2366 = vmatmul.mubr.f32.vlgmr.msra.gmra.mrb[18].mxu1 %v2221_v31  ;;  %5587 = vmatprep.subr.bf16.mxu0 %v7666_v41  ;;  %v2471_v41 = vld [vmem:[%s8488_s2 + $0xb8] sm:$0xff] }
 0x17e   :  { %5553 = vmatpush3.bf16.msra.mxu1 %v5552_v53  ;;  %2609 = vmatprep.mubr.f32.mxu1 %v2536_v18  ;;  %v5562_v44 = vpack.c.bf16 %v2471_v41, %v2470_v15  ;;  %v2895_v53 = vld [vmem:[%s8490_s4 + $0x90] sm:$0xff]  ;;  %v2880_v18 = vld [vmem:[%s8490_s4 + $0x18] sm:$0xff]  ;;  %v2881_v15 = vld [vmem:[%s8490_s4 + $0x20] sm:$0xff] }
 0x17f   :  { %5555 = vmatprep.subr.bf16.mxu1 %v5554_v61  ;;  %v7987_v31 = vpack.c.bf16 %v2896_v4, %v2895_v53  ;;  %v7989_v6 = vpack.c.bf16 %v2880_v18, %v2879_v24  ;;  %v2882_v41 = vld [vmem:[%s8490_s4 + $0x28] sm:$0xff]  ;;  %v2891_v53 = vld [vmem:[%s8490_s4 + $0x70] sm:$0xff]  ;;  %v2892_v4 = vld [vmem:[%s8490_s4 + $0x78] sm:$0xff] }
 0x180   :  { %5589 = vmatpush3.bf16.msra.mxu0 %v7700_v47  ;;  %v2455_v47 = vld [vmem:[%s8488_s2 + $0x38] sm:$0xff] }
 0x181   :  { %5591 = vmatprep.subr.bf16.mxu0 %v7709_v45  ;;  %v5564_v22 = vpack.c.bf16 %v2455_v47, %v2454_v26  ;;  %v2456_v45 = vld [vmem:[%s8488_s2 + $0x40] sm:$0xff]  ;;  %v2786_v26 = vld [vmem:[%s8490_s4 + $0x130] sm:$0xff]  ;;  %v2787_v47 = vld [vmem:[%s8490_s4 + $0x138] sm:$0xff] }
 0x182   :  { %5557 = vmatpush3.bf16.msra.mxu1 %v5556_v19  ;;  %v5568_v17 = vpack.c.bf16 %v2457_v7, %v2456_v45  ;;  %v2785_v19 = vld [vmem:[%s8490_s4 + $0x128] sm:$0xff]  ;;  %v8029_v45 = vpack.c.bf16 %v2787_v47, %v2786_v26  ;;  %v2900_v7 = vld [vmem:[%s8490_s4 + $0xb8] sm:$0xff] }
 0x183   :  { %5559 = vmatprep.subr.bf16.mxu1 %v5558_v43  ;;  %v2897_v43 = vld [vmem:[%s8490_s4 + $0xa0] sm:$0xff]  ;;  %v8003_v51 = vpack.c.bf16 %v2785_v19, %v2784_v25  ;;  %v8157_v25 = vpack.c.bf16 %v2892_v4, %v2891_v53 }
 0x184   :  { %5593 = vmatpush3.bf16.msra.mxu0 %v7733_v57  ;;  %v2458_v57 = vld [vmem:[%s8488_s2 + $0x50] sm:$0xff] }
 0x185   :  { %5595 = vmatprep.subr.bf16.mxu0 %v7742_v49  ;;  %v2459_v49 = vld [vmem:[%s8488_s2 + $0x58] sm:$0xff] }
 0x186   :  { %5561 = vmatpush3.bf16.msra.mxu1 %v5560_v23  ;;  %v5572_v37 = vpack.c.bf16 %v2459_v49, %v2458_v57  ;;  %v8015_v23 = vpack.c.bf16 %v2898_v60, %v2897_v43  ;;  %v2884_v57 = vld [vmem:[%s8490_s4 + $0x38] sm:$0xff] }
 0x187   :  { %5563 = vmatprep.subr.bf16.mxu1 %v5562_v44  ;;  %v8017_v44 = vpack.c.bf16 %v2882_v41, %v2881_v15 }
 0x188   :  { %5597 = vmatpush3.bf16.msra.mxu0 %v7754_v20 }
 0x189   :  { %5599 = vmatprep.subr.bf16.mxu0 %v7396_v54 }
 0x18a   :  { %5565 = vmatpush3.bf16.msra.mxu1 %v5564_v22  ;;  %v2899_v22 = vld [vmem:[%s8490_s4 + $0xb0] sm:$0xff] }
 0x18b   :  { %5567 = vmatprep.subr.bf16.mxu1 %v7516_v35  ;;  %v2460_v35 = vld [vmem:[%s8488_s2 + $0x60] sm:$0xff]  ;;  %v8041_v49 = vpack.c.bf16 %v2900_v7, %v2899_v22 }
 0x18c   :  { %5601 = vmatpush3.bf16.msra.mxu0 %v7413_v5 }
 0x18d   :  { %5603 = vmatprep.subr.bf16.mxu0 %v7416_v8  ;;  %v898_v8 = vadd.f32 %v7784_v34, %v7318_v16  ;;  %v5580_v34 = vpack.c.bf16 %v2463_v63, %v2462_v33  ;;  %v2903_v33 = vld [vmem:[%s8490_s4 + $0xd0] sm:$0xff]  ;;  %v2904_v63 = vld [vmem:[%s8490_s4 + $0xd8] sm:$0xff] }
 0x18e   :  { %5569 = vmatpush3.bf16.msra.mxu1 %v5568_v17  ;;  %v4079_v20 = vpop.f32.mrb[8].mxu0  ;;  %v2883_v17 = vld [vmem:[%s8490_s4 + $0x30] sm:$0xff] }
 0x18f   :  { %v4080_v54 = vpop.f32.mrb[9].mxu0  ;;  %5571 = vmatprep.subr.bf16.mxu1 %v7534_v29  ;;  %v5576_v29 = vpack.c.bf16 %v2461_v3, %v2460_v35  ;;  %v2902_v35 = vld [vmem:[%s8490_s4 + $0xc8] sm:$0xff]  ;;  %v8058_v3 = vpack.c.bf16 %v2884_v57, %v2883_v17 }
 0x190   :  { %v4044_v1 = vpop.f32.mrb[6].mxu1  ;;  %v4081_v62 = vadd.f32 %v4080_v54, %v4079_v20  ;;  %5605 = vmatpush3.bf16.msra.mxu0 %v7433_v14  ;;  %v2788_v20 = vld [vmem:[%s8490_s4 + $0x140] sm:$0xff] }
 0x191   :  { %v4045_v5 = vpop.f32.mrb[7].mxu1  ;;  %5607 = vmatprep.subr.bf16.mxu0 %v7436_v13  ;;  %v2901_v54 = vld [vmem:[%s8490_s4 + $0xc0] sm:$0xff] }
 0x192   :  { %v4046_v28 = vadd.f32 %v4045_v5, %v4044_v1  ;;  %5573 = vmatpush3.bf16.msra.mxu1 %v5572_v37  ;;  %v2789_v37 = vld [vmem:[%s8490_s4 + $0x148] sm:$0xff]  ;;  %v8066_v5 = vpack.c.bf16 %v2902_v35, %v2901_v54 }
 0x193   :  { %5575 = vmatprep.subr.bf16.mxu1 %v7554_v42  ;;  %v2537_v42 = vsel %vm126_vm1, %v5985_v50, %v7801_v32  ;;  %v2878_v50 = vld [vmem:[%s8490_s4 + $0x8] sm:$0xff]  ;;  %v8060_v1 = vpack.c.bf16 %v2789_v37, %v2788_v20  ;;  %v8171_v37 = vld [vmem:[%s8489_s3] ss:$0 sm:$0xff] }
 0x194   :  { %v968_v14 = vadd.f32 %v4046_v28, %v898_v8  ;;  %5609 = vmatpush3.bf16.msra.mxu0 %v7453_v36  ;;  %v2535_v36 = vsel %vm126_vm1, %v7781_v27, %v5984_v39  ;;  %v7958_v56 = vpack.c.bf16 %v2878_v50, %v2877_v0  ;;  %v2886_v8 = vld [vmem:[%s8490_s4 + $0x48] sm:$0xff]  ;;  %v2790_v28 = vld [vmem:[%s8490_s4 + $0x150] sm:$0xff]  ;;  %v2795_v0 = vld [vmem:[%s8490_s4 + $0x178] sm:$0xff] }
 0x195   :  { %5611 = vmatprep.subr.bf16.mxu0 %v7456_v21  ;;  %v8510_v21 = vmov 0.0|0.0   ;;  %v2907_v50 = vld [vmem:[%s8490_s4 + $0xf0] sm:$0xff] }
 0x196   :  { %v1038_v13 = vadd.f32 %v4081_v62, %v968_v14  ;;  %5577 = vmatpush3.bf16.msra.mxu1 %v5576_v29  ;;  %v2885_v62 = vld [vmem:[%s8490_s4 + $0x40] sm:$0xff]  ;;  %v2791_v29 = vld [vmem:[%s8490_s4 + $0x158] sm:$0xff] }
 0x197   :  { %5579 = vmatprep.subr.bf16.mxu1 %v7574_v52  ;;  %v8511_v52 = vmov 0.0   ;;  %v8086_v14 = vpack.c.bf16 %v2886_v8, %v2885_v62 }
 0x198   :  { %v1041_v40 = vmax.f32 %v1038_v13, 0.0  ;;  %5613 = vmatpush3.bf16.msra.mxu0 %v7469_v11  ;;  %v8088_v13 = vpack.c.bf16 %v2791_v29, %v2790_v28 }
 0x19a   :  { %1042 = vst.msk [vmem:[#allocation2 + $0x8] sm:$0xff] %vm126_vm1, %v1041_v40  ;;  %5581 = vmatpush3.bf16.msra.mxu1 %v5580_v34  ;;  %v8091_v34 = vpack.c.bf16 %v2904_v63, %v2903_v33  ;;  %v2887_v40 = vld [vmem:[%s8490_s4 + $0x50] sm:$0xff] }
 0x19b   :  { %2680 = vmatmul.mubr.f32.vlgmr.msra.gmra.mrb[22].mxu0 %v2537_v42  ;;  %5614 = vmatprep.subr.bf16.mxu1 %v8510_v21  ;;  %v2888_v42 = vld [vmem:[%s8490_s4 + $0x58] sm:$0xff] }
 0x19d   :  { %2610 = vmatmul.mubr.f32.vlgmr.msra.gmra.mrb[20].mxu1 %v2535_v36  ;;  %v8102_v36 = vpack.c.bf16 %v2888_v42, %v2887_v40 }
 0x19e   :  { %5616 = vmatpush3.bf16.msra.mxu1 %v7638_v48  ;;  %4801 = vmatprep.mubr.msk.f32.mxu1 %vm6013_vm0, %v8511_v52 }
 0x19f   :  { %5617 = vmatprep.subr.bf16.mxu1 %v8510_v21 }
 0x1a2   :  { %5619 = vmatpush3.bf16.msra.mxu1 %v7685_v55  ;;  %v2780_v55 = vld [vmem:[%s8490_s4 + $0x100] sm:$0xff] }
 0x1a3   :  { %5620 = vmatprep.subr.bf16.mxu1 %v8510_v21 }
 0x1a6   :  { %5622 = vmatpush3.bf16.msra.mxu1 %v7718_v9  ;;  %v2781_v9 = vld [vmem:[%s8490_s4 + $0x108] sm:$0xff] }
 0x1a7   :  { %5623 = vmatprep.subr.bf16.mxu1 %v8510_v21  ;;  %v7945_v12 = vpack.c.bf16 %v2781_v9, %v2780_v55  ;;  %v2889_v55 = vld [vmem:[%s8490_s4 + $0x60] sm:$0xff]  ;;  %v2890_v9 = vld [vmem:[%s8490_s4 + $0x68] sm:$0xff] }
 0x1a9   :  { %5627 = vmatprep.subr.bf16.mxu0 %v7945_v12 }
 0x1aa   :  { %5625 = vmatpush3.bf16.msra.mxu1 %v7751_v10  ;;  %v2893_v10 = vld [vmem:[%s8490_s4 + $0x80] sm:$0xff] }
 0x1ad   :  { %4802 = vmatmul.mubr.msk.f32.vlgmr.msra.gmra.mrb[22].mxu1 %vm126_vm1, %v7799_v2  ;;  %v2894_v2 = vld [vmem:[%s8490_s4 + $0x88] sm:$0xff] }
 0x1ae   :  { %v4149_v11 = vpop.f32.mrb[10].mxu0  ;;  %v7956_v39 = vpack.c.bf16 %v2894_v2, %v2893_v10  ;;  %v2794_v2 = vld [vmem:[%s8490_s4 + $0x170] sm:$0xff] }
 0x1af   :  { %v4150_v48 = vpop.f32.mrb[11].mxu0 }
 0x1b0   :  { %v4114_v27 = vpop.f32.mrb[8].mxu1  ;;  %v4151_v38 = vadd.f32 %v4150_v48, %v4149_v11  ;;  %5659 = vmatprep.subr.bf16.mxu1 %v7956_v39  ;;  %5629 = vmatpush3.bf16.msra.mxu0 %v7956_v39  ;;  %v2792_v11 = vld [vmem:[%s8490_s4 + $0x160] sm:$0xff]  ;;  %v2793_v48 = vld [vmem:[%s8490_s4 + $0x168] sm:$0xff] }
 0x1b1   :  { %v4115_v32 = vpop.f32.mrb[9].mxu1  ;;  %5661 = vmatpush3.bf16.msra.mxu1 %v7958_v56 }
 0x1b2   :  { %v4116_v30 = vadd.f32 %v4115_v32, %v4114_v27  ;;  %5663 = vmatprep.subr.bf16.mxu1 %v7987_v31  ;;  %v2905_v27 = vld [vmem:[%s8490_s4 + $0xe0] sm:$0xff]  ;;  %v2906_v32 = vld [vmem:[%s8490_s4 + $0xe8] sm:$0xff] }
 0x1b3   :  { %v8127_v10 = vpack.c.bf16 %v2906_v32, %v2905_v27 }
 0x1b4   :  { %v1246_v46 = vadd.f32 %v4116_v30, %v7318_v16  ;;  %v7976_v16 = vpack.c.bf16 %v2783_v59, %v2782_v58  ;;  %v8129_v30 = vpack.c.bf16 %v2890_v9, %v2889_v55  ;;  %v8144_v58 = vpack.c.bf16 %v2795_v0, %v2794_v2  ;;  %v2908_v59 = vld [vmem:[%s8490_s4 + $0xf8] sm:$0xff] }
 0x1b5   :  { %5665 = vmatpush3.bf16.msra.mxu1 %v7989_v6  ;;  %v8155_v18 = vpack.c.bf16 %v2908_v59, %v2907_v50 }
 0x1b6   :  { %v7973_v61 = vadd.f32 %v4151_v38, %v1246_v46  ;;  %5631 = vmatprep.subr.bf16.mxu0 %v7976_v16  ;;  %5667 = vmatprep.subr.bf16.mxu1 %v8015_v23  ;;  %v8116_v38 = vpack.c.bf16 %v2793_v48, %v2792_v11 }
 0x1b7   :  { %5633 = vmatpush3.bf16.msra.mxu0 %v7987_v31 }
 0x1b8   :  { %5635 = vmatprep.subr.bf16.mxu0 %v8003_v51 }
 0x1b9   :  { %5669 = vmatpush3.bf16.msra.mxu1 %v8017_v44 }
 0x1ba   :  { %5671 = vmatprep.subr.bf16.mxu1 %v8041_v49 }
 0x1bb   :  { %5637 = vmatpush3.bf16.msra.mxu0 %v8015_v23 }
 0x1bc   :  { %5639 = vmatprep.subr.bf16.mxu0 %v8029_v45 }
 0x1bd   :  { %5673 = vmatpush3.bf16.msra.mxu1 %v8058_v3 }
 0x1be   :  { %5675 = vmatprep.subr.bf16.mxu1 %v8066_v5 }
 0x1bf   :  { %5641 = vmatpush3.bf16.msra.mxu0 %v8041_v49 }
 0x1c0   :  { %5643 = vmatprep.subr.bf16.mxu0 %v8060_v1 }
 0x1c1   :  { %5677 = vmatpush3.bf16.msra.mxu1 %v8086_v14 }
 0x1c2   :  { %5679 = vmatprep.subr.bf16.mxu1 %v8091_v34 }
 0x1c3   :  { %5645 = vmatpush3.bf16.msra.mxu0 %v8066_v5 }
 0x1c4   :  { %5647 = vmatprep.subr.bf16.mxu0 %v8088_v13 }
 0x1c5   :  { %5681 = vmatpush3.bf16.msra.mxu1 %v8102_v36 }
 0x1c6   :  { %5683 = vmatprep.subr.bf16.mxu1 %v8127_v10 }
 0x1c7   :  { %5649 = vmatpush3.bf16.msra.mxu0 %v8091_v34 }
 0x1c8   :  { %5651 = vmatprep.subr.bf16.mxu0 %v8116_v38 }
 0x1c9   :  { %5685 = vmatpush3.bf16.msra.mxu1 %v8129_v30 }
 0x1ca   :  { %5687 = vmatprep.subr.bf16.mxu1 %v8155_v18 }
 0x1cb   :  { %5653 = vmatpush3.bf16.msra.mxu0 %v8127_v10 }
 0x1cc   :  { %5655 = vmatprep.subr.bf16.mxu0 %v8144_v58 }
 0x1cd   :  { %5689 = vmatpush3.bf16.msra.mxu1 %v8157_v25 }
 0x1ce   :  { %v4219_v46 = vpop.f32.mrb[12].mxu0  ;;  %5715 = vmatprep.subr.bf16.mxu1 %v7956_v39 }
 0x1cf   :  { %v4220_v24 = vpop.f32.mrb[13].mxu0  ;;  %5657 = vmatpush3.bf16.msra.mxu0 %v8155_v18 }
 0x1d0   :  { %v4184_v19 = vpop.f32.mrb[10].mxu1  ;;  %v4221_v43 = vadd.f32 %v4220_v24, %v4219_v46  ;;  %5690 = vmatprep.subr.bf16.mxu0 %v8510_v21 }
 0x1d1   :  { %v4185_v60 = vpop.f32.mrb[11].mxu1 }
 0x1d2   :  { %v4186_v15 = vadd.f32 %v4185_v60, %v4184_v19  ;;  %v1598_v54 = vadd.f32 %v8171_v37, %v4221_v43 }
 0x1d4   :  { %v1386_v41 = vadd.f32 %v4186_v15, %v7973_v61 }
 0x1d6   :  { %v1389_v26 = vmax.f32 %v1386_v41, 0.0 }
 0x1d8   :  { %1391 = vrot.lane.b32.xlu0 %v1389_v26, %s6011_s21 }
 0x1ea   :  { %v691_v47 = vpop.permute.xlu1 %690 }
 0x1eb   :  { %694 = vst.msk [vmem:[#allocation2] sm:$0xff] %vm693_vm2, %v691_v47 }
 0x1ee   :  { %v4289_v22 = vpop.f32.mrb[14].mxu0 }
 0x1ef   :  { %v4290_v7 = vpop.f32.mrb[15].mxu0 }
 0x1f0   :  { %v4254_v17 = vpop.f32.mrb[12].mxu1  ;;  %v4291_v57 = vadd.f32 %v4290_v7, %v4289_v22 }
 0x1f1   :  { %v4255_v20 = vpop.f32.mrb[13].mxu1 }
 0x1f2   :  { %v4256_v61 = vadd.f32 %v4255_v20, %v4254_v17  ;;  %v2762_v26 = vld [vmem:[#allocation2] sm:$0xff] }
 0x1f4   :  { %v1668_v35 = vadd.f32 %v4256_v61, %v1598_v54 }
 0x1f6   :  { %v1738_v62 = vadd.f32 %v4291_v57, %v1668_v35 }
 0x1f8   :  { %v1741_v8 = vmax.f32 %v1738_v62, 0.0 }
 0x1fa   :  { %1742 = vst.msk [vmem:[#allocation2 + $0x10] sm:$0xff] %vm126_vm1, %v1741_v8 }
 0x20e   :  { %v4359_v28 = vpop.f32.mrb[16].mxu0 }
 0x20f   :  { %v4360_v29 = vpop.f32.mrb[17].mxu0 }
 0x210   :  { %v4324_v33 = vpop.f32.mrb[14].mxu1  ;;  %v4361_v63 = vadd.f32 %v4360_v29, %v4359_v28 }
 0x211   :  { %v4325_v40 = vpop.f32.mrb[15].mxu1 }
 0x212   :  { %v4326_v42 = vadd.f32 %v4325_v40, %v4324_v33 }
 0x214   :  { %v1946_v11 = vadd.f32 %v8171_v37, %v4326_v42 }
 0x216   :  { %v2016_v48 = vadd.f32 %v4361_v63, %v1946_v11  ;;  %v3381_v11 = vld [vmem:[%s8492_s6 + $0x60] sm:$0xff] }
 0x22e   :  { %v4429_v27 = vpop.f32.mrb[18].mxu0 }
 0x22f   :  { %v4430_v32 = vpop.f32.mrb[19].mxu0 }
 0x230   :  { %v4394_v55 = vpop.f32.mrb[16].mxu1  ;;  %v4431_v9 = vadd.f32 %v4430_v32, %v4429_v27  ;;  %v3383_v32 = vld [vmem:[%s8492_s6 + $0x70] sm:$0xff] }
 0x231   :  { %v4395_v2 = vpop.f32.mrb[17].mxu1 }
 0x232   :  { %v4396_v0 = vadd.f32 %v4395_v2, %v4394_v55  ;;  %v2298_v60 = vadd.f32 %v8171_v37, %v4431_v9  ;;  %v3384_v55 = vld [vmem:[%s8492_s6 + $0x78] sm:$0xff]  ;;  %v3385_v2 = vld [vmem:[%s8492_s6 + $0x80] sm:$0xff] }
 0x233   :  { %v8296_v9 = vpack.c.bf16 %v3384_v55, %v3383_v32 }
 0x234   :  { %v2086_v50 = vadd.f32 %v4396_v0, %v2016_v48  ;;  %v3382_v48 = vld [vmem:[%s8492_s6 + $0x68] sm:$0xff] }
 0x235   :  { %v8286_v27 = vpack.c.bf16 %v3382_v48, %v3381_v11  ;;  %v3386_v0 = vld [vmem:[%s8492_s6 + $0x88] sm:$0xff]  ;;  %v3680_v48 = vld [vmem:[%s8496_s10 + $0x10] sm:$0xff] }
 0x236   :  { %v2089_v46 = vmax.f32 %v2086_v50, 0.0  ;;  %v8306_v50 = vpack.c.bf16 %v3386_v0, %v3385_v2  ;;  %v3683_v2 = vld [vmem:[%s8496_s10 + $0x28] sm:$0xff] }
 0x238   :  { %2091 = vrot.lane.b32.xlu0 %v2089_v46, %s6011_s21  ;;  %v3387_v46 = vld [vmem:[%s8492_s6 + $0x90] sm:$0xff] }
 0x24a   :  { %v1392_v59 = vpop.permute.xlu0 %1391 }
 0x24b   :  { %1394 = vst.msk [vmem:[#allocation2 + $0x8] sm:$0xff] %vm693_vm2, %v1392_v59  ;;  %v3388_v59 = vld [vmem:[%s8492_s6 + $0x98] sm:$0xff] }
 0x24e   :  { %v4499_v53 = vpop.f32.mrb[20].mxu0 }
 0x24f   :  { %v4500_v4 = vpop.f32.mrb[21].mxu0 }
 0x250   :  { %v4464_v24 = vpop.f32.mrb[18].mxu1  ;;  %v4501_v19 = vadd.f32 %v4500_v4, %v4499_v53  ;;  %v8316_v53 = vpack.c.bf16 %v3388_v59, %v3387_v46  ;;  %v3389_v4 = vld [vmem:[%s8492_s6 + $0xa0] sm:$0xff] }
 0x251   :  { %v4465_v43 = vpop.f32.mrb[19].mxu1  ;;  %v3786_v59 = vld [vmem:[%s8493_s7] ss:$0 sm:$0xff] }
 0x252   :  { %v4466_v15 = vadd.f32 %v4465_v43, %v4464_v24  ;;  %v2763_v41 = vld [vmem:[#allocation2 + $0x8] sm:$0xff]  ;;  %v3391_v43 = vld [vmem:[%s8492_s6 + $0xb0] sm:$0xff] }
 0x253   :  { %2866 = vmatprep.mubr.f32.mxu0 %v2763_v41  ;;  %2989 = vmatprep.mubr.f32.mxu1 %v2763_v41  ;;  %v3390_v24 = vld [vmem:[%s8492_s6 + $0xa8] sm:$0xff] }
 0x254   :  { %v2368_v47 = vadd.f32 %v4466_v15, %v2298_v60  ;;  %2867 = vmatmul.mubr.f32.vlgmr.msra.gmra.mrb[24].mxu0 %v2762_v26  ;;  %2990 = vmatmul.mubr.f32.vlgmr.msra.gmra.mrb[24].mxu1 %v2762_v26  ;;  %v3392_v60 = vld [vmem:[%s8492_s6 + $0xb8] sm:$0xff]  ;;  %v3394_v26 = vld [vmem:[%s8492_s6 + $0xc8] sm:$0xff] }
 0x255   :  { %5692 = vmatpush3.bf16.msra.mxu0 %v7945_v12  ;;  %5717 = vmatpush3.bf16.msra.mxu1 %v7958_v56  ;;  %v8336_v15 = vpack.c.bf16 %v3392_v60, %v3391_v43 }
 0x256   :  { %v2438_v22 = vadd.f32 %v4501_v19, %v2368_v47  ;;  %5693 = vmatprep.subr.bf16.mxu0 %v8510_v21  ;;  %5719 = vmatprep.subr.bf16.mxu1 %v7987_v31  ;;  %v8326_v19 = vpack.c.bf16 %v3390_v24, %v3389_v4 }
 0x257   :  { %4836 = vmatprep.mubr.msk.f32.mxu0 %vm6013_vm0, %v8511_v52 }
 0x258   :  { %v2441_v7 = vmax.f32 %v2438_v22, 0.0  ;;  %v3395_v22 = vld [vmem:[%s8492_s6 + $0xd0] sm:$0xff] }
 0x259   :  { %5695 = vmatpush3.bf16.msra.mxu0 %v7976_v16  ;;  %5721 = vmatpush3.bf16.msra.mxu1 %v7989_v6 }
 0x25a   :  { %2442 = vst.msk [vmem:[#allocation2 + $0x18] sm:$0xff] %vm126_vm1, %v2441_v7  ;;  %5696 = vmatprep.subr.bf16.mxu0 %v8510_v21  ;;  %5723 = vmatprep.subr.bf16.mxu1 %v8015_v23  ;;  %v3396_v7 = vld [vmem:[%s8492_s6 + $0xd8] sm:$0xff] }
 0x25d   :  { %5698 = vmatpush3.bf16.msra.mxu0 %v8003_v51  ;;  %5725 = vmatpush3.bf16.msra.mxu1 %v8017_v44 }
 0x25e   :  { %5699 = vmatprep.subr.bf16.mxu0 %v8510_v21  ;;  %5727 = vmatprep.subr.bf16.mxu1 %v8041_v49 }
 0x261   :  { %5701 = vmatpush3.bf16.msra.mxu0 %v8029_v45  ;;  %5729 = vmatpush3.bf16.msra.mxu1 %v8058_v3 }
 0x262   :  { %5702 = vmatprep.subr.bf16.mxu0 %v8510_v21  ;;  %5731 = vmatprep.subr.bf16.mxu1 %v8066_v5 }
 0x265   :  { %5704 = vmatpush3.bf16.msra.mxu0 %v8060_v1  ;;  %5733 = vmatpush3.bf16.msra.mxu1 %v8086_v14 }
 0x266   :  { %5705 = vmatprep.subr.bf16.mxu0 %v8510_v21  ;;  %5735 = vmatprep.subr.bf16.mxu1 %v8091_v34 }
 0x269   :  { %5707 = vmatpush3.bf16.msra.mxu0 %v8088_v13  ;;  %5737 = vmatpush3.bf16.msra.mxu1 %v8102_v36 }
 0x26a   :  { %5708 = vmatprep.subr.bf16.mxu0 %v8510_v21  ;;  %5739 = vmatprep.subr.bf16.mxu1 %v8127_v10 }
 0x26d   :  { %5710 = vmatpush3.bf16.msra.mxu0 %v8116_v38  ;;  %5741 = vmatpush3.bf16.msra.mxu1 %v8129_v30 }
 0x26e   :  { %v4569_v17 = vpop.f32.mrb[22].mxu0  ;;  %5711 = vmatprep.subr.bf16.mxu0 %v8510_v21  ;;  %5743 = vmatprep.subr.bf16.mxu1 %v8155_v18 }
 0x26f   :  { %v4570_v57 = vpop.f32.mrb[23].mxu0 }
 0x270   :  { %v4534_v20 = vpop.f32.mrb[20].mxu1  ;;  %v4571_v54 = vadd.f32 %v4570_v57, %v4569_v17  ;;  %v5830_v17 = vpack.c.bf16 %v3396_v7, %v3395_v22  ;;  %v3397_v57 = vld [vmem:[%s8492_s6 + $0xe0] sm:$0xff] }
 0x271   :  { %v4535_v61 = vpop.f32.mrb[21].mxu1  ;;  %5713 = vmatpush3.bf16.msra.mxu0 %v8144_v58  ;;  %5745 = vmatpush3.bf16.msra.mxu1 %v8157_v25 }
 0x272   :  { %v4536_v35 = vadd.f32 %v4535_v61, %v4534_v20  ;;  %5746 = vmatprep.subr.bf16.mxu0 %v8510_v21  ;;  %5771 = vmatprep.subr.bf16.mxu1 %v7956_v39  ;;  %v3398_v20 = vld [vmem:[%s8492_s6 + $0xe8] sm:$0xff]  ;;  %v3399_v61 = vld [vmem:[%s8492_s6 + $0xf0] sm:$0xff] }
 0x274   :  { %v2612_v62 = vadd.f32 %v8171_v37, %v4536_v35  ;;  %v3400_v35 = vld [vmem:[%s8492_s6 + $0xf8] sm:$0xff] }
 0x276   :  { %v2682_v8 = vadd.f32 %v4571_v54, %v2612_v62  ;;  %v5833_v54 = vpack.c.bf16 %v3398_v20, %v3397_v57  ;;  %v5836_v62 = vpack.c.bf16 %v3400_v35, %v3399_v61 }
 0x280   :  { %v2751_v28 = vpop.f32.mrb[22].mxu1 }
 0x281   :  { %v2752_v29 = vadd.f32 %v2751_v28, %v2682_v8  ;;  %v4803_v33 = vpop.f32.mrb[23].mxu1 }
 0x283   :  { %v2755_v63 = vmax.f32 %v2752_v29, 0.0 }
 0x285   :  { %2757 = vrot.lane.b32.xlu1 %v2755_v63, %s6011_s21 }
 0x2aa   :  { %v2092_v40 = vpop.permute.xlu0 %2091 }
 0x2ab   :  { %2094 = vst.msk [vmem:[#allocation2 + $0x10] sm:$0xff] %vm693_vm2, %v2092_v40 }
 0x2b2   :  { %v2876_v42 = vld [vmem:[#allocation2 + $0x10] sm:$0xff] }
 0x2b3   :  { %4837 = vmatmul.mubr.f32.vlgmr.msra.gmra.mrb[26].mxu0 %v2876_v42  ;;  %3186 = vmatprep.mubr.f32.mxu1 %v2876_v42 }
 0x2b4   :  { %3187 = vmatmul.mubr.f32.vlgmr.msra.gmra.mrb[26].mxu1 %v2763_v41  ;;  %5748 = vmatpush3.bf16.msra.mxu0 %v7945_v12  ;;  %v3393_v41 = vld [vmem:[%s8492_s6 + $0xc0] sm:$0xff] }
 0x2b5   :  { %5773 = vmatpush3.bf16.msra.mxu1 %v7958_v56  ;;  %5749 = vmatprep.subr.bf16.mxu0 %v8510_v21  ;;  %v5827_v47 = vpack.c.bf16 %v3394_v26, %v3393_v41 }
 0x2b6   :  { %5775 = vmatprep.subr.bf16.mxu1 %v7987_v31  ;;  %4871 = vmatprep.mubr.msk.f32.mxu0 %vm6013_vm0, %v8511_v52  ;;  %v8255_v31 = vld [vmem:[%s8491_s5] ss:$0 sm:$0xff] }
 0x2b8   :  { %5751 = vmatpush3.bf16.msra.mxu0 %v7976_v16 }
 0x2b9   :  { %5777 = vmatpush3.bf16.msra.mxu1 %v7989_v6  ;;  %5752 = vmatprep.subr.bf16.mxu0 %v8510_v21 }
 0x2ba   :  { %5779 = vmatprep.subr.bf16.mxu1 %v8015_v23 }
 0x2bc   :  { %5754 = vmatpush3.bf16.msra.mxu0 %v8003_v51 }
 0x2bd   :  { %5781 = vmatpush3.bf16.msra.mxu1 %v8017_v44  ;;  %5755 = vmatprep.subr.bf16.mxu0 %v8510_v21 }
 0x2be   :  { %5783 = vmatprep.subr.bf16.mxu1 %v8041_v49 }
 0x2c0   :  { %5757 = vmatpush3.bf16.msra.mxu0 %v8029_v45 }
 0x2c1   :  { %5785 = vmatpush3.bf16.msra.mxu1 %v8058_v3  ;;  %5758 = vmatprep.subr.bf16.mxu0 %v8510_v21 }
 0x2c2   :  { %5787 = vmatprep.subr.bf16.mxu1 %v8066_v5  ;;  %v3377_v5 = vld [vmem:[%s8492_s6 + $0x40] sm:$0xff] }
 0x2c4   :  { %5760 = vmatpush3.bf16.msra.mxu0 %v8060_v1 }
 0x2c5   :  { %5789 = vmatpush3.bf16.msra.mxu1 %v8086_v14  ;;  %5761 = vmatprep.subr.bf16.mxu0 %v8510_v21  ;;  %v3378_v14 = vld [vmem:[%s8492_s6 + $0x48] sm:$0xff] }
 0x2c6   :  { %5791 = vmatprep.subr.bf16.mxu1 %v8091_v34 }
 0x2c8   :  { %5763 = vmatpush3.bf16.msra.mxu0 %v8088_v13  ;;  %v3379_v13 = vld [vmem:[%s8492_s6 + $0x50] sm:$0xff] }
 0x2c9   :  { %5793 = vmatpush3.bf16.msra.mxu1 %v8102_v36  ;;  %5764 = vmatprep.subr.bf16.mxu0 %v8510_v21 }
 0x2ca   :  { %5795 = vmatprep.subr.bf16.mxu1 %v8127_v10  ;;  %v8269_v10 = vpack.c.bf16 %v3378_v14, %v3377_v5  ;;  %v3490_v5 = vld [vmem:[%s8492_s6 + $0x30] sm:$0xff]  ;;  %v3491_v14 = vld [vmem:[%s8492_s6 + $0x38] sm:$0xff] }
 0x2cc   :  { %5766 = vmatpush3.bf16.msra.mxu0 %v8116_v38 }
 0x2cd   :  { %5797 = vmatpush3.bf16.msra.mxu1 %v8129_v30  ;;  %5767 = vmatprep.subr.bf16.mxu0 %v8510_v21  ;;  %v3380_v30 = vld [vmem:[%s8492_s6 + $0x58] sm:$0xff] }
 0x2ce   :  { %5799 = vmatprep.subr.bf16.mxu1 %v8155_v18  ;;  %v8275_v37 = vpack.c.bf16 %v3380_v30, %v3379_v13  ;;  %v5848_v13 = vpack.c.bf16 %v3491_v14, %v3490_v5  ;;  %v3594_v30 = vld [vmem:[%s8487_s1] sm:$0xff] }
 0x2d0   :  { %5769 = vmatpush3.bf16.msra.mxu0 %v8144_v58 }
 0x2d1   :  { %5801 = vmatpush3.bf16.msra.mxu1 %v8157_v25  ;;  %5802 = vmatprep.subr.bf16.mxu0 %v8510_v21 }
 0x2d2   :  { %5838 = vmatprep.subr.bf16.mxu1 %v8510_v21 }
 0x2f7   :  { %v2758_v12 = vpop.permute.xlu1 %2757 }
 0x2f8   :  { %2760 = vst.msk [vmem:[#allocation2 + $0x18] sm:$0xff] %vm693_vm2, %v2758_v12 }
 0x2ff   :  { %v3073_v39 = vld [vmem:[#allocation2 + $0x18] sm:$0xff] }
 0x300   :  { %4872 = vmatmul.mubr.f32.vlgmr.msra.gmra.mrb[28].mxu0 %v3073_v39  ;;  %3362 = vmatprep.mubr.f32.mxu1 %v3073_v39 }
 0x301   :  { %3363 = vmatmul.mubr.f32.vlgmr.msra.gmra.mrb[28].mxu1 %v2876_v42  ;;  %5804 = vmatpush1.bf16.msra.mxu0 %v8269_v10 }
 0x302   :  { %5805 = vmatprep.subr.bf16.mxu0 %v8510_v21 }
 0x305   :  { %5807 = vmatpush1.bf16.msra.mxu0 %v8275_v37 }
 0x306   :  { %5808 = vmatprep.subr.bf16.mxu0 %v8510_v21 }
 0x309   :  { %5810 = vmatpush1.bf16.msra.mxu0 %v8286_v27 }
 0x30a   :  { %5811 = vmatprep.subr.bf16.mxu0 %v8510_v21 }
 0x30d   :  { %5813 = vmatpush1.bf16.msra.mxu0 %v8296_v9 }
 0x30e   :  { %5814 = vmatprep.subr.bf16.mxu0 %v8510_v21 }
 0x311   :  { %5816 = vmatpush1.bf16.msra.mxu0 %v8306_v50 }
 0x312   :  { %5817 = vmatprep.subr.bf16.mxu0 %v8510_v21 }
 0x315   :  { %5819 = vmatpush1.bf16.msra.mxu0 %v8316_v53 }
 0x316   :  { %5820 = vmatprep.subr.bf16.mxu0 %v8510_v21 }
 0x319   :  { %5822 = vmatpush1.bf16.msra.mxu0 %v8326_v19 }
 0x31a   :  { %5823 = vmatprep.subr.bf16.mxu0 %v8510_v21 }
 0x31d   :  { %5825 = vmatpush1.bf16.msra.mxu0 %v8336_v15 }
 0x31e   :  { %5826 = vmatprep.subr.bf16.mxu0 %v8510_v21 }
 0x321   :  { %5828 = vmatpush1.bf16.msra.mxu0 %v5827_v47 }
 0x322   :  { %5829 = vmatprep.subr.bf16.mxu0 %v8510_v21 }
 0x325   :  { %5831 = vmatpush1.bf16.msra.mxu0 %v5830_v17  ;;  %v3791_v17 = vld [vmem:[%s8497_s11] ss:$0 sm:$0xff] }
 0x326   :  { %5832 = vmatprep.subr.bf16.mxu0 %v8510_v21 }
 0x327   :  { %v4613_v56 = vpop.f32.mrb[24].mxu0  ;;  %v4648_v16 = vpop.f32.mrb[24].mxu1 }
 0x328   :  { %v4614_v6 = vpop.f32.mrb[25].mxu0  ;;  %v4649_v51 = vpop.f32.mrb[25].mxu1 }
 0x329   :  { %v4615_v23 = vadd.f32 %v4614_v6, %v4613_v56  ;;  %v4650_v44 = vadd.f32 %v4649_v51, %v4648_v16  ;;  %5834 = vmatpush1.bf16.msra.mxu0 %v5833_v54  ;;  %v3484_v16 = vld [vmem:[%s8492_s6] sm:$0xff]  ;;  %v3485_v6 = vld [vmem:[%s8492_s6 + $0x8] sm:$0xff]  ;;  %v3486_v51 = vld [vmem:[%s8492_s6 + $0x10] sm:$0xff] }
 0x32a   :  { %5835 = vmatprep.subr.bf16.mxu0 %v8510_v21 }
 0x32b   :  { %v2869_v45 = vadd.f32 %v4615_v23, %v8255_v31  ;;  %v2992_v3 = vadd.f32 %v4650_v44, %v8255_v31  ;;  %v5839_v23 = vpack.c.bf16 %v3485_v6, %v3484_v16 }
 0x32d   :  { %v2872_v49 = vmax.f32 %v2869_v45, 0.0  ;;  %5837 = vmatpush1.bf16.msra.mxu0 %v5836_v62  ;;  %5840 = vmatpush1.bf16.msra.mxu1 %v5839_v23  ;;  %v3488_v45 = vld [vmem:[%s8492_s6 + $0x20] sm:$0xff] }
 0x32e   :  { %4874 = vmatprep.subr.mxu0 %v8511_v52  ;;  %5841 = vmatprep.subr.bf16.mxu1 %v8510_v21 }
 0x32f   :  { %2873 = vst.msk [vmem:[#allocation3] sm:$0xff] %vm126_vm1, %v2872_v49  ;;  %v3489_v49 = vld [vmem:[%s8492_s6 + $0x28] sm:$0xff] }
 0x386   :  { %v3061_v1 = vpop.f32.mrb[26].mxu0 }
 0x387   :  { %v3062_v34 = vadd.f32 %v3061_v1, %v2992_v3  ;;  %v4838_v36 = vpop.f32.mrb[27].mxu0  ;;  %v4700_v38 = vpop.f32.mrb[26].mxu1  ;;  %v5845_v1 = vpack.c.bf16 %v3489_v49, %v3488_v45 }
 0x388   :  { %v4701_v58 = vpop.f32.mrb[27].mxu1 }
 0x389   :  { %v3065_v18 = vmax.f32 %v3062_v34, 0.0  ;;  %v4702_v25 = vadd.f32 %v4701_v58, %v4700_v38  ;;  %v3678_v58 = vld [vmem:[%s8496_s10] sm:$0xff] }
 0x38b   :  { %3067 = vrot.lane.b32.xlu1 %v3065_v18, %s6011_s21  ;;  %v3189_v8 = vadd.f32 %v4702_v25, %v8255_v31  ;;  %v3679_v18 = vld [vmem:[%s8496_s10 + $0x8] sm:$0xff] }
 0x38c   :  { %v5875_v25 = vpack.c.bf16 %v3679_v18, %v3678_v58 }
 0x3d3   :  { %v3258_v28 = vpop.f32.mrb[28].mxu0 }
 0x3d4   :  { %v3259_v29 = vadd.f32 %v3258_v28, %v3189_v8  ;;  %v4873_v33 = vpop.f32.mrb[29].mxu0  ;;  %v4752_v63 = vpop.f32.mrb[28].mxu1 }
 0x3d5   :  { %v4753_v40 = vpop.f32.mrb[29].mxu1 }
 0x3d6   :  { %v3262_v42 = vmax.f32 %v3259_v29, 0.0  ;;  %v4754_v12 = vadd.f32 %v4753_v40, %v4752_v63 }
 0x3d8   :  { %3263 = vst.msk [vmem:[#allocation3 + $0x8] sm:$0xff] %vm126_vm1, %v3262_v42  ;;  %v3365_v39 = vadd.f32 %v4754_v12, %v8255_v31  ;;  %v3487_v31 = vld [vmem:[%s8492_s6 + $0x18] sm:$0xff] }
 0x3d9   :  { %v5842_v44 = vpack.c.bf16 %v3487_v31, %v3486_v51 }
 0x3da   :  { %v3368_v56 = vmax.f32 %v3365_v39, 0.0 }
 0x3db   :  { %5843 = vmatpush1.bf16.msra.mxu1 %v5842_v44 }
 0x3dc   :  { %3370 = vrot.lane.b32.xlu0 %v3368_v56, %s6011_s21  ;;  %5844 = vmatprep.subr.bf16.mxu1 %v8510_v21 }
 0x3df   :  { %5846 = vmatpush1.bf16.msra.mxu1 %v5845_v1 }
 0x3e0   :  { %5847 = vmatprep.subr.bf16.mxu1 %v8510_v21 }
 0x3e3   :  { %5849 = vmatpush1.bf16.msra.mxu1 %v5848_v13 }
 0x3e4   :  { %5850 = vmatprep.subr.bf16.mxu1 %v8510_v21 }
 0x3e7   :  { %5852 = vmatpush1.bf16.msra.mxu1 %v8269_v10  ;;  %v3595_v10 = vld [vmem:[%s8494_s8] sm:$0xff] }
 0x3e8   :  { %5853 = vmatprep.subr.bf16.mxu1 %v8510_v21 }
 0x3eb   :  { %5855 = vmatpush1.bf16.msra.mxu1 %v8275_v37 }
 0x3ec   :  { %5856 = vmatprep.subr.bf16.mxu1 %v8510_v21 }
 0x3ef   :  { %5858 = vmatpush1.bf16.msra.mxu1 %v8286_v27  ;;  %v3681_v27 = vld [vmem:[%s8496_s10 + $0x18] sm:$0xff] }
 0x3f0   :  { %5859 = vmatprep.subr.bf16.mxu1 %v8510_v21  ;;  %v5878_v55 = vpack.c.bf16 %v3681_v27, %v3680_v48 }
 0x3f3   :  { %5861 = vmatpush1.bf16.msra.mxu1 %v8296_v9  ;;  %v3682_v9 = vld [vmem:[%s8496_s10 + $0x20] sm:$0xff] }
 0x3f4   :  { %5862 = vmatprep.subr.bf16.mxu1 %v8510_v21  ;;  %v5881_v0 = vpack.c.bf16 %v3683_v2, %v3682_v9 }
 0x3f7   :  { %5864 = vmatpush1.bf16.msra.mxu1 %v8306_v50  ;;  %v3684_v50 = vld [vmem:[%s8496_s10 + $0x30] sm:$0xff] }
 0x3f8   :  { %5865 = vmatprep.subr.bf16.mxu1 %v8510_v21 }
 0x3fb   :  { %5867 = vmatpush1.bf16.msra.mxu1 %v8316_v53 }
 0x3fc   :  { %5868 = vmatprep.subr.bf16.mxu1 %v8510_v21 }
 0x3fd   :  { %v3068_v3 = vpop.permute.xlu1 %3067 }
 0x3fe   :  { %3070 = vst.msk [vmem:[#allocation3] sm:$0xff] %vm693_vm2, %v3068_v3 }
 0x3ff   :  { %5870 = vmatpush1.bf16.msra.mxu1 %v8326_v19  ;;  %v3789_v19 = vld [vmem:[%s8495_s9] ss:$0 sm:$0xff]  ;;  %s6015_s9 = smov [#allocation4]  }
 0x400   :  { %5871 = vmatprep.subr.bf16.mxu1 %v8510_v21  ;;  %s3774_s13 = sshll.u32 %s6015_s9, 4  ;;  %s3775_s13 = int_to_ptr.vmem [resolvable:$true] %s3774_s13 }
 0x401   :  { %s5987_s6 = scalar_lea.vmem %s3775_s13, 256  ;;  %p5992_p1 = scmp.lt.s32.totalorder %s3775_s13, %s3775_s13 }
 0x402   :  { %p5988_p0 = scmp.ne.s32.totalorder %s3775_s13, %s5987_s6  ;;  %p5993_p2 = scmp.lt.s32.totalorder %s5987_s6, %s5987_s6 }
 0x403   :  { %5873 = vmatpush1.bf16.msra.mxu1 %v8336_v15 }
 0x404   :  { %5874 = vmatprep.subr.bf16.mxu1 %v8510_v21  ;;  %p5994_p3 = por %p5993_p2, %p5992_p1 }
 0x405   :  { %v3482_v34 = vld [vmem:[#allocation3] sm:$0xff] }
 0x406   :  { %3510 = vrot.lane.b32.xlu0 %v3482_v34, %s6011_s21  ;;  %p5995_p4 = pnand %p5994_p3, %p5988_p0 }
 0x44e   :  { %v3371_v36 = vpop.permute.xlu0 %3370 }
 0x44f   :  { %3373 = vst.msk [vmem:[#allocation3 + $0x8] sm:$0xff] %vm693_vm2, %v3371_v36 }
 0x456   :  { %v3483_v38 = vld [vmem:[#allocation3 + $0x8] sm:$0xff] }
 0x457   :  { %3512 = vrot.lane.b32.xlu1 %v3483_v38, %s6011_s21  ;;  %3787 = vmatprep.mubr.msk.f32.mxu0 %vm126_vm1, %v3483_v38 }
 0x458   :  { %3475 = vmatmul.mubr.f32.vlgmr.msra.gmra.mrb[30].mxu0 %v3482_v34 }
 0x459   :  { %4875 = vmatpush3.msra.mxu0 %v3595_v10  ;;  %4876 = vmatprep.mubr.msk.f32.mxu0 %vm6013_vm0, %v8511_v52 }
 0x45c   :  { %4877 = vmatmul.mubr.msk.f32.vlgmr.msra.gmra.mrb[32].mxu0 %vm3603_vm3, %v3594_v30 }
 0x478   :  { %v3511_v37 = vpop.permute.xlu0 %3510 }
 0x4c9   :  { %v3513_v11 = vpop.permute.xlu1 %3512 }
 0x4ca   :  { %v3514_v32 = vsel %vm126_vm1, %v3511_v37, %v3513_v11  ;;  %3788 = vmatprep.mubr.msk.f32.mxu1 %vm126_vm1, %v3513_v11 }
 0x4cb   :  { %3583 = vmatmul.mubr.f32.vlgmr.msra.gmra.mrb[30].mxu1 %v3514_v32 }
 0x4cc   :  { %5876 = vmatpush3.bf16.msra.mxu1 %v5875_v25  ;;  %4895 = vmatprep.mubr.msk.f32.mxu1 %vm6013_vm0, %v8511_v52  ;;  %v3685_v52 = vld [vmem:[%s8496_s10 + $0x38] sm:$0xff] }
 0x4cd   :  { %5877 = vmatprep.subr.bf16.mxu1 %v8510_v21  ;;  %v5884_v46 = vpack.c.bf16 %v3685_v52, %v3684_v50 }
 0x4d0   :  { %5879 = vmatpush3.bf16.msra.mxu1 %v5878_v55 }
 0x4d1   :  { %5880 = vmatprep.subr.bf16.mxu1 %v8510_v21 }
 0x4d4   :  { %5882 = vmatpush3.bf16.msra.mxu1 %v5881_v0 }
 0x4d5   :  { %5883 = vmatprep.subr.bf16.mxu1 %v8510_v21 }
 0x4d8   :  { %5885 = vmatpush3.bf16.msra.mxu1 %v5884_v46 }
 0x52b   :  { %v3476_v53 = vpop.f32.mrb[30].mxu0 }
 0x52c   :  { %v3477_v4 = vadd.f32 %v3786_v59, %v3476_v53  ;;  %v3478_v24 = vpop.f32.mrb[31].mxu0 }
 0x52e   :  { %v3480_v43 = vmax.f32 %v3477_v4, 0.0 }
 0x52f   :  { %v3673_v60 = vpop.f32.mrb[32].mxu0 }
 0x530   :  { %3481 = vst.msk [vmem:[#allocation4] sm:$0xff] %vm126_vm1, %v3480_v43  ;;  %v3674_v15 = vadd.f32 %v3789_v19, %v3673_v60  ;;  %v4878_v41 = vpop.f32.mrb[33].mxu0 }
 0x532   :  { %v3677_v26 = vmax.f32 %v3674_v15, 0.0 }
 0x534   :  { %4896 = vmatmul.mubr.msk.f32.vlgmr.msra.gmra.mrb[32].mxu1 %vm126_vm1, %v3677_v26 }
 0x59e   :  { %v3584_v21 = vpop.f32.mrb[30].mxu1 }
 0x59f   :  { %v3585_v47 = vadd.f32 %v3786_v59, %v3584_v21  ;;  %v3586_v22 = vpop.f32.mrb[31].mxu1 }
 0x5a1   :  { %v3588_v7 = vmax.f32 %v3585_v47, 0.0 }
 0x5a3   :  { %3590 = vrot.lane.b32.xlu0 %v3588_v7, %s6011_s21 }
 0x607   :  { %v3762_v57 = vpop.f32.mrb[32].mxu1 }
 0x608   :  { %v3763_v20 = vadd.f32 %v3791_v17, %v3762_v57  ;;  %v4897_v54 = vpop.f32.mrb[33].mxu1 }
 0x60a   :  { %v3766_v61 = vmax.f32 %v3763_v20, 0.0 }
 0x60c   :  { %3767 = vst [vmem:[#allocation4 + $0x8] sm:$0xff] %v3766_v61 }
 0x615   :  { %v3591_v35 = vpop.permute.xlu0 %3590 }
 0x616   :  { %3593 = vst.msk [vmem:[#allocation4] sm:$0xff] %vm693_vm2, %v3591_v35 }
 0x617   :  { %5998 = shalt.err (!%p5995_p4)
}
 0x618   :  { %s5999_s3 = scalar_lea.hbm %s8498_s12, 256 }
 0x619   :  { %p6000_p5 = scmp.ne.s32.totalorder %s8498_s12, %s5999_s3  ;;  %p6003_p6 = scmp.lt.u32.totalorder %s5999_s3, %s8498_s12 }
 0x61b   :  { %p6005_p7 = pnand %p6003_p6, %p6000_p5 }
 0x61d   :  { %6008 = shalt.err (!%p6005_p7)
}
 0x61e   :  { %3777 = dma.vmem_to_hbm [thread:$0]  %s3775_s13, 256, %s8498_s12, [#allocation5]  }
 0x61f   :  { %6009 = dma.done.wait [#allocation5], 256  }
 0x620   :  { %6010 = vsyncadd [#allocation5], 4294967040 }
 0x621   :  { %3781 = vsyncpa [#allocation5], 1 }

</bundles_post_ra>
